<compile_context>
chip_gen: v5e
topology: v5e:2x2
jax: 0.10.0
libtpu: 0.0.40
codegen_flags: <defaults>
</compile_context>

<pallas_src>
import functools
import math

import jax
import jax.numpy as jnp
from jax.experimental import pallas as pl
from jax.experimental.pallas import tpu as pltpu


# ---------------------------------------------------------------------------
# In-kernel helpers (traced inside the Pallas kernel)
# ---------------------------------------------------------------------------

def _layernorm(x, g, b, eps):
    mean = jnp.mean(x, axis=-1, keepdims=True)
    var = jnp.mean(jnp.square(x - mean), axis=-1, keepdims=True)
    return (x - mean) * jax.lax.rsqrt(var + eps) * g + b


def _mha(q, k, v, n_head, mask_bias):
    """q: [Sq, D] f32, k/v: [Sk, D] f32 -> [Sq, D] f32.

    Heads are batched into a single contraction (MXU-friendly); the attention
    scale is already folded into the Q projection weights.
    """
    sq, d = q.shape
    sk = k.shape[0]
    dh = d // n_head
    qh = q.reshape(sq, n_head, dh).astype(jnp.bfloat16)
    kh = k.reshape(sk, n_head, dh).astype(jnp.bfloat16)
    vh = v.reshape(sk, n_head, dh).astype(jnp.bfloat16)
    # One batched QK^T over all heads.
    s = jnp.einsum("qhd,khd->hqk", qh, kh, preferred_element_type=jnp.float32)
    if mask_bias is not None:
        s = s + mask_bias[None]                      # fp32 causal bias
    m = jnp.max(s, axis=-1, keepdims=True)
    p = jnp.exp(s - m)
    p = p * pl.reciprocal(jnp.sum(p, axis=-1, keepdims=True), approx=True)
    o = jnp.einsum("hqk,khd->qhd", p.astype(jnp.bfloat16), vh,
                   preferred_element_type=jnp.float32)
    return o.reshape(sq, d)


# ---------------------------------------------------------------------------
# Fused decoder kernel: one grid step = one (batch element, layer) pair.
# The output block (index depends only on the batch axis) carries the residual
# stream in VMEM across all layers; the final LayerNorm is applied in-place on
# the last layer step.
# ---------------------------------------------------------------------------

def _decoder_kernel(tgt_ref, mem_ref,
                    ln1_g_ref, ln1_b_ref, wqkv_ref, bqkv_ref, wo_s_ref, bo_s_ref,
                    ln2_g_ref, ln2_b_ref, wq_c_ref, bq_c_ref, wkv_c_ref, bkv_c_ref,
                    wo_c_ref, bo_c_ref,
                    ln3_g_ref, ln3_b_ref, w1_ref, b1_ref, w2_ref, b2_ref,
                    fin_g_ref, fin_b_ref,
                    o_ref, *, n_head, eps, final_eps):
    layer = pl.program_id(1)
    n_layers = pl.num_programs(1)

    # Initialize the resident residual stream from tgt on the first layer step.
    @pl.when(layer == 0)
    def _():
        o_ref[0] = tgt_ref[0]

    y = o_ref[0]                                     # [S, D] fp32 residual
    s_len, d = y.shape

    # ---- Self-attention block: y += OutProj(CausalMHA(LN1(y))) ----
    x = _layernorm(y, ln1_g_ref[0], ln1_b_ref[0], eps)
    qkv = (jnp.dot(x.astype(jnp.bfloat16), wqkv_ref[0],
                   preferred_element_type=jnp.float32) + bqkv_ref[0])
    row = jax.lax.broadcasted_iota(jnp.int32, (s_len, s_len), 0)
    col = jax.lax.broadcasted_iota(jnp.int32, (s_len, s_len), 1)
    causal_bias = jnp.where(col <= row, 0.0, -1e30).astype(jnp.float32)
    attn = _mha(qkv[:, 0 * d:1 * d], qkv[:, 1 * d:2 * d], qkv[:, 2 * d:3 * d],
                n_head, causal_bias)
    y = y + (jnp.dot(attn.astype(jnp.bfloat16), wo_s_ref[0],
                     preferred_element_type=jnp.float32) + bo_s_ref[0])

    # ---- Cross-attention block: y += OutProj(MHA(LN2(y), memory)) ----
    x = _layernorm(y, ln2_g_ref[0], ln2_b_ref[0], eps)
    mem = mem_ref[0]                                 # [S_mem, D]
    q = (jnp.dot(x.astype(jnp.bfloat16), wq_c_ref[0],
                 preferred_element_type=jnp.float32) + bq_c_ref[0])
    kv = (jnp.dot(mem.astype(jnp.bfloat16), wkv_c_ref[0],
                  preferred_element_type=jnp.float32) + bkv_c_ref[0])
    attn = _mha(q, kv[:, 0 * d:1 * d], kv[:, 1 * d:2 * d], n_head, None)
    y = y + (jnp.dot(attn.astype(jnp.bfloat16), wo_c_ref[0],
                     preferred_element_type=jnp.float32) + bo_c_ref[0])

    # ---- FFN block: y += Linear2(ReLU(Linear1(LN3(y)))) ----
    x = _layernorm(y, ln3_g_ref[0], ln3_b_ref[0], eps)
    h = (jnp.dot(x.astype(jnp.bfloat16), w1_ref[0],
                 preferred_element_type=jnp.float32) + b1_ref[0])
    h = jnp.maximum(h, 0.0)
    y = y + (jnp.dot(h.astype(jnp.bfloat16), w2_ref[0],
                     preferred_element_type=jnp.float32) + b2_ref[0])

    o_ref[0] = y

    # Final LayerNorm (eps=1e-5 in the torch module) on the last layer step.
    @pl.when(layer == n_layers - 1)
    def _():
        o_ref[0] = _layernorm(y, fin_g_ref[...], fin_b_ref[...], final_eps)


# ---------------------------------------------------------------------------
# pallas_call wrapper
# ---------------------------------------------------------------------------

def mortm_decoder_forward(tgt, memory, params, n_head, layer_norm_eps=1e-5):
    B, S, D = tgt.shape
    Sm = memory.shape[1]
    L = params["self_wqkv"].shape[0]
    F = params["ffn_w1"].shape[-1]

    def per_layer(shape):
        # Per-layer stacked weight: block index follows the layer grid axis.
        return pl.BlockSpec((1,) + shape, lambda b, l, _s=shape: (l,) + (0,) * len(_s))

    in_specs = [
        pl.BlockSpec((1, S, D), lambda b, l: (b, 0, 0)),      # tgt
        pl.BlockSpec((1, Sm, D), lambda b, l: (b, 0, 0)),     # memory
        per_layer((1, D)), per_layer((1, D)),                 # ln1 g, b
        per_layer((D, 3 * D)), per_layer((1, 3 * D)),         # self Wqkv, bqkv
        per_layer((D, D)), per_layer((1, D)),                 # self Wo, bo
        per_layer((1, D)), per_layer((1, D)),                 # ln2 g, b
        per_layer((D, D)), per_layer((1, D)),                 # cross Wq, bq
        per_layer((D, 2 * D)), per_layer((1, 2 * D)),         # cross Wkv, bkv
        per_layer((D, D)), per_layer((1, D)),                 # cross Wo, bo
        per_layer((1, D)), per_layer((1, D)),                 # ln3 g, b
        per_layer((D, F)), per_layer((1, F)),                 # ffn W1, b1
        per_layer((F, D)), per_layer((1, D)),                 # ffn W2, b2
        pl.BlockSpec((1, D), lambda b, l: (0, 0)),            # final LN g
        pl.BlockSpec((1, D), lambda b, l: (0, 0)),            # final LN b
    ]
    out_specs = pl.BlockSpec((1, S, D), lambda b, l: (b, 0, 0))

    kernel = functools.partial(_decoder_kernel, n_head=n_head,
                               eps=layer_norm_eps, final_eps=1e-5)
    return pl.pallas_call(
        kernel,
        out_shape=jax.ShapeDtypeStruct((B, S, D), jnp.float32),
        grid=(B, L),
        in_specs=in_specs,
        out_specs=out_specs,
        compiler_params=pltpu.CompilerParams(
            dimension_semantics=("parallel", "arbitrary"),
            vmem_limit_bytes=32 * 1024 * 1024),
    )(tgt, memory,
      params["ln1_g"], params["ln1_b"],
      params["self_wqkv"], params["self_bqkv"], params["self_wo"], params["self_bo"],
      params["ln2_g"], params["ln2_b"],
      params["cross_wq"], params["cross_bq"],
      params["cross_wkv"], params["cross_bkv"], params["cross_wo"], params["cross_bo"],
      params["ln3_g"], params["ln3_b"],
      params["ffn_w1"], params["ffn_b1"], params["ffn_w2"], params["ffn_b2"],
      params["final_g"], params["final_b"])


# ---------------------------------------------------------------------------
# Deterministic parameter construction
# (matmul weights bf16, attention scale folded into Q projection)
# ---------------------------------------------------------------------------

def init_params(key, d_model, dim_ff, num_layers, n_head):
    ks = jax.random.split(key, 10)
    s = 0.02
    scale = 1.0 / math.sqrt(d_model // n_head)

    def nrm(k, shape):
        return s * jax.random.normal(k, shape, jnp.float32)

    sq, sk, sv, so = (nrm(ks[i], (d_model, d_model)) for i in range(4))
    cq, ck, cv, co = (nrm(ks[4 + i], (d_model, d_model)) for i in range(4))
    f1 = nrm(ks[8], (d_model, dim_ff))
    f2 = nrm(ks[9], (dim_ff, d_model))

    ones = jnp.ones((1, d_model), jnp.float32)
    zeros = jnp.zeros((1, d_model), jnp.float32)
    bf16 = jnp.bfloat16

    # One layer's params; _get_clones deep-copies, so all layers share values.
    layer = {
        # Self-attention: fused QKV weight [D, 3D]; scale folded into Q cols/bias.
        "self_wqkv": jnp.concatenate([sq * scale, sk, sv], axis=1).astype(bf16),
        "self_bqkv": jnp.zeros((1, 3 * d_model), jnp.float32),
        "self_wo": so.astype(bf16),
        "self_bo": zeros,
        # Cross-attention: scaled Q weight + fused KV weight [D, 2D].
        "cross_wq": (cq * scale).astype(bf16),
        "cross_bq": zeros,
        "cross_wkv": jnp.concatenate([ck, cv], axis=1).astype(bf16),
        "cross_bkv": jnp.zeros((1, 2 * d_model), jnp.float32),
        "cross_wo": co.astype(bf16),
        "cross_bo": zeros,
        # FFN
        "ffn_w1": f1.astype(bf16),
        "ffn_b1": jnp.zeros((1, dim_ff), jnp.float32),
        "ffn_w2": f2.astype(bf16),
        "ffn_b2": zeros,
        # LayerNorms (fp32)
        "ln1_g": ones, "ln1_b": zeros,
        "ln2_g": ones, "ln2_b": zeros,
        "ln3_g": ones, "ln3_b": zeros,
    }

    # Stack every per-layer tensor on a leading layer axis for the (B, L) grid.
    stacked = {k: jnp.stack([v] * num_layers, axis=0) for k, v in layer.items()}
    stacked["final_g"] = ones
    stacked["final_b"] = zeros
    return stacked


# ---------------------------------------------------------------------------
# Main
# ---------------------------------------------------------------------------

if __name__ == "__main__":
    B, S_TGT, S_MEM = 2, 8, 8
    D_MODEL, N_HEAD, DIM_FF, N_LAYER = 32, 4, 64, 2

    key = jax.random.PRNGKey(0)
    k_tgt, k_mem, k_param = jax.random.split(key, 3)

    tgt = jax.random.normal(k_tgt, (B, S_TGT, D_MODEL), jnp.float32)
    memory = jax.random.normal(k_mem, (B, S_MEM, D_MODEL), jnp.float32)
    params = init_params(k_param, D_MODEL, DIM_FF, N_LAYER, N_HEAD)

    out = mortm_decoder_forward(tgt, memory, params, N_HEAD, layer_norm_eps=1e-5)
    out = jax.block_until_ready(out)

    assert out.shape == (B, S_TGT, D_MODEL)
    assert bool(jnp.all(jnp.isfinite(out)))
    print("KERNEL_OK")
</pallas_src>

<mosaic_0001>
module attributes {stable_mosaic.version = 11 : i64} {
  func.func @_decoder_kernel(%arg0: i32, %arg1: i32, %arg2: memref<1x8x32xf32, #tpu.memory_space<vmem>>, %arg3: memref<1x8x32xf32, #tpu.memory_space<vmem>>, %arg4: memref<1x1x32xf32, #tpu.memory_space<vmem>>, %arg5: memref<1x1x32xf32, #tpu.memory_space<vmem>>, %arg6: memref<1x32x96xbf16, #tpu.memory_space<vmem>>, %arg7: memref<1x1x96xf32, #tpu.memory_space<vmem>>, %arg8: memref<1x32x32xbf16, #tpu.memory_space<vmem>>, %arg9: memref<1x1x32xf32, #tpu.memory_space<vmem>>, %arg10: memref<1x1x32xf32, #tpu.memory_space<vmem>>, %arg11: memref<1x1x32xf32, #tpu.memory_space<vmem>>, %arg12: memref<1x32x32xbf16, #tpu.memory_space<vmem>>, %arg13: memref<1x1x32xf32, #tpu.memory_space<vmem>>, %arg14: memref<1x32x64xbf16, #tpu.memory_space<vmem>>, %arg15: memref<1x1x64xf32, #tpu.memory_space<vmem>>, %arg16: memref<1x32x32xbf16, #tpu.memory_space<vmem>>, %arg17: memref<1x1x32xf32, #tpu.memory_space<vmem>>, %arg18: memref<1x1x32xf32, #tpu.memory_space<vmem>>, %arg19: memref<1x1x32xf32, #tpu.memory_space<vmem>>, %arg20: memref<1x32x64xbf16, #tpu.memory_space<vmem>>, %arg21: memref<1x1x64xf32, #tpu.memory_space<vmem>>, %arg22: memref<1x64x32xbf16, #tpu.memory_space<vmem>>, %arg23: memref<1x1x32xf32, #tpu.memory_space<vmem>>, %arg24: memref<1x32xf32, #tpu.memory_space<vmem>>, %arg25: memref<1x32xf32, #tpu.memory_space<vmem>>, %arg26: memref<1x8x32xf32, #tpu.memory_space<vmem>>) attributes {dimension_semantics = [#tpu.dimension_semantics<parallel>, #tpu.dimension_semantics<arbitrary>], iteration_bounds = array<i64: 2, 2>, scalar_prefetch = 0 : i64, scratch_operands = 0 : i64, tpu.core_type = #tpu.core_type<tc>, window_params = [{transform_indices = @transform_0, window_bounds = array<i64: 1, 8, 32>}, {transform_indices = @transform_1, window_bounds = array<i64: 1, 8, 32>}, {transform_indices = @transform_2, window_bounds = array<i64: 1, 1, 32>}, {transform_indices = @transform_3, window_bounds = array<i64: 1, 1, 32>}, {transform_indices = @transform_4, window_bounds = array<i64: 1, 32, 96>}, {transform_indices = @transform_5, window_bounds = array<i64: 1, 1, 96>}, {transform_indices = @transform_6, window_bounds = array<i64: 1, 32, 32>}, {transform_indices = @transform_7, window_bounds = array<i64: 1, 1, 32>}, {transform_indices = @transform_8, window_bounds = array<i64: 1, 1, 32>}, {transform_indices = @transform_9, window_bounds = array<i64: 1, 1, 32>}, {transform_indices = @transform_10, window_bounds = array<i64: 1, 32, 32>}, {transform_indices = @transform_11, window_bounds = array<i64: 1, 1, 32>}, {transform_indices = @transform_12, window_bounds = array<i64: 1, 32, 64>}, {transform_indices = @transform_13, window_bounds = array<i64: 1, 1, 64>}, {transform_indices = @transform_14, window_bounds = array<i64: 1, 32, 32>}, {transform_indices = @transform_15, window_bounds = array<i64: 1, 1, 32>}, {transform_indices = @transform_16, window_bounds = array<i64: 1, 1, 32>}, {transform_indices = @transform_17, window_bounds = array<i64: 1, 1, 32>}, {transform_indices = @transform_18, window_bounds = array<i64: 1, 32, 64>}, {transform_indices = @transform_19, window_bounds = array<i64: 1, 1, 64>}, {transform_indices = @transform_20, window_bounds = array<i64: 1, 64, 32>}, {transform_indices = @transform_21, window_bounds = array<i64: 1, 1, 32>}, {pipeline_mode = #tpu.pipeline_mode<synchronous>, transform_indices = @transform_22, window_bounds = array<i64: 1, 32>}, {pipeline_mode = #tpu.pipeline_mode<synchronous>, transform_indices = @transform_23, window_bounds = array<i64: 1, 32>}, {transform_indices = @transform_24, window_bounds = array<i64: 1, 8, 32>}]} {
    %c0_i32 = arith.constant 0 : i32
    %0 = arith.cmpi eq, %arg1, %c0_i32 : i32
    %1 = arith.extui %0 : i1 to i32
    %c0_i32_0 = arith.constant 0 : i32
    %2 = arith.cmpi ne, %1, %c0_i32_0 : i32
    scf.if %2 {
      %c0_102 = arith.constant 0 : index
      %c0_103 = arith.constant 0 : index
      %c0_104 = arith.constant 0 : index
      %208 = vector.load %arg2[%c0_102, %c0_103, %c0_104] : memref<1x8x32xf32, #tpu.memory_space<vmem>>, vector<1x8x32xf32>
      %209 = vector.shape_cast %208 : vector<1x8x32xf32> to vector<8x32xf32>
      %c0_105 = arith.constant 0 : index
      %c0_106 = arith.constant 0 : index
      %c0_107 = arith.constant 0 : index
      %210 = vector.load %arg26[%c0_105, %c0_106, %c0_107] : memref<1x8x32xf32, #tpu.memory_space<vmem>>, vector<1x8x32xf32>
      %211 = vector.shape_cast %210 : vector<1x8x32xf32> to vector<8x32xf32>
      %212 = vector.shape_cast %209 : vector<8x32xf32> to vector<1x8x32xf32>
      tpu.vector_store %arg26[%c0_105, %c0_106, %c0_107], %212 {strides = array<i32>} : memref<1x8x32xf32, #tpu.memory_space<vmem>>, vector<1x8x32xf32>,
    } else {
    }
    %c0 = arith.constant 0 : index
    %c0_1 = arith.constant 0 : index
    %c0_2 = arith.constant 0 : index
    %3 = vector.load %arg26[%c0, %c0_1, %c0_2] : memref<1x8x32xf32, #tpu.memory_space<vmem>>, vector<1x8x32xf32>
    %4 = vector.shape_cast %3 : vector<1x8x32xf32> to vector<8x32xf32>
    %c0_3 = arith.constant 0 : index
    %c0_4 = arith.constant 0 : index
    %c0_5 = arith.constant 0 : index
    %5 = vector.load %arg4[%c0_3, %c0_4, %c0_5] : memref<1x1x32xf32, #tpu.memory_space<vmem>>, vector<1x1x32xf32>
    %6 = vector.shape_cast %5 : vector<1x1x32xf32> to vector<1x32xf32>
    %c0_6 = arith.constant 0 : index
    %c0_7 = arith.constant 0 : index
    %c0_8 = arith.constant 0 : index
    %7 = vector.load %arg5[%c0_6, %c0_7, %c0_8] : memref<1x1x32xf32, #tpu.memory_space<vmem>>, vector<1x1x32xf32>
    %8 = vector.shape_cast %7 : vector<1x1x32xf32> to vector<1x32xf32>
    %cst = arith.constant dense<0.000000e+00> : vector<8xf32>
    %9 = vector.multi_reduction <add>, %4, %cst [1] : vector<8x32xf32> to vector<8xf32>
    %10 = vector.shape_cast %9 : vector<8xf32> to vector<8x1xf32>
    %cst_9 = arith.constant 3.200000e+01 : f32
    %11 = vector.broadcast %cst_9 : f32 to vector<8x1xf32>
    %12 = arith.divf %10, %11 : vector<8x1xf32>
    %13 = vector.broadcast %12 : vector<8x1xf32> to vector<8x32xf32>
    %14 = arith.subf %4, %13 : vector<8x32xf32>
    %15 = arith.mulf %14, %14 : vector<8x32xf32>
    %cst_10 = arith.constant dense<0.000000e+00> : vector<8xf32>
    %16 = vector.multi_reduction <add>, %15, %cst_10 [1] : vector<8x32xf32> to vector<8xf32>
    %17 = vector.shape_cast %16 : vector<8xf32> to vector<8x1xf32>
    %cst_11 = arith.constant 3.200000e+01 : f32
    %18 = vector.broadcast %cst_11 : f32 to vector<8x1xf32>
    %19 = arith.divf %17, %18 : vector<8x1xf32>
    %20 = vector.broadcast %12 : vector<8x1xf32> to vector<8x32xf32>
    %21 = arith.subf %4, %20 : vector<8x32xf32>
    %cst_12 = arith.constant 9.99999974E-6 : f32
    %22 = vector.broadcast %cst_12 : f32 to vector<8x1xf32>
    %23 = arith.addf %19, %22 : vector<8x1xf32>
    %24 = math.rsqrt %23 : vector<8x1xf32>
    %25 = vector.broadcast %24 : vector<8x1xf32> to vector<8x32xf32>
    %26 = arith.mulf %21, %25 : vector<8x32xf32>
    %27 = vector.broadcast %6 : vector<1x32xf32> to vector<8x32xf32>
    %28 = arith.mulf %26, %27 : vector<8x32xf32>
    %29 = vector.broadcast %8 : vector<1x32xf32> to vector<8x32xf32>
    %30 = arith.addf %28, %29 : vector<8x32xf32>
    %31 = arith.truncf %30 : vector<8x32xf32> to vector<8x32xbf16>
    %c0_13 = arith.constant 0 : index
    %c0_14 = arith.constant 0 : index
    %c0_15 = arith.constant 0 : index
    %32 = vector.load %arg6[%c0_13, %c0_14, %c0_15] : memref<1x32x96xbf16, #tpu.memory_space<vmem>>, vector<1x32x96xbf16>
    %33 = vector.shape_cast %32 : vector<1x32x96xbf16> to vector<32x96xbf16>
    %cst_16 = arith.constant dense<0.000000e+00> : vector<8x96xf32>
    %34 = tpu.matmul %31, %33, %cst_16 {dimension_numbers = #tpu.dot_dimension_numbers<[1], [0], [0], [1], [0, 0, 1, 1], [], []>} : vector<8x32xbf16>, vector<32x96xbf16>, vector<8x96xf32> -> vector<8x96xf32>
    %c0_17 = arith.constant 0 : index
    %c0_18 = arith.constant 0 : index
    %c0_19 = arith.constant 0 : index
    %35 = vector.load %arg7[%c0_17, %c0_18, %c0_19] : memref<1x1x96xf32, #tpu.memory_space<vmem>>, vector<1x1x96xf32>
    %36 = vector.shape_cast %35 : vector<1x1x96xf32> to vector<1x96xf32>
    %37 = vector.broadcast %36 : vector<1x96xf32> to vector<8x96xf32>
    %38 = arith.addf %34, %37 : vector<8x96xf32>
    %39 = tpu.iota {dimensions = array<i32: 0>} : vector<8x8xi32>
    %40 = tpu.iota {dimensions = array<i32: 1>} : vector<8x8xi32>
    %41 = arith.cmpi sle, %40, %39 : vector<8x8xi32>
    %cst_20 = arith.constant 0.000000e+00 : f32
    %cst_21 = arith.constant -1.000000e+30 : f32
    %42 = vector.broadcast %cst_20 : f32 to vector<8x8xf32>
    %43 = vector.broadcast %cst_21 : f32 to vector<8x8xf32>
    %44 = arith.select %41, %42, %43 : vector<8x8xi1>, vector<8x8xf32>
    %45 = vector.extract_strided_slice %38 {offsets = [0, 0], sizes = [8, 32], strides = [1, 1]} : vector<8x96xf32> to vector<8x32xf32>
    %46 = vector.extract_strided_slice %38 {offsets = [0, 32], sizes = [8, 32], strides = [1, 1]} : vector<8x96xf32> to vector<8x32xf32>
    %47 = vector.extract_strided_slice %38 {offsets = [0, 64], sizes = [8, 32], strides = [1, 1]} : vector<8x96xf32> to vector<8x32xf32>
    %48 = vector.shape_cast %45 : vector<8x32xf32> to vector<8x4x8xf32>
    %49 = arith.truncf %48 : vector<8x4x8xf32> to vector<8x4x8xbf16>
    %50 = vector.shape_cast %46 : vector<8x32xf32> to vector<8x4x8xf32>
    %51 = arith.truncf %50 : vector<8x4x8xf32> to vector<8x4x8xbf16>
    %52 = vector.shape_cast %47 : vector<8x32xf32> to vector<8x4x8xf32>
    %53 = arith.truncf %52 : vector<8x4x8xf32> to vector<8x4x8xbf16>
    "tpu.trace_start"() <{level = 10 : i32, message = "qhd,khd->hqk"}> : () -> ()
    %cst_22 = arith.constant dense<0.000000e+00> : vector<4x8x8xf32>
    %54 = tpu.matmul %49, %51, %cst_22 {dimension_numbers = #tpu.dot_dimension_numbers<[2], [2], [0], [0], [0, 1, 0, 0, 1, 0], [1], [1]>} : vector<8x4x8xbf16>, vector<8x4x8xbf16>, vector<4x8x8xf32> -> vector<4x8x8xf32>
    "tpu.trace_stop"() : () -> ()
    %55 = vector.shape_cast %44 : vector<8x8xf32> to vector<1x8x8xf32>
    %56 = vector.broadcast %55 : vector<1x8x8xf32> to vector<4x8x8xf32>
    %57 = arith.addf %54, %56 : vector<4x8x8xf32>
    %cst_23 = arith.constant dense<0xFF800000> : vector<4x8xf32>
    %58 = vector.multi_reduction <maximumf>, %57, %cst_23 [2] : vector<4x8x8xf32> to vector<4x8xf32>
    %59 = vector.shape_cast %58 : vector<4x8xf32> to vector<4x8x1xf32>
    %60 = vector.broadcast %59 : vector<4x8x1xf32> to vector<4x8x8xf32>
    %61 = arith.subf %57, %60 : vector<4x8x8xf32>
    %62 = math.exp %61 : vector<4x8x8xf32>
    %cst_24 = arith.constant dense<0.000000e+00> : vector<4x8xf32>
    %63 = vector.multi_reduction <add>, %62, %cst_24 [2] : vector<4x8x8xf32> to vector<4x8xf32>
    %64 = vector.shape_cast %63 : vector<4x8xf32> to vector<4x8x1xf32>
    %65 = tpu.reciprocal %64 {approx = true} : vector<4x8x1xf32> -> vector<4x8x1xf32>
    %66 = vector.broadcast %65 : vector<4x8x1xf32> to vector<4x8x8xf32>
    %67 = arith.mulf %62, %66 : vector<4x8x8xf32>
    %68 = arith.truncf %67 : vector<4x8x8xf32> to vector<4x8x8xbf16>
    "tpu.trace_start"() <{level = 10 : i32, message = "hqk,khd->qhd"}> : () -> ()
    %cst_25 = arith.constant dense<0.000000e+00> : vector<4x8x8xf32>
    %69 = tpu.matmul %53, %68, %cst_25 {dimension_numbers = #tpu.dot_dimension_numbers<[0], [2], [2], [1], [0, 1, 0, 2, 1, 1], [1], [0]>} : vector<8x4x8xbf16>, vector<4x8x8xbf16>, vector<4x8x8xf32> -> vector<4x8x8xf32>
    %70 = tpu.transpose %69, [2, 0, 1] : vector<4x8x8xf32> -> vector<8x4x8xf32>
    "tpu.trace_stop"() : () -> ()
    %71 = vector.shape_cast %70 : vector<8x4x8xf32> to vector<8x32xf32>
    %72 = arith.truncf %71 : vector<8x32xf32> to vector<8x32xbf16>
    %c0_26 = arith.constant 0 : index
    %c0_27 = arith.constant 0 : index
    %c0_28 = arith.constant 0 : index
    %73 = vector.load %arg8[%c0_26, %c0_27, %c0_28] : memref<1x32x32xbf16, #tpu.memory_space<vmem>>, vector<1x32x32xbf16>
    %74 = vector.shape_cast %73 : vector<1x32x32xbf16> to vector<32x32xbf16>
    %cst_29 = arith.constant dense<0.000000e+00> : vector<8x32xf32>
    %75 = tpu.matmul %72, %74, %cst_29 {dimension_numbers = #tpu.dot_dimension_numbers<[1], [0], [0], [1], [0, 0, 1, 1], [], []>} : vector<8x32xbf16>, vector<32x32xbf16>, vector<8x32xf32> -> vector<8x32xf32>
    %c0_30 = arith.constant 0 : index
    %c0_31 = arith.constant 0 : index
    %c0_32 = arith.constant 0 : index
    %76 = vector.load %arg9[%c0_30, %c0_31, %c0_32] : memref<1x1x32xf32, #tpu.memory_space<vmem>>, vector<1x1x32xf32>
    %77 = vector.shape_cast %76 : vector<1x1x32xf32> to vector<1x32xf32>
    %78 = vector.broadcast %77 : vector<1x32xf32> to vector<8x32xf32>
    %79 = arith.addf %75, %78 : vector<8x32xf32>
    %80 = arith.addf %4, %79 : vector<8x32xf32>
    %c0_33 = arith.constant 0 : index
    %c0_34 = arith.constant 0 : index
    %c0_35 = arith.constant 0 : index
    %81 = vector.load %arg10[%c0_33, %c0_34, %c0_35] : memref<1x1x32xf32, #tpu.memory_space<vmem>>, vector<1x1x32xf32>
    %82 = vector.shape_cast %81 : vector<1x1x32xf32> to vector<1x32xf32>
    %c0_36 = arith.constant 0 : index
    %c0_37 = arith.constant 0 : index
    %c0_38 = arith.constant 0 : index
    %83 = vector.load %arg11[%c0_36, %c0_37, %c0_38] : memref<1x1x32xf32, #tpu.memory_space<vmem>>, vector<1x1x32xf32>
    %84 = vector.shape_cast %83 : vector<1x1x32xf32> to vector<1x32xf32>
    %cst_39 = arith.constant dense<0.000000e+00> : vector<8xf32>
    %85 = vector.multi_reduction <add>, %80, %cst_39 [1] : vector<8x32xf32> to vector<8xf32>
    %86 = vector.shape_cast %85 : vector<8xf32> to vector<8x1xf32>
    %cst_40 = arith.constant 3.200000e+01 : f32
    %87 = vector.broadcast %cst_40 : f32 to vector<8x1xf32>
    %88 = arith.divf %86, %87 : vector<8x1xf32>
    %89 = vector.broadcast %88 : vector<8x1xf32> to vector<8x32xf32>
    %90 = arith.subf %80, %89 : vector<8x32xf32>
    %91 = arith.mulf %90, %90 : vector<8x32xf32>
    %cst_41 = arith.constant dense<0.000000e+00> : vector<8xf32>
    %92 = vector.multi_reduction <add>, %91, %cst_41 [1] : vector<8x32xf32> to vector<8xf32>
    %93 = vector.shape_cast %92 : vector<8xf32> to vector<8x1xf32>
    %cst_42 = arith.constant 3.200000e+01 : f32
    %94 = vector.broadcast %cst_42 : f32 to vector<8x1xf32>
    %95 = arith.divf %93, %94 : vector<8x1xf32>
    %96 = vector.broadcast %88 : vector<8x1xf32> to vector<8x32xf32>
    %97 = arith.subf %80, %96 : vector<8x32xf32>
    %cst_43 = arith.constant 9.99999974E-6 : f32
    %98 = vector.broadcast %cst_43 : f32 to vector<8x1xf32>
    %99 = arith.addf %95, %98 : vector<8x1xf32>
    %100 = math.rsqrt %99 : vector<8x1xf32>
    %101 = vector.broadcast %100 : vector<8x1xf32> to vector<8x32xf32>
    %102 = arith.mulf %97, %101 : vector<8x32xf32>
    %103 = vector.broadcast %82 : vector<1x32xf32> to vector<8x32xf32>
    %104 = arith.mulf %102, %103 : vector<8x32xf32>
    %105 = vector.broadcast %84 : vector<1x32xf32> to vector<8x32xf32>
    %106 = arith.addf %104, %105 : vector<8x32xf32>
    %c0_44 = arith.constant 0 : index
    %c0_45 = arith.constant 0 : index
    %c0_46 = arith.constant 0 : index
    %107 = vector.load %arg3[%c0_44, %c0_45, %c0_46] : memref<1x8x32xf32, #tpu.memory_space<vmem>>, vector<1x8x32xf32>
    %108 = vector.shape_cast %107 : vector<1x8x32xf32> to vector<8x32xf32>
    %109 = arith.truncf %106 : vector<8x32xf32> to vector<8x32xbf16>
    %c0_47 = arith.constant 0 : index
    %c0_48 = arith.constant 0 : index
    %c0_49 = arith.constant 0 : index
    %110 = vector.load %arg12[%c0_47, %c0_48, %c0_49] : memref<1x32x32xbf16, #tpu.memory_space<vmem>>, vector<1x32x32xbf16>
    %111 = vector.shape_cast %110 : vector<1x32x32xbf16> to vector<32x32xbf16>
    %cst_50 = arith.constant dense<0.000000e+00> : vector<8x32xf32>
    %112 = tpu.matmul %109, %111, %cst_50 {dimension_numbers = #tpu.dot_dimension_numbers<[1], [0], [0], [1], [0, 0, 1, 1], [], []>} : vector<8x32xbf16>, vector<32x32xbf16>, vector<8x32xf32> -> vector<8x32xf32>
    %c0_51 = arith.constant 0 : index
    %c0_52 = arith.constant 0 : index
    %c0_53 = arith.constant 0 : index
    %113 = vector.load %arg13[%c0_51, %c0_52, %c0_53] : memref<1x1x32xf32, #tpu.memory_space<vmem>>, vector<1x1x32xf32>
    %114 = vector.shape_cast %113 : vector<1x1x32xf32> to vector<1x32xf32>
    %115 = vector.broadcast %114 : vector<1x32xf32> to vector<8x32xf32>
    %116 = arith.addf %112, %115 : vector<8x32xf32>
    %117 = arith.truncf %108 : vector<8x32xf32> to vector<8x32xbf16>
    %c0_54 = arith.constant 0 : index
    %c0_55 = arith.constant 0 : index
    %c0_56 = arith.constant 0 : index
    %118 = vector.load %arg14[%c0_54, %c0_55, %c0_56] : memref<1x32x64xbf16, #tpu.memory_space<vmem>>, vector<1x32x64xbf16>
    %119 = vector.shape_cast %118 : vector<1x32x64xbf16> to vector<32x64xbf16>
    %cst_57 = arith.constant dense<0.000000e+00> : vector<8x64xf32>
    %120 = tpu.matmul %117, %119, %cst_57 {dimension_numbers = #tpu.dot_dimension_numbers<[1], [0], [0], [1], [0, 0, 1, 1], [], []>} : vector<8x32xbf16>, vector<32x64xbf16>, vector<8x64xf32> -> vector<8x64xf32>
    %c0_58 = arith.constant 0 : index
    %c0_59 = arith.constant 0 : index
    %c0_60 = arith.constant 0 : index
    %121 = vector.load %arg15[%c0_58, %c0_59, %c0_60] : memref<1x1x64xf32, #tpu.memory_space<vmem>>, vector<1x1x64xf32>
    %122 = vector.shape_cast %121 : vector<1x1x64xf32> to vector<1x64xf32>
    %123 = vector.broadcast %122 : vector<1x64xf32> to vector<8x64xf32>
    %124 = arith.addf %120, %123 : vector<8x64xf32>
    %125 = vector.extract_strided_slice %124 {offsets = [0, 0], sizes = [8, 32], strides = [1, 1]} : vector<8x64xf32> to vector<8x32xf32>
    %126 = vector.extract_strided_slice %124 {offsets = [0, 32], sizes = [8, 32], strides = [1, 1]} : vector<8x64xf32> to vector<8x32xf32>
    %127 = vector.shape_cast %116 : vector<8x32xf32> to vector<8x4x8xf32>
    %128 = arith.truncf %127 : vector<8x4x8xf32> to vector<8x4x8xbf16>
    %129 = vector.shape_cast %125 : vector<8x32xf32> to vector<8x4x8xf32>
    %130 = arith.truncf %129 : vector<8x4x8xf32> to vector<8x4x8xbf16>
    %131 = vector.shape_cast %126 : vector<8x32xf32> to vector<8x4x8xf32>
    %132 = arith.truncf %131 : vector<8x4x8xf32> to vector<8x4x8xbf16>
    "tpu.trace_start"() <{level = 10 : i32, message = "qhd,khd->hqk"}> : () -> ()
    %cst_61 = arith.constant dense<0.000000e+00> : vector<4x8x8xf32>
    %133 = tpu.matmul %128, %130, %cst_61 {dimension_numbers = #tpu.dot_dimension_numbers<[2], [2], [0], [0], [0, 1, 0, 0, 1, 0], [1], [1]>} : vector<8x4x8xbf16>, vector<8x4x8xbf16>, vector<4x8x8xf32> -> vector<4x8x8xf32>
    "tpu.trace_stop"() : () -> ()
    %cst_62 = arith.constant dense<0xFF800000> : vector<4x8xf32>
    %134 = vector.multi_reduction <maximumf>, %133, %cst_62 [2] : vector<4x8x8xf32> to vector<4x8xf32>
    %135 = vector.shape_cast %134 : vector<4x8xf32> to vector<4x8x1xf32>
    %136 = vector.broadcast %135 : vector<4x8x1xf32> to vector<4x8x8xf32>
    %137 = arith.subf %133, %136 : vector<4x8x8xf32>
    %138 = math.exp %137 : vector<4x8x8xf32>
    %cst_63 = arith.constant dense<0.000000e+00> : vector<4x8xf32>
    %139 = vector.multi_reduction <add>, %138, %cst_63 [2] : vector<4x8x8xf32> to vector<4x8xf32>
    %140 = vector.shape_cast %139 : vector<4x8xf32> to vector<4x8x1xf32>
    %141 = tpu.reciprocal %140 {approx = true} : vector<4x8x1xf32> -> vector<4x8x1xf32>
    %142 = vector.broadcast %141 : vector<4x8x1xf32> to vector<4x8x8xf32>
    %143 = arith.mulf %138, %142 : vector<4x8x8xf32>
    %144 = arith.truncf %143 : vector<4x8x8xf32> to vector<4x8x8xbf16>
    "tpu.trace_start"() <{level = 10 : i32, message = "hqk,khd->qhd"}> : () -> ()
    %cst_64 = arith.constant dense<0.000000e+00> : vector<4x8x8xf32>
    %145 = tpu.matmul %132, %144, %cst_64 {dimension_numbers = #tpu.dot_dimension_numbers<[0], [2], [2], [1], [0, 1, 0, 2, 1, 1], [1], [0]>} : vector<8x4x8xbf16>, vector<4x8x8xbf16>, vector<4x8x8xf32> -> vector<4x8x8xf32>
    %146 = tpu.transpose %145, [2, 0, 1] : vector<4x8x8xf32> -> vector<8x4x8xf32>
    "tpu.trace_stop"() : () -> ()
    %147 = vector.shape_cast %146 : vector<8x4x8xf32> to vector<8x32xf32>
    %148 = arith.truncf %147 : vector<8x32xf32> to vector<8x32xbf16>
    %c0_65 = arith.constant 0 : index
    %c0_66 = arith.constant 0 : index
    %c0_67 = arith.constant 0 : index
    %149 = vector.load %arg16[%c0_65, %c0_66, %c0_67] : memref<1x32x32xbf16, #tpu.memory_space<vmem>>, vector<1x32x32xbf16>
    %150 = vector.shape_cast %149 : vector<1x32x32xbf16> to vector<32x32xbf16>
    %cst_68 = arith.constant dense<0.000000e+00> : vector<8x32xf32>
    %151 = tpu.matmul %148, %150, %cst_68 {dimension_numbers = #tpu.dot_dimension_numbers<[1], [0], [0], [1], [0, 0, 1, 1], [], []>} : vector<8x32xbf16>, vector<32x32xbf16>, vector<8x32xf32> -> vector<8x32xf32>
    %c0_69 = arith.constant 0 : index
    %c0_70 = arith.constant 0 : index
    %c0_71 = arith.constant 0 : index
    %152 = vector.load %arg17[%c0_69, %c0_70, %c0_71] : memref<1x1x32xf32, #tpu.memory_space<vmem>>, vector<1x1x32xf32>
    %153 = vector.shape_cast %152 : vector<1x1x32xf32> to vector<1x32xf32>
    %154 = vector.broadcast %153 : vector<1x32xf32> to vector<8x32xf32>
    %155 = arith.addf %151, %154 : vector<8x32xf32>
    %156 = arith.addf %80, %155 : vector<8x32xf32>
    %c0_72 = arith.constant 0 : index
    %c0_73 = arith.constant 0 : index
    %c0_74 = arith.constant 0 : index
    %157 = vector.load %arg18[%c0_72, %c0_73, %c0_74] : memref<1x1x32xf32, #tpu.memory_space<vmem>>, vector<1x1x32xf32>
    %158 = vector.shape_cast %157 : vector<1x1x32xf32> to vector<1x32xf32>
    %c0_75 = arith.constant 0 : index
    %c0_76 = arith.constant 0 : index
    %c0_77 = arith.constant 0 : index
    %159 = vector.load %arg19[%c0_75, %c0_76, %c0_77] : memref<1x1x32xf32, #tpu.memory_space<vmem>>, vector<1x1x32xf32>
    %160 = vector.shape_cast %159 : vector<1x1x32xf32> to vector<1x32xf32>
    %cst_78 = arith.constant dense<0.000000e+00> : vector<8xf32>
    %161 = vector.multi_reduction <add>, %156, %cst_78 [1] : vector<8x32xf32> to vector<8xf32>
    %162 = vector.shape_cast %161 : vector<8xf32> to vector<8x1xf32>
    %cst_79 = arith.constant 3.200000e+01 : f32
    %163 = vector.broadcast %cst_79 : f32 to vector<8x1xf32>
    %164 = arith.divf %162, %163 : vector<8x1xf32>
    %165 = vector.broadcast %164 : vector<8x1xf32> to vector<8x32xf32>
    %166 = arith.subf %156, %165 : vector<8x32xf32>
    %167 = arith.mulf %166, %166 : vector<8x32xf32>
    %cst_80 = arith.constant dense<0.000000e+00> : vector<8xf32>
    %168 = vector.multi_reduction <add>, %167, %cst_80 [1] : vector<8x32xf32> to vector<8xf32>
    %169 = vector.shape_cast %168 : vector<8xf32> to vector<8x1xf32>
    %cst_81 = arith.constant 3.200000e+01 : f32
    %170 = vector.broadcast %cst_81 : f32 to vector<8x1xf32>
    %171 = arith.divf %169, %170 : vector<8x1xf32>
    %172 = vector.broadcast %164 : vector<8x1xf32> to vector<8x32xf32>
    %173 = arith.subf %156, %172 : vector<8x32xf32>
    %cst_82 = arith.constant 9.99999974E-6 : f32
    %174 = vector.broadcast %cst_82 : f32 to vector<8x1xf32>
    %175 = arith.addf %171, %174 : vector<8x1xf32>
    %176 = math.rsqrt %175 : vector<8x1xf32>
    %177 = vector.broadcast %176 : vector<8x1xf32> to vector<8x32xf32>
    %178 = arith.mulf %173, %177 : vector<8x32xf32>
    %179 = vector.broadcast %158 : vector<1x32xf32> to vector<8x32xf32>
    %180 = arith.mulf %178, %179 : vector<8x32xf32>
    %181 = vector.broadcast %160 : vector<1x32xf32> to vector<8x32xf32>
    %182 = arith.addf %180, %181 : vector<8x32xf32>
    %183 = arith.truncf %182 : vector<8x32xf32> to vector<8x32xbf16>
    %c0_83 = arith.constant 0 : index
    %c0_84 = arith.constant 0 : index
    %c0_85 = arith.constant 0 : index
    %184 = vector.load %arg20[%c0_83, %c0_84, %c0_85] : memref<1x32x64xbf16, #tpu.memory_space<vmem>>, vector<1x32x64xbf16>
    %185 = vector.shape_cast %184 : vector<1x32x64xbf16> to vector<32x64xbf16>
    %cst_86 = arith.constant dense<0.000000e+00> : vector<8x64xf32>
    %186 = tpu.matmul %183, %185, %cst_86 {dimension_numbers = #tpu.dot_dimension_numbers<[1], [0], [0], [1], [0, 0, 1, 1], [], []>} : vector<8x32xbf16>, vector<32x64xbf16>, vector<8x64xf32> -> vector<8x64xf32>
    %c0_87 = arith.constant 0 : index
    %c0_88 = arith.constant 0 : index
    %c0_89 = arith.constant 0 : index
    %187 = vector.load %arg21[%c0_87, %c0_88, %c0_89] : memref<1x1x64xf32, #tpu.memory_space<vmem>>, vector<1x1x64xf32>
    %188 = vector.shape_cast %187 : vector<1x1x64xf32> to vector<1x64xf32>
    %189 = vector.broadcast %188 : vector<1x64xf32> to vector<8x64xf32>
    %190 = arith.addf %186, %189 : vector<8x64xf32>
    %cst_90 = arith.constant 0.000000e+00 : f32
    %191 = vector.broadcast %cst_90 : f32 to vector<8x64xf32>
    %192 = arith.maximumf %190, %191 : vector<8x64xf32>
    %193 = arith.truncf %192 : vector<8x64xf32> to vector<8x64xbf16>
    %c0_91 = arith.constant 0 : index
    %c0_92 = arith.constant 0 : index
    %c0_93 = arith.constant 0 : index
    %194 = vector.load %arg22[%c0_91, %c0_92, %c0_93] : memref<1x64x32xbf16, #tpu.memory_space<vmem>>, vector<1x64x32xbf16>
    %195 = vector.shape_cast %194 : vector<1x64x32xbf16> to vector<64x32xbf16>
    %cst_94 = arith.constant dense<0.000000e+00> : vector<8x32xf32>
    %196 = tpu.matmul %193, %195, %cst_94 {dimension_numbers = #tpu.dot_dimension_numbers<[1], [0], [0], [1], [0, 0, 1, 1], [], []>} : vector<8x64xbf16>, vector<64x32xbf16>, vector<8x32xf32> -> vector<8x32xf32>
    %c0_95 = arith.constant 0 : index
    %c0_96 = arith.constant 0 : index
    %c0_97 = arith.constant 0 : index
    %197 = vector.load %arg23[%c0_95, %c0_96, %c0_97] : memref<1x1x32xf32, #tpu.memory_space<vmem>>, vector<1x1x32xf32>
    %198 = vector.shape_cast %197 : vector<1x1x32xf32> to vector<1x32xf32>
    %199 = vector.broadcast %198 : vector<1x32xf32> to vector<8x32xf32>
    %200 = arith.addf %196, %199 : vector<8x32xf32>
    %201 = arith.addf %156, %200 : vector<8x32xf32>
    %c0_98 = arith.constant 0 : index
    %c0_99 = arith.constant 0 : index
    %c0_100 = arith.constant 0 : index
    %202 = vector.load %arg26[%c0_98, %c0_99, %c0_100] : memref<1x8x32xf32, #tpu.memory_space<vmem>>, vector<1x8x32xf32>
    %203 = vector.shape_cast %202 : vector<1x8x32xf32> to vector<8x32xf32>
    %204 = vector.shape_cast %201 : vector<8x32xf32> to vector<1x8x32xf32>
    tpu.vector_store %arg26[%c0_98, %c0_99, %c0_100], %204 {strides = array<i32>} : memref<1x8x32xf32, #tpu.memory_space<vmem>>, vector<1x8x32xf32>,
    %c1_i32 = arith.constant 1 : i32
    %205 = arith.cmpi eq, %arg1, %c1_i32 : i32
    %206 = arith.extui %205 : i1 to i32
    %c0_i32_101 = arith.constant 0 : i32
    %207 = arith.cmpi ne, %206, %c0_i32_101 : i32
    scf.if %207 {
      %c0_102 = arith.constant 0 : index
      %c0_103 = arith.constant 0 : index
      %208 = vector.load %arg24[%c0_102, %c0_103] : memref<1x32xf32, #tpu.memory_space<vmem>>, vector<1x32xf32>
      %c0_104 = arith.constant 0 : index
      %c0_105 = arith.constant 0 : index
      %209 = vector.load %arg25[%c0_104, %c0_105] : memref<1x32xf32, #tpu.memory_space<vmem>>, vector<1x32xf32>
      %cst_106 = arith.constant dense<0.000000e+00> : vector<8xf32>
      %210 = vector.multi_reduction <add>, %201, %cst_106 [1] : vector<8x32xf32> to vector<8xf32>
      %211 = vector.shape_cast %210 : vector<8xf32> to vector<8x1xf32>
      %cst_107 = arith.constant 3.200000e+01 : f32
      %212 = vector.broadcast %cst_107 : f32 to vector<8x1xf32>
      %213 = arith.divf %211, %212 : vector<8x1xf32>
      %214 = vector.broadcast %213 : vector<8x1xf32> to vector<8x32xf32>
      %215 = arith.subf %201, %214 : vector<8x32xf32>
      %216 = arith.mulf %215, %215 : vector<8x32xf32>
      %cst_108 = arith.constant dense<0.000000e+00> : vector<8xf32>
      %217 = vector.multi_reduction <add>, %216, %cst_108 [1] : vector<8x32xf32> to vector<8xf32>
      %218 = vector.shape_cast %217 : vector<8xf32> to vector<8x1xf32>
      %cst_109 = arith.constant 3.200000e+01 : f32
      %219 = vector.broadcast %cst_109 : f32 to vector<8x1xf32>
      %220 = arith.divf %218, %219 : vector<8x1xf32>
      %221 = vector.broadcast %213 : vector<8x1xf32> to vector<8x32xf32>
      %222 = arith.subf %201, %221 : vector<8x32xf32>
      %cst_110 = arith.constant 9.99999974E-6 : f32
      %223 = vector.broadcast %cst_110 : f32 to vector<8x1xf32>
      %224 = arith.addf %220, %223 : vector<8x1xf32>
      %225 = math.rsqrt %224 : vector<8x1xf32>
      %226 = vector.broadcast %225 : vector<8x1xf32> to vector<8x32xf32>
      %227 = arith.mulf %222, %226 : vector<8x32xf32>
      %228 = vector.broadcast %208 : vector<1x32xf32> to vector<8x32xf32>
      %229 = arith.mulf %227, %228 : vector<8x32xf32>
      %230 = vector.broadcast %209 : vector<1x32xf32> to vector<8x32xf32>
      %231 = arith.addf %229, %230 : vector<8x32xf32>
      %c0_111 = arith.constant 0 : index
      %c0_112 = arith.constant 0 : index
      %c0_113 = arith.constant 0 : index
      %232 = vector.load %arg26[%c0_111, %c0_112, %c0_113] : memref<1x8x32xf32, #tpu.memory_space<vmem>>, vector<1x8x32xf32>
      %233 = vector.shape_cast %232 : vector<1x8x32xf32> to vector<8x32xf32>
      %234 = vector.shape_cast %231 : vector<8x32xf32> to vector<1x8x32xf32>
      tpu.vector_store %arg26[%c0_111, %c0_112, %c0_113], %234 {strides = array<i32>} : memref<1x8x32xf32, #tpu.memory_space<vmem>>, vector<1x8x32xf32>,
    } else {
    }
    return
  }
  func.func @transform_0(%arg0: i32, %arg1: i32) -> (i32, i32, i32) {
    %c0_i32 = arith.constant 0 : i32
    %c0_i32_0 = arith.constant 0 : i32
    %c0_i32_1 = arith.constant 0 : i32
    return %arg0, %c0_i32, %c0_i32_0 : i32, i32, i32
  }
  func.func @transform_1(%arg0: i32, %arg1: i32) -> (i32, i32, i32) {
    %c0_i32 = arith.constant 0 : i32
    %c0_i32_0 = arith.constant 0 : i32
    %c0_i32_1 = arith.constant 0 : i32
    return %arg0, %c0_i32, %c0_i32_0 : i32, i32, i32
  }
  func.func @transform_2(%arg0: i32, %arg1: i32) -> (i32, i32, i32) {
    %c0_i32 = arith.constant 0 : i32
    %c0_i32_0 = arith.constant 0 : i32
    %c0_i32_1 = arith.constant 0 : i32
    return %arg1, %c0_i32, %c0_i32_0 : i32, i32, i32
  }
  func.func @transform_3(%arg0: i32, %arg1: i32) -> (i32, i32, i32) {
    %c0_i32 = arith.constant 0 : i32
    %c0_i32_0 = arith.constant 0 : i32
    %c0_i32_1 = arith.constant 0 : i32
    return %arg1, %c0_i32, %c0_i32_0 : i32, i32, i32
  }
  func.func @transform_4(%arg0: i32, %arg1: i32) -> (i32, i32, i32) {
    %c0_i32 = arith.constant 0 : i32
    %c0_i32_0 = arith.constant 0 : i32
    %c0_i32_1 = arith.constant 0 : i32
    return %arg1, %c0_i32, %c0_i32_0 : i32, i32, i32
  }
  func.func @transform_5(%arg0: i32, %arg1: i32) -> (i32, i32, i32) {
    %c0_i32 = arith.constant 0 : i32
    %c0_i32_0 = arith.constant 0 : i32
    %c0_i32_1 = arith.constant 0 : i32
    return %arg1, %c0_i32, %c0_i32_0 : i32, i32, i32
  }
  func.func @transform_6(%arg0: i32, %arg1: i32) -> (i32, i32, i32) {
    %c0_i32 = arith.constant 0 : i32
    %c0_i32_0 = arith.constant 0 : i32
    %c0_i32_1 = arith.constant 0 : i32
    return %arg1, %c0_i32, %c0_i32_0 : i32, i32, i32
  }
  func.func @transform_7(%arg0: i32, %arg1: i32) -> (i32, i32, i32) {
    %c0_i32 = arith.constant 0 : i32
    %c0_i32_0 = arith.constant 0 : i32
    %c0_i32_1 = arith.constant 0 : i32
    return %arg1, %c0_i32, %c0_i32_0 : i32, i32, i32
  }
  func.func @transform_8(%arg0: i32, %arg1: i32) -> (i32, i32, i32) {
    %c0_i32 = arith.constant 0 : i32
    %c0_i32_0 = arith.constant 0 : i32
    %c0_i32_1 = arith.constant 0 : i32
    return %arg1, %c0_i32, %c0_i32_0 : i32, i32, i32
  }
  func.func @transform_9(%arg0: i32, %arg1: i32) -> (i32, i32, i32) {
    %c0_i32 = arith.constant 0 : i32
    %c0_i32_0 = arith.constant 0 : i32
    %c0_i32_1 = arith.constant 0 : i32
    return %arg1, %c0_i32, %c0_i32_0 : i32, i32, i32
  }
  func.func @transform_10(%arg0: i32, %arg1: i32) -> (i32, i32, i32) {
    %c0_i32 = arith.constant 0 : i32
    %c0_i32_0 = arith.constant 0 : i32
    %c0_i32_1 = arith.constant 0 : i32
    return %arg1, %c0_i32, %c0_i32_0 : i32, i32, i32
  }
  func.func @transform_11(%arg0: i32, %arg1: i32) -> (i32, i32, i32) {
    %c0_i32 = arith.constant 0 : i32
    %c0_i32_0 = arith.constant 0 : i32
    %c0_i32_1 = arith.constant 0 : i32
    return %arg1, %c0_i32, %c0_i32_0 : i32, i32, i32
  }
  func.func @transform_12(%arg0: i32, %arg1: i32) -> (i32, i32, i32) {
    %c0_i32 = arith.constant 0 : i32
    %c0_i32_0 = arith.constant 0 : i32
    %c0_i32_1 = arith.constant 0 : i32
    return %arg1, %c0_i32, %c0_i32_0 : i32, i32, i32
  }
  func.func @transform_13(%arg0: i32, %arg1: i32) -> (i32, i32, i32) {
    %c0_i32 = arith.constant 0 : i32
    %c0_i32_0 = arith.constant 0 : i32
    %c0_i32_1 = arith.constant 0 : i32
    return %arg1, %c0_i32, %c0_i32_0 : i32, i32, i32
  }
  func.func @transform_14(%arg0: i32, %arg1: i32) -> (i32, i32, i32) {
    %c0_i32 = arith.constant 0 : i32
    %c0_i32_0 = arith.constant 0 : i32
    %c0_i32_1 = arith.constant 0 : i32
    return %arg1, %c0_i32, %c0_i32_0 : i32, i32, i32
  }
  func.func @transform_15(%arg0: i32, %arg1: i32) -> (i32, i32, i32) {
    %c0_i32 = arith.constant 0 : i32
    %c0_i32_0 = arith.constant 0 : i32
    %c0_i32_1 = arith.constant 0 : i32
    return %arg1, %c0_i32, %c0_i32_0 : i32, i32, i32
  }
  func.func @transform_16(%arg0: i32, %arg1: i32) -> (i32, i32, i32) {
    %c0_i32 = arith.constant 0 : i32
    %c0_i32_0 = arith.constant 0 : i32
    %c0_i32_1 = arith.constant 0 : i32
    return %arg1, %c0_i32, %c0_i32_0 : i32, i32, i32
  }
  func.func @transform_17(%arg0: i32, %arg1: i32) -> (i32, i32, i32) {
    %c0_i32 = arith.constant 0 : i32
    %c0_i32_0 = arith.constant 0 : i32
    %c0_i32_1 = arith.constant 0 : i32
    return %arg1, %c0_i32, %c0_i32_0 : i32, i32, i32
  }
  func.func @transform_18(%arg0: i32, %arg1: i32) -> (i32, i32, i32) {
    %c0_i32 = arith.constant 0 : i32
    %c0_i32_0 = arith.constant 0 : i32
    %c0_i32_1 = arith.constant 0 : i32
    return %arg1, %c0_i32, %c0_i32_0 : i32, i32, i32
  }
  func.func @transform_19(%arg0: i32, %arg1: i32) -> (i32, i32, i32) {
    %c0_i32 = arith.constant 0 : i32
    %c0_i32_0 = arith.constant 0 : i32
    %c0_i32_1 = arith.constant 0 : i32
    return %arg1, %c0_i32, %c0_i32_0 : i32, i32, i32
  }
  func.func @transform_20(%arg0: i32, %arg1: i32) -> (i32, i32, i32) {
    %c0_i32 = arith.constant 0 : i32
    %c0_i32_0 = arith.constant 0 : i32
    %c0_i32_1 = arith.constant 0 : i32
    return %arg1, %c0_i32, %c0_i32_0 : i32, i32, i32
  }
  func.func @transform_21(%arg0: i32, %arg1: i32) -> (i32, i32, i32) {
    %c0_i32 = arith.constant 0 : i32
    %c0_i32_0 = arith.constant 0 : i32
    %c0_i32_1 = arith.constant 0 : i32
    return %arg1, %c0_i32, %c0_i32_0 : i32, i32, i32
  }
  func.func @transform_22(%arg0: i32, %arg1: i32) -> (i32, i32) {
    %c0_i32 = arith.constant 0 : i32
    %c0_i32_0 = arith.constant 0 : i32
    %c0_i32_1 = arith.constant 0 : i32
    return %c0_i32, %c0_i32_0 : i32, i32
  }
  func.func @transform_23(%arg0: i32, %arg1: i32) -> (i32, i32) {
    %c0_i32 = arith.constant 0 : i32
    %c0_i32_0 = arith.constant 0 : i32
    %c0_i32_1 = arith.constant 0 : i32
    return %c0_i32, %c0_i32_0 : i32, i32
  }
  func.func @transform_24(%arg0: i32, %arg1: i32) -> (i32, i32, i32) {
    %c0_i32 = arith.constant 0 : i32
    %c0_i32_0 = arith.constant 0 : i32
    %c0_i32_1 = arith.constant 0 : i32
    return %arg0, %c0_i32, %c0_i32_0 : i32, i32, i32
  }
}

</mosaic_0001>

<bundles_post_ra>
// kernel: tpu_custom_call.1
= control target key start
LH: loop header
LB: loop body
LE: loop exit
PB: predicated region body
PF: predicated region fallthrough
CT: control target
= control target key end

     0   :  { %s7311_s0 = inlined_call_operand.hbm [shape: f32[2,8,32], index: 0, kind: input, shape index: {}]   ;;  %s7312_s1 = inlined_call_operand.hbm [shape: f32[2,8,32], index: 1, kind: input, shape index: {}]   ;;  %s7313_s2 = inlined_call_operand.hbm [shape: f32[2,1,32], index: 2, kind: input, shape index: {}]   ;;  %s7314_s3 = inlined_call_operand.hbm [shape: f32[2,1,32], index: 3, kind: input, shape index: {}]   ;;  %s7315_s4 = inlined_call_operand.vmem [shape: bf16[2,32,96], index: 4, kind: input, shape index: {}]   ;;  %s7316_s5 = inlined_call_operand.vmem [shape: f32[2,1,96], index: 5, kind: input, shape index: {}]   ;;  %s7317_s6 = inlined_call_operand.vmem [shape: bf16[2,32,32], index: 6, kind: input, shape index: {}]   ;;  %s7318_s7 = inlined_call_operand.vmem [shape: f32[2,1,32], index: 7, kind: input, shape index: {}]   ;;  %s7319_s8 = inlined_call_operand.vmem [shape: f32[2,1,32], index: 8, kind: input, shape index: {}]   ;;  %s7320_s9 = inlined_call_operand.hbm [shape: f32[2,1,32], index: 9, kind: input, shape index: {}]   ;;  %s7321_s10 = inlined_call_operand.vmem [shape: bf16[2,32,32], index: 10, kind: input, shape index: {}]   ;;  %s7322_s11 = inlined_call_operand.vmem [shape: f32[2,1,32], index: 11, kind: input, shape index: {}]   ;;  %s7323_s12 = inlined_call_operand.hbm [shape: bf16[2,32,64], index: 12, kind: input, shape index: {}]   ;;  %s7324_s13 = inlined_call_operand.vmem [shape: f32[2,1,64], index: 13, kind: input, shape index: {}]   ;;  %s7325_s14 = inlined_call_operand.hbm [shape: bf16[2,32,32], index: 14, kind: input, shape index: {}]   ;;  %s7326_s15 = inlined_call_operand.vmem [shape: f32[2,1,32], index: 15, kind: input, shape index: {}]   ;;  %s7327_s16 = inlined_call_operand.vmem [shape: f32[2,1,32], index: 16, kind: input, shape index: {}]   ;;  %s7328_s17 = inlined_call_operand.hbm [shape: f32[2,1,32], index: 17, kind: input, shape index: {}]   ;;  %s7329_s18 = inlined_call_operand.hbm [shape: bf16[2,32,64], index: 18, kind: input, shape index: {}]   ;;  %s7330_s19 = inlined_call_operand.vmem [shape: f32[2,1,64], index: 19, kind: input, shape index: {}]   ;;  %s7331_s20 = inlined_call_operand.vmem [shape: bf16[2,64,32], index: 20, kind: input, shape index: {}]   ;;  %s7332_s21 = inlined_call_operand.vmem [shape: f32[2,1,32], index: 21, kind: input, shape index: {}]   ;;  %s7333_s22 = inlined_call_operand.vmem [shape: f32[1,32], index: 22, kind: input, shape index: {}]   ;;  %s7334_s23 = inlined_call_operand.vmem [shape: f32[1,32], index: 23, kind: input, shape index: {}]   ;;  %s7335_s24 = inlined_call_operand.hbm [shape: f32[2,8,32], index: 24, kind: output, shape index: {}]  }
   0x1   :  { %7365 = sst [smem:[#allocation42_spill]] %s7311_s0 }
   0x2   :  { %7366 = sst [smem:[#allocation43_spill]] %s7312_s1 }
   0x3   :  { %7367 = sst [smem:[#allocation44_spill]] %s7313_s2 }
   0x4   :  { %7368 = sst [smem:[#allocation45_spill]] %s7314_s3 }
   0x5   :  { %7369 = sst [smem:[#allocation46_spill]] %s7315_s4 }
   0x6   :  { %7370 = sst [smem:[#allocation47_spill]] %s7316_s5 }
   0x7   :  { %7371 = sst [smem:[#allocation48_spill]] %s7317_s6 }
   0x8   :  { %7372 = sst [smem:[#allocation49_spill]] %s7318_s7 }
   0x9   :  { %7373 = sst [smem:[#allocation50_spill]] %s7319_s8 }
   0xa   :  { %7374 = sst [smem:[#allocation51_spill]] %s7320_s9 }
   0xb   :  { %7375 = sst [smem:[#allocation52_spill]] %s7321_s10 }
   0xc   :  { %7376 = sst [smem:[#allocation53_spill]] %s7322_s11 }
   0xd   :  { %7377 = sst [smem:[#allocation54_spill]] %s7323_s12 }
   0xe   :  { %7378 = sst [smem:[#allocation55_spill]] %s7324_s13 }
   0xf   :  { %7379 = sst [smem:[#allocation56_spill]] %s7325_s14 }
  0x10   :  { %7380 = sst [smem:[#allocation57_spill]] %s7326_s15 }
  0x11   :  { %7381 = sst [smem:[#allocation58_spill]] %s7327_s16 }
  0x12   :  { %7382 = sst [smem:[#allocation59_spill]] %s7328_s17 }
  0x13   :  { %7383 = sst [smem:[#allocation60_spill]] %s7329_s18 }
  0x14   :  { %7384 = sst [smem:[#allocation61_spill]] %s7330_s19 }
  0x15   :  { %7385 = sst [smem:[#allocation62_spill]] %s7331_s20 }
  0x16   :  { %7386 = sst [smem:[#allocation63_spill]] %s7332_s21 }
  0x17   :  { %7387 = sst [smem:[#allocation64_spill]] %s7333_s22 }
  0x18   :  { %7388 = sst [smem:[#allocation65_spill]] %s7334_s23 }
  0x19   :  { %7389 = sst [smem:[#allocation66_spill]] %s7335_s24 }
  0x1a   :  { %29 = vsyncpa [#allocation3], 0 }
  0x1b   :  { %31 = vsyncpa [#allocation3 + $0x1], 0 }
  0x1c   :  { %32 = vsyncpa [#allocation6], 0 }
  0x1d   :  { %34 = vsyncpa [#allocation6 + $0x1], 0 }
  0x1e   :  { %35 = vsyncpa [#allocation9], 0 }
  0x1f   :  { %37 = vsyncpa [#allocation9 + $0x1], 0 }
  0x20   :  { %38 = vsyncpa [#allocation12], 0 }
  0x21   :  { %40 = vsyncpa [#allocation12 + $0x1], 0 }
  0x22   :  { %41 = vsyncpa [#allocation15], 0 }
  0x23   :  { %43 = vsyncpa [#allocation15 + $0x1], 0 }
  0x24   :  { %44 = vsyncpa [#allocation4], 0 }
  0x25   :  { %46 = vsyncpa [#allocation4 + $0x1], 0  ;;  %s6212_s5 = smov 0   ;;  %s6214_s26 = smov 0  }
  0x26   :  { %s6216_s27 = smov 0   ;;  %s6218_s28 = smov 0  }
  0x27   :  { %s6220_s6 = smov 0   ;;  %s6222_s2 = smov 0  }
  0x28   :  { %s6224_s29 = smov 0   ;;  %s6226_s0 = smov 0  }
  0x29   :  { %s6228_s7 = smov 0   ;;  %s6230_s30 = smov 0  }
  0x2a   :  { %s6232_s3 = smov 0  }
  0x2b LB: > { %7390 = sst [smem:[#allocation25_spill]] %s6035_s26  ;;  %s6268_s25 = sadd.s32 4294967295, %s6071_s3   ;;  %s6071_s3 = sphi %s6232_s3, %s52_s3   ;;  %s6067_s30 = sphi %s6230_s30, %s7492_s30   ;;  %s6063_s7 = sphi %s6228_s7, %s7491_s7   ;;  %s6059_s0 = sphi %s6226_s0, %s7490_s0   ;;  %s6055_s29 = sphi %s6224_s29, %s7489_s29   ;;  %s6051_s2 = sphi %s6222_s2, %s7488_s2   ;;  %s6047_s6 = sphi %s6220_s6, %s7487_s6   ;;  %s6043_s28 = sphi %s6218_s28, %s7486_s28   ;;  %s6039_s27 = sphi %s6216_s27, %s7485_s27   ;;  %s6035_s26 = sphi %s6214_s26, %s7484_s26   ;;  %s6031_s5 = sphi %s6212_s5, %s7483_s5  }
  0x2c   : > { %7391 = sst [smem:[#allocation26_spill]] %s6039_s27  ;;  %s5137_s8 = sadd.s32 4294967294, %s6071_s3  }
  0x2d   : > { %7392 = sst [smem:[#allocation27_spill]] %s6043_s28  ;;  %s61_s4 = sadd.s32 1, %s6063_s7 }
  0x2e   : > { %7393 = sst [smem:[#allocation28_spill]] %s6047_s6  ;;  %s64_s1 = sadd.s32 1, %s6067_s30 }
  0x2f   : > { %7394 = sst [smem:[#allocation29_spill]] %s6051_s2  ;;  %p62_p0 = scmp.ge.s32.totalorder %s61_s4, 2 }
  0x30   : > { %7395 = sst [smem:[#allocation30_spill]] %s6055_s29  ;;  %s71_s24 = sadd.s32 1, %s6051_s2 }
  0x31   : > { %7396 = sst [smem:[#allocation31_spill]] %s6059_s0  ;;  %p78_p1 = scmp.ne.s32.totalorder %s6051_s2, %s6047_s6 }
  0x32   : > { %7397 = sst [smem:[#allocation32_spill]] %s6063_s7  ;;  %p79_p2 = scmp.eq.s32.totalorder %s6071_s3, 0 }
  0x33   : > { %7398 = sst [smem:[#allocation33_spill]] %s6067_s30  ;;  %s7494_s4 = smov (%p62_p0, %s61_s4), 0 }
  0x34   : > { %7399 = sst [smem:[#allocation34_spill]] %s6071_s3  ;;  %s7496_s1 = smov (!%p62_p0, %s64_s1), %s6067_s30 }
  0x35   : > { %7400 = sst [smem:[#allocation35_spill]] %s7494_s4  ;;  %p6285_p3 = por %p79_p2, %p78_p1 }
  0x36   : > { %p7338_p4 = scmp.ne.s32.totalorder %s6047_s6, %s6043_s28  ;;  %p66_p5 = scmp.ge.s32.totalorder %s7496_s1, 2 }
  0x37   : > { %p85_p6 = scmp.eq.s32.totalorder %s6268_s25, 0  ;;  %s120_s23 = ssub.s32 %s6063_s7, %s7494_s4 }
  0x38   : > { %s123_s22 = sadd.s32 1, %s6039_s27  ;;  %s7498_s1 = smov (%p66_p5, %s7496_s1), 0 }
  0x39   : > { %7402 = sst [smem:[#allocation36_spill]] %s7498_s1  ;;  %p6302_p7 = por %p85_p6, %p7338_p4 }
  0x3a   : > { %p121_p8 = scmp.eq.s32.totalorder %s120_s23, 0  ;;  %s68_s21 = ssub.s32 %s6067_s30, %s7498_s1 }
  0x3b   : > { %p130_p9 = scmp.ne.s32.totalorder %s6039_s27, %s6035_s26  ;;  %p69_p10 = scmp.eq.s32.totalorder %s68_s21, 0 }
  0x3c   : > { %p136_p11 = scmp.ne.s32.totalorder %s6035_s26, %s6031_s5  ;;  %p696_p0 = scmp.eq.s32.totalorder %s6268_s25, 3 }
  0x3d   : > { %s6313_s4 = scalar_select %p121_p8, %s6039_s27, %s123_s22  }
  0x3e   : > { %s6316_s19 = scalar_select %p69_p10, %s6051_s2, %s71_s24  }
  0x3f   : > { %7404 = sst [smem:[#allocation37_spill]] %s6313_s4  ;;  %p6320_p12 = por %p130_p9, %p79_p2 }
  0x40   : > { %7405 = sst [smem:[#allocation38_spill]] %s6316_s19  ;;  %p6326_p13 = por %p136_p11, %p85_p6 }
  0x41   : > { %p702_p5 = scmp.eq.s32.totalorder %s5137_s8, 3  ;;  %p5336_p4 = scmp.lt.s32.totalorder %s6071_s3, 4 }
  0x42   : > { %s7407_s23 = scalar_select %p6326_p13, 1, 0 }
  0x43   : > { %p6335_p8 = por %p696_p0, %p78_p1  ;;  %p7411_p10 = scmp.ne.s32.totalorder %s6047_s6, %s6043_s28 }
  0x44   : > { %7408 = sst [smem:[#allocation39_spill]] %s7407_s23  ;;  %s7344_s24 = sand.u32 1, %s6051_s2  }
  0x45   : > { %s7409_s21 = scalar_select %p6335_p8, 1, 0 }
  0x46   : > { %p6342_p2 = por %p702_p5, %p7411_p10  ;;  %s7345_s5 = sshll.u32 %s6067_s30, 3 }
  0x47   : > { %7410 = sst [smem:[#allocation40_spill]] %s7409_s21  ;;  %s6350_s1 = sshll.u32 %s7344_s24, 3 }
  0x48   : > { %s7412_s22 = scalar_select %p6342_p2, 1, 0 }
  0x49   : > { %p6356_p1 = pnand %p5336_p4, %p6285_p3  ;;  %s6361_s19 = sand.u32 1, %s6071_s3  }
  0x4a   : > { %7413 = sst [smem:[#allocation41_spill]] %s7412_s22  ;;  %s751_s24 = scalar_lea.vmem [#allocation5], %s6350_s1 }
  0x4b   : > { %s7415_s28 = sld [smem:[#allocation43_spill]]  ;;  %s759_s15 = sshll.u32 %s751_s24, 4  ;;  %s760_s15 = int_to_ptr.vmem [resolvable:$true] %s759_s15 }
  0x4c   : > { %p6373_p3 = pnand %p5336_p4, %p6320_p12  ;;  %s7347_s11 = scalar_lea.sflag [#allocation6], %s6361_s19 }
  0x4d   : > { %p5153_p6 = scmp.ge.s32.totalorder %s6071_s3, 1  ;;  %p984_p9 = scmp.lt.s32.totalorder %s6071_s3, 5 }
  0x4e   : > { %s7418_s22 = sld [smem:[#allocation45_spill]]  ;;  %s7360_s23 = scalar_lea.sflag [#allocation15], %s6361_s19 }
  0x4f   : > { %p6387_p11 = pnand %p5153_p6, %p984_p9  ;;  %s7419_s12 = sld [smem:[#allocation54_spill]] }
  0x50   : > { %s7420_s17 = sld [smem:[#allocation59_spill]]  ;;  %s7421_s26 = sshll.u32 %s6067_s30, 3 }
  0x51   : > { %s755_s21 = scalar_lea.hbm %s7415_s28, %s7345_s5  ;;  %s6385_s28 = sand.u32 1, %s6039_s27  }
  0x52   : > { %s757_s0 = sshll.u32 %s755_s21, 4  ;;  %s786_s10 = scalar_lea.vmem [#allocation8], %s6385_s28  ;;  %s758_s0 = int_to_ptr.hbm [resolvable:$true] %s757_s0 }
  0x53   : > { %5310 = dma.hbm_to_vmem [thread:$0]  (!%p6356_p1), %s758_s0, 128, %s760_s15, %s7347_s11  }
  0x54   : > { %s789_s24 = scalar_lea.hbm %s7418_s22, %s6063_s7  ;;  %s793_s29 = sshll.u32 %s786_s10, 4  ;;  %s794_s29 = int_to_ptr.vmem [resolvable:$true] %s793_s29 }
  0x55   : > { %s791_s5 = sshll.u32 %s789_s24, 4  ;;  %s7349_s15 = scalar_lea.sflag [#allocation9], %s6361_s19  ;;  %s792_s5 = int_to_ptr.hbm [resolvable:$true] %s791_s5 }
  0x56   : > { %5316 = dma.hbm_to_vmem [thread:$0]  (!%p6373_p3), %s792_s5, 16, %s794_s29, %s7349_s15  }
  0x57   : > { %s6402_s0 = sshll.u32 %s6385_s28, 4  ;;  %s6405_s11 = sshll.u32 %s6063_s7, 4 }
  0x58   : > { %s874_s10 = scalar_lea.hbm %s7419_s12, %s6405_s11  ;;  %s869_s22 = scalar_lea.vmem [#allocation11], %s6402_s0 }
  0x59   : > { %s877_s24 = sshll.u32 %s869_s22, 4  ;;  %s875_s27 = sshll.u32 %s874_s10, 4  ;;  %s878_s24 = int_to_ptr.vmem [resolvable:$true] %s877_s24  ;;  %s876_s27 = int_to_ptr.hbm [resolvable:$true] %s875_s27 }
  0x5a   : > { %s7355_s29 = scalar_lea.sflag [#allocation12], %s6361_s19  ;;  %s7356_s5 = smov 64  }
  0x5b   : > { %s7358_s15 = smov 4   ;;  %s933_s22 = scalar_lea.hbm %s7420_s17, %s6063_s7 }
  0x5c   : > { %5322 = dma.hbm_to_vmem [thread:$0]  (!%p6373_p3), %s876_s27, 256, %s878_s24, %s7355_s29, %s7356_s5, %s7356_s5, %s7358_s15  }
  0x5d   : > { %s935_s10 = sshll.u32 %s933_s22, 4  ;;  %s930_s12 = scalar_lea.vmem [#allocation14], %s6385_s28  ;;  %s936_s10 = int_to_ptr.hbm [resolvable:$true] %s935_s10 }
  0x5e   : > { %s937_s3 = sshll.u32 %s930_s12, 4  ;;  %s7422_s29 = sld [smem:[#allocation42_spill]]  ;;  %s938_s3 = int_to_ptr.vmem [resolvable:$true] %s937_s3 }
  0x5f   : > { %5328 = dma.hbm_to_vmem [thread:$0]  (!%p6373_p3), %s936_s10, 16, %s938_s3, %s7360_s23  }
  0x60   : > { %s732_s21 = scalar_lea.vmem [#allocation2], %s6350_s1  ;;  %s7423_s12 = sand.u32 1, %s6051_s2  }
  0x61   : > { %s740_s22 = sshll.u32 %s732_s21, 4  ;;  %s729_s15 = scalar_lea.sflag [#allocation3], %s7423_s12  ;;  %s741_s22 = int_to_ptr.vmem [resolvable:$true] %s740_s22 }
  0x62   : > { %s7424_s23 = sld [smem:[#allocation44_spill]]  ;;  %s769_s24 = scalar_lea.vmem [#allocation7], %s6385_s28 }
  0x63   : > { %s7425_s1 = scalar_lea.sflag [#allocation6], %s6361_s19  ;;  %s7426_s9 = sld [smem:[#allocation51_spill]] }
  0x64   : > { %s736_s16 = scalar_lea.hbm %s7422_s29, %s7421_s26  ;;  %s776_s26 = sshll.u32 %s769_s24, 4  ;;  %s777_s26 = int_to_ptr.vmem [resolvable:$true] %s776_s26 }
  0x65   : > { %s738_s5 = sshll.u32 %s736_s16, 4  ;;  %s7428_s14 = sld [smem:[#allocation56_spill]]  ;;  %s739_s5 = int_to_ptr.hbm [resolvable:$true] %s738_s5 }
  0x66   : > { %5307 = dma.hbm_to_vmem [thread:$0]  (!%p6356_p1), %s739_s5, 128, %s741_s22, %s729_s15  }
  0x67   : > { %s837_s5 = scalar_lea.vmem [#allocation10], %s6385_s28  ;;  %s7429_s28 = smov 4  }
  0x68   : > { %s772_s27 = scalar_lea.hbm %s7424_s23, %s6063_s7  ;;  %s844_s21 = sshll.u32 %s837_s5, 4  ;;  %s845_s21 = int_to_ptr.vmem [resolvable:$true] %s844_s21 }
  0x69   : > { %s774_s29 = sshll.u32 %s772_s27, 4  ;;  %s840_s15 = scalar_lea.hbm %s7426_s9, %s6063_s7  ;;  %s775_s29 = int_to_ptr.hbm [resolvable:$true] %s774_s29 }
  0x6a   : > { %5313 = dma.hbm_to_vmem [thread:$0]  (!%p6373_p3), %s775_s29, 16, %s777_s26, %s7425_s1  }
  0x6b   : > { %s842_s22 = sshll.u32 %s840_s15, 4  ;;  %s7427_s23 = scalar_lea.sflag [#allocation9], %s6361_s19  ;;  %s843_s22 = int_to_ptr.hbm [resolvable:$true] %s842_s22 }
  0x6c   : > { %5319 = dma.hbm_to_vmem [thread:$0]  (!%p6373_p3), %s843_s22, 16, %s845_s21, %s7427_s23  }
  0x6d   : > { %s902_s10 = scalar_lea.hbm %s7428_s14, %s6405_s11  ;;  %s897_s27 = scalar_lea.vmem [#allocation13], %s6402_s0 }
  0x6e   : > { %s905_s24 = sshll.u32 %s897_s27, 4  ;;  %s903_s26 = sshll.u32 %s902_s10, 4  ;;  %s906_s24 = int_to_ptr.vmem [resolvable:$true] %s905_s24  ;;  %s904_s26 = int_to_ptr.hbm [resolvable:$true] %s903_s26 }
  0x6f   : > { %s7430_s29 = smov 64   ;;  %s7431_s1 = scalar_lea.sflag [#allocation12], %s6361_s19 }
  0x70   : > { %5325 = dma.hbm_to_vmem [thread:$0]  (!%p6373_p3), %s904_s26, 256, %s906_s24, %s7431_s1, %s7430_s29, %s7430_s29, %s7429_s28  }
  0x71   : > { %s7432_s18 = sld [smem:[#allocation60_spill]]  ;;  %s948_s5 = scalar_lea.vmem [#allocation16], %s6402_s0 }
  0x72   : > { %s956_s21 = sshll.u32 %s948_s5, 4  ;;  %s7433_s23 = scalar_lea.sflag [#allocation15], %s6361_s19  ;;  %s957_s21 = int_to_ptr.vmem [resolvable:$true] %s956_s21 }
  0x73   : > { %s6485_s12 = sand.u32 (!%p6387_p11), 1, %s6047_s6  }
  0x74   : > { %s991_s0 = scalar_lea.sflag (!%p6387_p11), [#allocation3], %s6485_s12 }
  0x75   : > { %988 = sbr.rel (%p6387_p11) target bundleno = 5518 (0x158e), region = 116 }
  0x77   : > { %s953_s15 = scalar_lea.hbm %s7432_s18, %s6405_s11  ;;  %s6488_s11 = sshll.u32 (!%p6387_p11), %s6485_s12, 3 }
  0x78   : > { %s954_s22 = sshll.u32 %s953_s15, 4  ;;  %s955_s22 = int_to_ptr.hbm [resolvable:$true] %s954_s22 }
  0x79   : > { %5331 = dma.hbm_to_vmem [thread:$0]  (!%p6373_p3), %s955_s22, 256, %s957_s21, %s7433_s23, %s7430_s29, %s7430_s29, %s7429_s28  }
  0x7a   : > { %6002 = dma.done.wait (%p6302_p7), %s991_s0, 128  }
  0x7b   : > { %6004 = vsyncadd (%p6302_p7), %s991_s0, 4294967168  ;;  %s1000_s13 = sand.u32 1, %s6268_s25  }
  0x7c   : > { %s1001_s19 = scalar_lea.sflag [#allocation6], %s1000_s13 }
  0x7d   : > { %6006 = dma.done.wait (%p6302_p7), %s1001_s19, 128  }
  0x7e   : > { %6008 = vsyncadd (%p6302_p7), %s1001_s19, 4294967168  ;;  %s7434_s10 = sld [smem:[#allocation25_spill]] }
  0x84   : > { %s6503_s24 = sand.u32 1, %s7434_s10  }
  0x85   : > { %6010 = dma.done.wait (%p6326_p13), %s1001_s19, 16  }
  0x86   : > { %6012 = vsyncadd (%p6326_p13), %s1001_s19, 4294967280  ;;  %s1020_s25 = scalar_lea.sflag [#allocation9], %s1000_s13 }
  0x87   : > { %6014 = dma.done.wait (%p6326_p13), %s1020_s25, 32  }
  0x88   : > { %6016 = vsyncadd (%p6326_p13), %s1020_s25, 4294967264  ;;  %s6516_s20 = sshll.u32 %s6503_s24, 4  ;;  %s1038_s1 = scalar_lea.sflag [#allocation12], %s1000_s13 }
  0x89   : > { %6018 = dma.done.wait (%p6326_p13), %s1038_s1, 512  }
  0x8a   : > { %6020 = vsyncadd (%p6326_p13), %s1038_s1, 4294966784  ;;  %s1058_s15 = scalar_lea.sflag [#allocation15], %s1000_s13 }
  0x8b   : > { %6022 = dma.done.wait (%p6326_p13), %s1058_s15, 272  }
  0x8c   : > { %6024 = vsyncadd (%p6326_p13), %s1058_s15, 4294967024  ;;  %s7436_s21 = sld [smem:[#allocation30_spill]]  ;;  %s1070_s2 = scalar_lea.vmem [#allocation16], %s6516_s20 }
  0x8d   : > { %s7438_s1 = sld [smem:[#allocation46_spill]]  ;;  %s6594_s28 = scalar_lea.vmem [#allocation17], %s6488_s11 }
  0x8e   : > { %s7439_s29 = sld [smem:[#allocation48_spill]] }
  0x8f   : > { %s7442_s10 = sld [smem:[#allocation52_spill]] }
  0x90   : > { %s7444_s5 = sld [smem:[#allocation55_spill]] }
  0x91   : > { %s7445_s26 = sld [smem:[#allocation57_spill]] }
  0x92   : > { %p1219_p4 = scmp.lt.s32.totalorder %s7436_s21, 1  ;;  %s7446_s14 = sld [smem:[#allocation58_spill]] }
  0x93   : > { %s7448_s25 = sld [smem:[#allocation63_spill]]  ;;  %p5168_p7 = scmp.ne.s32.totalorder %s7436_s21, 0 }
  0x94   : > { %s6532_s22 = scalar_select %p1219_p4, %s7436_s21, 1 }
  0x95   : > { %s7450_s3 = scalar_lea.vmem (!%p5168_p7), [#allocation2], %s6488_s11 }
  0x96   : > { %s5264_s23 = sshll.u32 %s6532_s22, 4  ;;  %s1248_s7 = scalar_lea.vmem %s7444_s5, %s6532_s22 }
  0x97   : > { %s6542_s15 = scalar_lea.vmem %s7438_s1, %s5264_s23  ;;  %s6547_s4 = scalar_lea.vmem %s7439_s29, %s5264_s23 }
  0x98   : > { %s6560_s18 = scalar_lea.vmem %s7442_s10, %s5264_s23  ;;  %s1251_s16 = scalar_lea.vmem %s7445_s26, %s6532_s22 }
  0x99   : > { %s1254_s17 = scalar_lea.vmem %s7446_s14, %s6532_s22  ;;  %s7447_s23 = sld [smem:[#allocation61_spill]] }
  0x9a   : > { %s5267_s19 = sshll.u32 %s6532_s22, 5  ;;  %s1265_s1 = scalar_lea.vmem %s7448_s25, %s6532_s22 }
  0x9b   : > { %s7449_s29 = sld [smem:[#allocation62_spill]] }
  0x9d   : > { %1270 = sbr.rel (%p5168_p7) target bundleno = 164 (0xa4), region = 156 }
  0x9f   : > { %s1257_s10 = scalar_lea.vmem %s7447_s23, %s6532_s22 }
  0xa1   : > { %s6590_s5 = scalar_lea.vmem %s7449_s29, %s5267_s19 }
  0xa2   : > { %v1271_v0 = vld [vmem:[%s7450_s3] sm:$0xff]  ;;  %vm1272_vm0 = vcmask 261120  }
  0xa3   : > { %1273 = vst.msk [vmem:[%s6594_s28] sm:$0xff] %vm1272_vm0, %v1271_v0 }
  0xa4 PF: > { %vm1277_vm1 = vcmask 261120   ;;  %v6075_v3 = vmov 32.0   ;;  %v5269_v15 = vld [vmem:[%s6542_s15 + $0x8] sm:$0xff]  ;;  %v5268_v16 = vld [vmem:[%s6542_s15] sm:$0xff]  ;;  %s7451_s6 = scalar_lea.vmem [#allocation7], %s6503_s24  ;;  %s7452_s30 = scalar_lea.vmem [#allocation8], %s6503_s24 }
  0xa5   : > { %5614 = vrcp.f32 %v6075_v3  ;;  %1345 = vmatpush.bf16.msra.mxu0 %v5269_v15  ;;  %v5601_v26 = vld [vmem:[%s7451_s6] ss:$0 sm:$0xff]  ;;  %s7453_s0 = sld [smem:[#allocation47_spill]]  ;;  %s6076_s9 = smov 112   ;;  %v6080_v45 = vmov 1983009808  }
  0xa6   : > { %v5602_v29 = vld [vmem:[%s7452_s30] ss:$0 sm:$0xff]  ;;  %s6077_s14 = smov 120   ;;  %s6078_s13 = smov 104   ;;  %v1374_v46 = vunpack.c.l.s4 %v6080_v45  ;;  %vm1369_vm6 = vcmask 1047556   ;;  %vm2038_vm7 = vcmask 1043456  }
  0xa7   : > { %s6079_s23 = smov 96   ;;  %v6081_v53 = vmov 1934713408   ;;  %s6082_s19 = smov 64   ;;  %vm2034_vm8 = vcmask 64512   ;;  %vm2883_vm10 = vcmask 130048  }
  0xa8   : > { %v6645_v52 = vunpack.c.0.s8 %v1374_v46  ;;  %v1398_v54 = vunpack.c.l.s4 %v6081_v53  ;;  %s6084_s27 = smov 24   ;;  %s6085_s25 = smov 16   ;;  %vm2885_vm11 = vcmask 195584  }
  0xa9   : > { %1346 = vmatpush.bf16.msra.mxu0 %v5268_v16  ;;  %s6086_s8 = smov 8   ;;  %s7455_s3 = sld [smem:[#allocation49_spill]] }
  0xaa   : > { %v1274_v1 = vld [vmem:[%s6594_s28] sm:$0xff]  ;;  %s7457_s30 = scalar_lea.vmem [#allocation11], %s6516_s20  ;;  %s7459_s15 = scalar_lea.vmem [#allocation5], %s6488_s11 }
  0xab   : > { %v1278_v2 = vsel %vm1277_vm1, %v1274_v1, 0.0  ;;  %v5615_v4 = vpop.eup %5614  ;;  %s7454_s26 = scalar_lea.vmem %s7453_s0, %s6532_s22  ;;  %s7458_s21 = smov %s7457_s30 }
  0xac   : > { %1279 = vadd.xlane.f32.xlu0 %v1278_v2  ;;  %v1282_v5 = vmul.f32 32.0, %v5615_v4  ;;  %vm1286_vm2 = vweird.f32 %v5615_v4  ;;  %v5603_v33 = vld [vmem:[%s7454_s26] ss:$0 sm:$0xff]  ;;  %v6654_v2 = vunpack.c.0.s8 %v1398_v54  ;;  %s7461_s11 = sld [smem:[#allocation50_spill]] }
  0xae   : > { %v1283_v6 = vsub.f32 1.0, %v1282_v5 }
  0xaf   : > { %s7456_s6 = scalar_lea.vmem %s7455_s3, %s6532_s22 }
  0xb0   : > { %v1284_v7 = vmul.f32 %v5615_v4, %v1283_v6 }
  0xb2   : > { %v1285_v8 = vadd.f32 %v5615_v4, %v1284_v7  ;;  %s7462_s29 = scalar_lea.vmem %s7461_s11, %s6532_s22 }
  0xb4   : > { %v6602_v9 = vsel %vm1286_vm2, %v5615_v4, %v1285_v8 }
 0x11f   : > { %v1280_v10 = vpop.xlane.xlu0 %1279 }
 0x120   : > { %v1288_v11 = vmul.f32 %v6602_v9, %v1280_v10 }
 0x122   : > { %v1289_v12 = vsub.f32 %v1274_v1, %v1288_v11 }
 0x124   : > { %v1290_v13 = vmul.f32 %v1289_v12, %v1289_v12 }
 0x126   : > { %v1291_v14 = vsel %vm1277_vm1, %v1290_v13, 0.0 }
 0x127   : > { %1292 = vadd.xlane.f32.xlu0 %v1291_v14 }
 0x19a   : > { %v1293_v17 = vpop.xlane.xlu0 %1292 }
 0x19b   : > { %v1294_v18 = vmul.f32 %v1293_v17, %v6602_v9 }
 0x19d   : > { %v1295_v19 = vadd.f32 1e-05, %v1294_v18 }
 0x19f   : > { %5616 = vrsqrt.f32 %v1295_v19  ;;  %vm1302_vm4 = vweird.f32 %v1295_v19 }
 0x1a5   : > { %v5617_v20 = vpop.eup %5616 }
 0x1a6   : > { %v1297_v21 = vmul.f32 %v5617_v20, %v1295_v19  ;;  %vm1303_vm3 = vweird.f32 %v5617_v20 }
 0x1a7   : > { %vm1304_vm5 = vmor %vm1302_vm4, %vm1303_vm3  ;;  %vm4698_vm3 = vcmask 523264  }
 0x1a8   : > { %v1298_v22 = vmul.f32 %v5617_v20, %v1297_v21 }
 0x1aa   : > { %v1299_v23 = vmul.f32 0.5, %v1298_v22 }
 0x1ac   : > { %v1300_v24 = vsub.f32 1.5, %v1299_v23 }
 0x1ae   : > { %v1301_v25 = vmul.f32 %v5617_v20, %v1300_v24 }
 0x1b0   : > { %v1305_v27 = vsel %vm1304_vm5, %v5617_v20, %v1301_v25 }
 0x1b1   : > { %v1306_v28 = vmul.f32 %v1305_v27, %v1289_v12 }
 0x1b3   : > { %v1310_v30 = vmul.f32 %v5601_v26, %v1306_v28 }
 0x1b5   : > { %v1314_v31 = vadd.f32 %v5602_v29, %v1310_v30 }
 0x1b7   : > { %v1315_v32 = vpack.c.bf16 %v1314_v31, %v1314_v31 }
 0x1b9   : > { %5177 = vmatmul.msk.bf16.vlgmr.msra.gmra.mxu0 %vm1277_vm1, %v1315_v32 }
 0x236   : > { %v1348_v34 = vpop.f32.mrf.mxu0 }
 0x237   : > { %v6619_v35 = vadd.f32 %v5603_v33, %v1348_v34 }
 0x239   : > { %1362 = vrot.lane.b32.xlu2 %v6619_v35, %s6076_s9  ;;  %1359 = vrot.lane.b32.xlu1 %v6619_v35, %s6077_s14 }
 0x23e   : > { %v1350_v36 = vpop.f32.mrf.mxu0 }
 0x241   : > { %1365 = vrot.lane.b32.xlu1 %v6619_v35, %s6078_s13 }
 0x293   : > { %v6635_v39 = vpop.permute.xlu2 %1362 }
 0x2ab   : > { %v6627_v37 = vpop.permute.xlu1 %1359 }
 0x2ac   : > { %v6631_v38 = vpack.i.bf16 %v6619_v35, %v6627_v37 }
 0x2ae   : > { %5443 = vrot.lane.b32.xlu2 %v6631_v38, %s6079_s23 }
 0x2b3   : > { %v6637_v40 = vpop.permute.xlu1 %1365 }
 0x2b4   : > { %v6641_v41 = vpack.i.bf16 %v6635_v39, %v6637_v40 }
 0x2b6   : > { %5448 = vrot.lane.b32.xlu0 %v6641_v41, %s6079_s23 }
 0x308   : > { %v5444_v42 = vpop.permute.xlu2 %5443 }
 0x309   : > { %v5446_v43 = vunpack.i.h.bf16 %v5444_v42  ;;  %v5445_v44 = vunpack.i.l.bf16 %v5444_v42 }
 0x30b   : > { %v1447_v48 = vrot.slane %v5446_v43, 4  ;;  %v1459_v49 = vrot.slane %v5445_v44, 4 }
 0x328   : > { %v5449_v47 = vpop.permute.xlu0 %5448 }
 0x329   : > { %v5451_v50 = vunpack.i.h.bf16 %v5449_v47  ;;  %v5450_v51 = vunpack.i.l.bf16 %v5449_v47 }
 0x32b   : > { %v1445_v55 = vrot.slane %v5451_v50, 4  ;;  %v1448_v56 = vsel %vm1369_vm6, %v5451_v50, %v1447_v48  ;;  %v1457_v57 = vrot.slane %v5450_v51, 4  ;;  %v1460_v58 = vsel %vm1369_vm6, %v5450_v51, %v1459_v49 }
 0x32c   : > { %v1456_v59 = vperm.slane %v1448_v56, %v6645_v52  ;;  %v1468_v60 = vperm.slane %v1460_v58, %v6645_v52 }
 0x32d   : > { %v1446_v61 = vsel %vm1369_vm6, %v1445_v55, %v5446_v43  ;;  %v1458_v62 = vsel %vm1369_vm6, %v1457_v57, %v5445_v44 }
 0x32e   : > { %v1483_v63 = vrot.slane %v1456_v59, 4  ;;  %v1464_v0 = vperm.slane %v1458_v62, %v6645_v52  ;;  %v1481_v1 = vrot.slane %v1468_v60, 4  ;;  %v1452_v3 = vperm.slane %v1446_v61, %v6645_v52 }
 0x330   : > { %v1469_v4 = vrot.slane %v1464_v0, 4  ;;  %v1484_v5 = vsel %vm1369_vm6, %v1468_v60, %v1483_v63  ;;  %v1482_v6 = vsel %vm1369_vm6, %v1481_v1, %v1456_v59  ;;  %v1471_v20 = vrot.slane %v1452_v3, 4 }
 0x331   : > { %v1492_v7 = vperm.slane %v1484_v5, %v6654_v2  ;;  %v1488_v8 = vperm.slane %v1482_v6, %v6654_v2 }
 0x332   : > { %v1470_v10 = vsel %vm1369_vm6, %v1469_v4, %v1452_v3  ;;  %v1472_v25 = vsel %vm1369_vm6, %v1464_v0, %v1471_v20 }
 0x333   : > { %v1499_v11 = vrot.slane %v1492_v7, 4  ;;  %v1497_v12 = vrot.slane %v1488_v8, 4  ;;  %v1476_v13 = vperm.slane %v1470_v10, %v6654_v2  ;;  %v1507_v16 = vpack.c.bf16 %v1492_v7, %v1492_v7 }
 0x334   : > { %v1505_v21 = vpack.c.bf16 %v1488_v8, %v1488_v8  ;;  %v1480_v26 = vperm.slane %v1472_v25, %v6654_v2 }
 0x335   : > { %v1500_v14 = vsel %vm1369_vm6, 0.0, %v1499_v11  ;;  %v1498_v15 = vsel %vm1369_vm6, 0.0, %v1497_v12  ;;  %v1493_v19 = vrot.slane %v1476_v13, 4  ;;  %v1501_v23 = vpack.c.bf16 %v1476_v13, %v1476_v13 }
 0x336   : > { %v1508_v17 = vpack.c.bf16 %v1500_v14, %v1500_v14  ;;  %v1506_v18 = vpack.c.bf16 %v1498_v15, %v1498_v15  ;;  %v1495_v27 = vrot.slane %v1480_v26, 4  ;;  %v1503_v29 = vpack.c.bf16 %v1480_v26, %v1480_v26 }
 0x337   : > { %v1494_v22 = vsel %vm1369_vm6, 0.0, %v1493_v19 }
 0x338   : > { %5455 = vxpose.binary.xlu0.c.b16.start.end [1/2] (short) (narrow) %v1508_v17, %v1507_v16, 16  ;;  %v1502_v24 = vpack.c.bf16 %v1494_v22, %v1494_v22  ;;  %v1496_v28 = vsel %vm1369_vm6, 0.0, %v1495_v27 }
 0x339   : > { %5452 = vxpose.binary.xlu1.c.b16.start.end [1/2] (short) (narrow) %v1506_v18, %v1505_v21, 16  ;;  %v1504_v30 = vpack.c.bf16 %v1496_v28, %v1496_v28 }
 0x33a   : > { %5458 = vxpose.binary.xlu2.c.b16.start.end [1/2] (short) (narrow) %v1502_v24, %v1501_v23, 16 }
 0x34a   : > { %5461 = vxpose.binary.xlu2.c.b16.start.end [1/2] (short) (narrow) %v1504_v30, %v1503_v29, 16 }
 0x3db   : > { %v5459_v31 = vpop.trf.xlu2 }
 0x3e3   : > { %v5460_v32 = vpop.trf.xlu2 }
 0x3e4   : > { %v5456_v33 = vpop.trf.xlu0 }
 0x3e5   : > { %v5453_v34 = vpop.trf.xlu1  ;;  %v1772_v43 = vrot.slane %v5456_v33, 4  ;;  %v1368_v33 = vrot.slane %v6635_v39, 4 }
 0x3e6   : > { %v1766_v36 = vrot.slane %v5453_v34, 4 }
 0x3e8   : > { %v1767_v42 = vsel %vm1369_vm6, %v1766_v36, %v5459_v31  ;;  %v1383_v36 = vrot.slane %v6627_v37, 4 }
 0x3e9   : > { %v1771_v44 = vperm.slane %v1767_v42, %v6645_v52  ;;  %v1381_v42 = vrot.slane %v6637_v40, 4 }
 0x3eb   : > { %v5462_v45 = vpop.trf.xlu2  ;;  %v1780_v48 = vrot.slane %v1771_v44, 4 }
 0x3ec   : > { %v1773_v46 = vsel %vm1369_vm6, %v1772_v43, %v5462_v45  ;;  %v5457_v51 = vpop.trf.xlu0  ;;  %v1384_v43 = vsel %vm1369_vm6, %v6637_v40, %v1383_v36  ;;  %v1382_v45 = vsel %vm1369_vm6, %v1381_v42, %v6627_v37 }
 0x3ed   : > { %v5454_v47 = vpop.trf.xlu1  ;;  %v1777_v49 = vperm.slane %v1773_v46, %v6645_v52  ;;  %v1800_v56 = vrot.slane %v5457_v51, 4 }
 0x3ee   : > { %v1794_v50 = vrot.slane %v5454_v47, 4  ;;  %v1388_v47 = vperm.slane %v1382_v45, %v6645_v52 }
 0x3ef   : > { %v1778_v53 = vrot.slane %v1777_v49, 4  ;;  %v1781_v54 = vsel %vm1369_vm6, %v1777_v49, %v1780_v48 }
 0x3f0   : > { %v1795_v55 = vsel %vm1369_vm6, %v1794_v50, %v5460_v32  ;;  %v1789_v59 = vperm.slane %v1781_v54, %v6654_v2  ;;  %v1371_v32 = vrot.slane %v6619_v35, 4  ;;  %v1393_v51 = vrot.slane %v1388_v47, 4 }
 0x3f1   : > { %v1779_v57 = vsel %vm1369_vm6, %v1778_v53, %v1771_v44  ;;  %v1799_v58 = vperm.slane %v1795_v55, %v6645_v52 }
 0x3f2   : > { %v1785_v60 = vperm.slane %v1779_v57, %v6654_v2  ;;  %v1792_v1 = vrot.slane %v1789_v59, 4  ;;  %v1842_v8 = vshrl.u32 %v1789_v59, 16  ;;  %v1372_v34 = vsel %vm1369_vm6, %v6635_v39, %v1371_v32 }
 0x3f3   : > { %v5463_v61 = vpop.trf.xlu2  ;;  %v1808_v63 = vrot.slane %v1799_v58, 4  ;;  %v1380_v44 = vperm.slane %v1372_v34, %v6645_v52 }
 0x3f4   : > { %v1801_v62 = vsel %vm1369_vm6, %v1800_v56, %v5463_v61  ;;  %v1790_v5 = vrot.slane %v1785_v60, 4  ;;  %v1793_v12 = vsel %vm1369_vm6, 0, %v1792_v1  ;;  %v1826_v29 = vshrl.u32 %v1785_v60, 16 }
 0x3f5   : > { %v1805_v0 = vperm.slane %v1801_v62, %v6645_v52  ;;  %v1850_v19 = vshrl.u32 %v1793_v12, 16  ;;  %v1407_v39 = vrot.slane %v1380_v44, 4 }
 0x3f6   : > { %v1791_v14 = vsel %vm1369_vm6, 0, %v1790_v5 }
 0x3f7   : > { %v1806_v3 = vrot.slane %v1805_v0, 4  ;;  %v1809_v4 = vsel %vm1369_vm6, %v1805_v0, %v1808_v63  ;;  %v1834_v24 = vshrl.u32 %v1791_v14, 16 }
 0x3f8   : > { %v1817_v6 = vperm.slane %v1809_v4, %v6654_v2 }
 0x3f9   : > { %v1807_v7 = vsel %vm1369_vm6, %v1806_v3, %v1799_v58 }
 0x3fa   : > { %v1813_v10 = vperm.slane %v1807_v7, %v6654_v2  ;;  %v1843_v11 = vshrl.u32 %v1817_v6, 16  ;;  %v1820_v13 = vrot.slane %v1817_v6, 4  ;;  %v1840_v15 = vpack.i.b16 %v1817_v6, %v1789_v59 }
 0x3fc   : > { %v1844_v16 = vpack.i.b16 %v1843_v11, %v1842_v8  ;;  %v1821_v17 = vsel %vm1369_vm6, 0, %v1820_v13  ;;  %v1818_v18 = vrot.slane %v1813_v10, 4  ;;  %v1827_v28 = vshrl.u32 %v1813_v10, 16 }
 0x3fd   : > { %v1851_v20 = vshrl.u32 %v1821_v17, 16  ;;  %v1848_v22 = vpack.i.b16 %v1821_v17, %v1793_v12  ;;  %v1824_v30 = vpack.i.b16 %v1813_v10, %v1785_v60 }
 0x3fe   : > { %5464 = vxpose.binary.xlu2.c.b16.start.end [1/2] (short) (narrow) %v1844_v16, %v1840_v15, 16  ;;  %v1819_v21 = vsel %vm1369_vm6, 0, %v1818_v18  ;;  %v1828_v31 = vpack.i.b16 %v1827_v28, %v1826_v29 }
 0x3ff   : > { %v1852_v23 = vpack.i.b16 %v1851_v20, %v1850_v19  ;;  %v1835_v25 = vshrl.u32 %v1819_v21, 16  ;;  %v1832_v26 = vpack.i.b16 %v1819_v21, %v1791_v14 }
 0x401   : > { %5470 = vxpose.binary.xlu1.c.b16.start.end [1/2] (short) (narrow) %v1852_v23, %v1848_v22, 16  ;;  %v1836_v27 = vpack.i.b16 %v1835_v25, %v1834_v24 }
 0x403   : > { %5467 = vxpose.binary.xlu0.c.b16.start.end [1/2] (short) (narrow) %v1836_v27, %v1832_v26, 16 }
 0x411   : > { %5473 = vxpose.binary.xlu1.c.b16.start.end [1/2] (short) (narrow) %v1828_v31, %v1824_v30, 16 }
 0x467   : > { %5482 = vrot.lane.b32.xlu2 %v6641_v41, %s6082_s19  ;;  %v1370_v41 = vsel %vm1369_vm6, %v1368_v33, %v6619_v35 }
 0x468   : > { %v1376_v46 = vperm.slane %v1370_v41, %v6645_v52 }
 0x46a   : > { %v1395_v50 = vrot.slane %v1376_v46, 4  ;;  %v1394_v56 = vsel %vm1369_vm6, %v1393_v51, %v1376_v46 }
 0x46b   : > { %v1400_v58 = vperm.slane %v1394_v56, %v6654_v2 }
 0x46c   : > { %v1396_v53 = vsel %vm1369_vm6, %v1388_v47, %v1395_v50 }
 0x46d   : > { %v1404_v54 = vperm.slane %v1396_v53, %v6654_v2  ;;  %v1417_v63 = vrot.slane %v1400_v58, 4  ;;  %v1425_v23 = vpack.c.bf16 %v1400_v58, %v1400_v58 }
 0x46f   : > { %v1419_v59 = vrot.slane %v1404_v54, 4  ;;  %v1418_v11 = vsel %vm1369_vm6, 0.0, %v1417_v63  ;;  %v1427_v12 = vpack.c.bf16 %v1404_v54, %v1404_v54 }
 0x470   : > { %v1426_v18 = vpack.c.bf16 %v1418_v11, %v1418_v11 }
 0x471   : > { %5477 = vrot.lane.b32.xlu0 %v6631_v38, %s6082_s19  ;;  %v1392_v38 = vperm.slane %v1384_v43, %v6645_v52  ;;  %v1420_v1 = vsel %vm1369_vm6, 0.0, %v1419_v59 }
 0x472   : > { %v1428_v10 = vpack.c.bf16 %v1420_v1, %v1420_v1 }
 0x473   : > { %v1405_v48 = vrot.slane %v1392_v38, 4  ;;  %v1408_v49 = vsel %vm1369_vm6, %v1392_v38, %v1407_v39 }
 0x474   : > { %v1416_v40 = vperm.slane %v1408_v49, %v6654_v2 }
 0x475   : > { %v1406_v35 = vsel %vm1369_vm6, %v1405_v48, %v1380_v44 }
 0x476   : > { %v1412_v37 = vperm.slane %v1406_v35, %v6654_v2  ;;  %v1423_v55 = vrot.slane %v1416_v40, 4  ;;  %v1431_v3 = vpack.c.bf16 %v1416_v40, %v1416_v40 }
 0x478   : > { %v1421_v60 = vrot.slane %v1412_v37, 4  ;;  %v1424_v61 = vsel %vm1369_vm6, 0.0, %v1423_v55  ;;  %v1429_v13 = vpack.c.bf16 %v1412_v37, %v1412_v37  ;;  %v1592_v14 = vrot.slane %v1431_v3, 4 }
 0x479   : > { %v1432_v62 = vpack.c.bf16 %v1424_v61, %v1424_v61 }
 0x47a   : > { %v1422_v0 = vsel %vm1369_vm6, 0.0, %v1421_v60  ;;  %v1585_v21 = vrot.slane %v1429_v13, 4  ;;  %v1593_v24 = vsel %vm1369_vm6, %v1592_v14, %v1427_v12 }
 0x47b   : > { %v1430_v6 = vpack.c.bf16 %v1422_v0, %v1422_v0  ;;  %v1612_v7 = vrot.slane %v1432_v62, 4  ;;  %v1597_v31 = vperm.slane %v1593_v24, %v6645_v52 }
 0x47c   : > { %v1587_v34 = vsel %vm1369_vm6, %v1585_v21, %v1425_v23 }
 0x47d   : > { %v1606_v17 = vrot.slane %v1430_v6, 4  ;;  %v1613_v19 = vsel %vm1369_vm6, %v1612_v7, %v1428_v10  ;;  %v1591_v45 = vperm.slane %v1587_v34, %v6645_v52  ;;  %v1598_v46 = vrot.slane %v1597_v31, 4 }
 0x47e   : > { %v1617_v26 = vperm.slane %v1613_v19, %v6645_v52 }
 0x47f   : > { %v1607_v29 = vsel %vm1369_vm6, %v1606_v17, %v1426_v18  ;;  %v1599_v40 = vsel %vm1369_vm6, %v1598_v46, %v1591_v45 }
 0x480   : > { %v1611_v42 = vperm.slane %v1607_v29, %v6645_v52  ;;  %v1618_v43 = vrot.slane %v1617_v26, 4  ;;  %v1603_v55 = vperm.slane %v1599_v40, %v6654_v2 }
 0x482   : > { %v1619_v48 = vsel %vm1369_vm6, %v1618_v43, %v1611_v42  ;;  %v1604_v63 = vrot.slane %v1603_v55, 4  ;;  %v1629_v11 = vshrl.u32 %v1603_v55, 16 }
 0x483   : > { %v1623_v35 = vperm.slane %v1619_v48, %v6654_v2 }
 0x485   : > { %v1624_v58 = vrot.slane %v1623_v35, 4  ;;  %v1628_v10 = vpack.i.b16 %v1623_v35, %v1603_v55 }
 0x487   : > { %v1625_v12 = vsel %vm1369_vm6, 0, %v1624_v58 }
 0x488   : > { %v1636_v19 = vshrl.u32 %v1625_v12, 16 }
 0x49f   : > { %v5465_v15 = vpop.trf.xlu2 }
 0x4a0   : > { %v1982_v20 = vrot.slane %v5465_v15, 4 }
 0x4a7   : > { %v5466_v44 = vpop.trf.xlu2 }
 0x4a8   : > { %v2002_v38 = vrot.slane %v5466_v44, 4 }
 0x4ad   : > { %v5471_v57 = vpop.trf.xlu1 }
 0x4ae   : > { %v1988_v5 = vrot.slane %v5471_v57, 4 }
 0x4af   : > { %v5468_v4 = vpop.trf.xlu0 }
 0x4b0   : > { %v1989_v16 = vsel %vm1369_vm6, %v1988_v5, %v5468_v4  ;;  %v1630_v4 = vshrl.u32 %v1623_v35, 16 }
 0x4b1   : > { %v1993_v22 = vperm.slane %v1989_v16, %v6645_v52  ;;  %v1605_v16 = vsel %vm1369_vm6, 0, %v1604_v63  ;;  %v6083_v63 = vmov -1e+30  }
 0x4b2   : > { %v1631_v15 = vpack.i.b16 %v1630_v4, %v1629_v11  ;;  %v1634_v18 = vpack.i.b16 %v1625_v12, %v1605_v16  ;;  %v1635_v21 = vshrl.u32 %v1605_v16, 16 }
 0x4b3   : > { %v1994_v32 = vrot.slane %v1993_v22, 4 }
 0x4b4   : > { %v1637_v23 = vpack.i.b16 %v1636_v19, %v1635_v21 }
 0x4b5   : > { %v5472_v8 = vpop.trf.xlu1 }
 0x4b6   : > { %v2008_v25 = vrot.slane %v5472_v8, 4 }
 0x4b7   : > { %v5469_v27 = vpop.trf.xlu0 }
 0x4b8   : > { %v2009_v36 = vsel %vm1369_vm6, %v2008_v25, %v5469_v27 }
 0x4b9   : > { %v2013_v39 = vperm.slane %v2009_v36, %v6645_v52 }
 0x4bb   : > { %v2014_v51 = vrot.slane %v2013_v39, 4 }
 0x4bd   : > { %v5474_v28 = vpop.trf.xlu1 }
 0x4be   : > { %v1983_v30 = vsel %vm1369_vm6, %v1982_v20, %v5474_v28 }
 0x4bf   : > { %v1987_v33 = vperm.slane %v1983_v30, %v6645_v52 }
 0x4c1   : > { %v1995_v41 = vsel %vm1369_vm6, %v1994_v32, %v1987_v33  ;;  %v5483_v20 = vpop.permute.xlu2 %5482 }
 0x4c2   : > { %v1999_v47 = vperm.slane %v1995_v41, %v6654_v2  ;;  %v5484_v22 = vunpack.i.l.bf16 %v5483_v20  ;;  %v5485_v24 = vunpack.i.h.bf16 %v5483_v20 }
 0x4c4   : > { %v2000_v54 = vrot.slane %v1999_v47, 4  ;;  %v2025_v57 = vshrl.u32 %v1999_v47, 16  ;;  %v1533_v26 = vrot.slane %v5484_v22, 4  ;;  %v1521_v29 = vrot.slane %v5485_v24, 4 }
 0x4c5   : > { %v5475_v49 = vpop.trf.xlu1 }
 0x4c6   : > { %v2003_v50 = vsel %vm1369_vm6, %v2002_v38, %v5475_v49  ;;  %v2001_v61 = vsel %vm1369_vm6, 0, %v2000_v54 }
 0x4c7   : > { %v2007_v53 = vperm.slane %v2003_v50, %v6645_v52  ;;  %v2031_v6 = vshrl.u32 %v2001_v61, 16 }
 0x4c9   : > { %v2015_v37 = vsel %vm1369_vm6, %v2014_v51, %v2007_v53 }
 0x4ca   : > { %v2019_v56 = vperm.slane %v2015_v37, %v6654_v2 }
 0x4cc   : > { %v2024_v59 = vpack.i.b16 %v2019_v56, %v1999_v47  ;;  %v2026_v60 = vshrl.u32 %v2019_v56, 16  ;;  %v2020_v62 = vrot.slane %v2019_v56, 4 }
 0x4ce   : > { %v2040_v0 = vsel %vm2038_vm7, %v2024_v59, 0  ;;  %v2027_v1 = vpack.i.b16 %v2026_v60, %v2025_v57  ;;  %v2021_v3 = vsel %vm1369_vm6, 0, %v2020_v62  ;;  %v1352_v59 = vlaneseq }
 0x4cf   : > { %2049 = vmatpush.bf16.msra.mxu1 %v2040_v0  ;;  %v2030_v5 = vpack.i.b16 %v2021_v3, %v2001_v61  ;;  %v2032_v7 = vshrl.u32 %v2021_v3, 16 }
 0x4d0   : > { %v2059_v8 = vsel %vm2038_vm7, %v2027_v1, 0  ;;  %v1353_v61 = vshrl.u32 %v1352_v59, 7  ;;  %v1355_v62 = vand.u32 127, %v1352_v59 }
 0x4d1   : > { %2068 = vmatpush.bf16.msra.mxu2 %v2059_v8  ;;  %v2078_v13 = vsel %vm2038_vm7, %v2030_v5, 0  ;;  %v2033_v14 = vpack.i.b16 %v2032_v7, %v2031_v6 }
 0x4d2   : > { %5178 = vmatmul.msk.bf16.vlgmr.msra.gmra.mxu1 %vm2034_vm8, %v1628_v10  ;;  %2087 = vmatpush.bf16.msra.mxu3 %v2078_v13  ;;  %vm1356_vm9 = vcmp.le.s32.totalorder %v1355_v62, %v1353_v61 }
 0x4d3   : > { %v2097_v17 = vsel %vm2038_vm7, %v2033_v14, 0  ;;  %v1357_v0 = vsel %vm1356_vm9, 0.0, %v6083_v63 }
 0x4d4   : > { %5179 = vmatmul.msk.bf16.vlgmr.msra.gmra.mxu2 %vm2034_vm8, %v1631_v15  ;;  %2106 = vmatpush.bf16.msrb.mxu1 %v2097_v17 }
 0x4d5   : > { %5180 = vmatmul.msk.bf16.vlgmr.msra.gmra.mxu3 %vm2034_vm8, %v1634_v18 }
 0x4e2   : > { %5181 = vmatmul.msk.bf16.vlgmr.msrb.gmra.mxu1 %vm2034_vm8, %v1637_v23 }
 0x4e3   : > { %v5478_v25 = vpop.permute.xlu0 %5477 }
 0x4e4   : > { %v5480_v27 = vunpack.i.h.bf16 %v5478_v25  ;;  %v5479_v28 = vunpack.i.l.bf16 %v5478_v25 }
 0x4e6   : > { %v1523_v30 = vrot.slane %v5480_v27, 4  ;;  %v1534_v31 = vsel %vm1369_vm6, %v1533_v26, %v5479_v28  ;;  %v1535_v32 = vrot.slane %v5479_v28, 4  ;;  %v1522_v33 = vsel %vm1369_vm6, %v1521_v29, %v5480_v27 }
 0x4e7   : > { %v1540_v34 = vperm.slane %v1534_v31, %v6645_v52  ;;  %v1528_v38 = vperm.slane %v1522_v33, %v6645_v52 }
 0x4e8   : > { %v1524_v36 = vsel %vm1369_vm6, %v5485_v24, %v1523_v30  ;;  %v1536_v42 = vsel %vm1369_vm6, %v5484_v22, %v1535_v32 }
 0x4e9   : > { %v1532_v43 = vperm.slane %v1524_v36, %v6645_v52  ;;  %v1544_v44 = vperm.slane %v1536_v42, %v6645_v52  ;;  %v1545_v41 = vrot.slane %v1540_v34, 4  ;;  %v1547_v40 = vrot.slane %v1528_v38, 4 }
 0x4eb   : > { %v1559_v45 = vrot.slane %v1532_v43, 4  ;;  %v1557_v46 = vrot.slane %v1544_v44, 4  ;;  %v1546_v39 = vsel %vm1369_vm6, %v1545_v41, %v1528_v38  ;;  %v1548_v54 = vsel %vm1369_vm6, %v1540_v34, %v1547_v40 }
 0x4ec   : > { %v1556_v37 = vperm.slane %v1548_v54, %v6654_v2  ;;  %v1552_v18 = vperm.slane %v1546_v39, %v6654_v2 }
 0x4ed   : > { %v1558_v47 = vsel %vm1369_vm6, %v1557_v46, %v1532_v43  ;;  %v1560_v48 = vsel %vm1369_vm6, %v1544_v44, %v1559_v45 }
 0x4ee   : > { %v1564_v49 = vperm.slane %v1558_v47, %v6654_v2  ;;  %v1571_v55 = vrot.slane %v1556_v37, 4  ;;  %v1579_v57 = vpack.c.bf16 %v1556_v37, %v1556_v37  ;;  %v1568_v19 = vperm.slane %v1560_v48, %v6654_v2 }
 0x4ef   : > { %v1569_v20 = vrot.slane %v1552_v18, 4  ;;  %v1577_v24 = vpack.c.bf16 %v1552_v18, %v1552_v18 }
 0x4f0   : > { %v1573_v50 = vrot.slane %v1564_v49, 4  ;;  %v1581_v53 = vpack.c.bf16 %v1564_v49, %v1564_v49  ;;  %v1572_v56 = vsel %vm1369_vm6, 0.0, %v1571_v55  ;;  %v1575_v21 = vrot.slane %v1568_v19, 4 }
 0x4f1   : > { %v1580_v58 = vpack.c.bf16 %v1572_v56, %v1572_v56  ;;  %v1570_v22 = vsel %vm1369_vm6, 0.0, %v1569_v20  ;;  %v1583_v26 = vpack.c.bf16 %v1568_v19, %v1568_v19 }
 0x4f2   : > { %v1574_v51 = vsel %vm1369_vm6, 0.0, %v1573_v50  ;;  %v1576_v23 = vsel %vm1369_vm6, 0.0, %v1575_v21  ;;  %v1578_v25 = vpack.c.bf16 %v1570_v22, %v1570_v22 }
 0x4f3   : > { %v1582_v35 = vpack.c.bf16 %v1574_v51, %v1574_v51  ;;  %v1584_v27 = vpack.c.bf16 %v1576_v23, %v1576_v23 }
 0x4f5   : > { %5486 = vxpose.binary.xlu1.c.b16.start.end [1/2] (short) (narrow) %v1582_v35, %v1581_v53, 16 }
 0x505   : > { %5495 = vxpose.binary.xlu1.c.b16.start.end [1/2] (short) (narrow) %v1580_v58, %v1579_v57, 16 }
 0x54f   : > { %v2051_v60 = vpop.f32.mrf.mxu1 }
 0x550   : > { %v2052_v12 = vadd.f32 %v2051_v60, %v1357_v0 }
 0x552   : > { %v2112_v14 = vsel %vm2034_vm8, %v2052_v12, -inf }
 0x557   : > { %v2053_v1 = vpop.f32.mrf.mxu1  ;;  %v2070_v3 = vpop.f32.mrf.mxu2 }
 0x558   : > { %v2071_v4 = vadd.f32 %v2070_v3, %v1357_v0  ;;  %v2089_v5 = vpop.f32.mrf.mxu3 }
 0x559   : > { %v2090_v6 = vadd.f32 %v2089_v5, %v1357_v0 }
 0x55a   : > { %v2115_v7 = vsel %vm2034_vm8, %v2071_v4, -inf }
 0x55b   : > { %2116 = vmax.xlane.f32.xlu2 %v2115_v7  ;;  %v2118_v8 = vsel %vm2034_vm8, %v2090_v6, -inf }
 0x55c   : > { %2119 = vmax.xlane.f32.xlu0 %v2118_v8 }
 0x55f   : > { %v2072_v10 = vpop.f32.mrf.mxu2  ;;  %v2108_v11 = vpop.f32.mrf.mxu1 }
 0x560   : > { %v2091_v13 = vpop.f32.mrf.mxu3  ;;  %v2109_v16 = vadd.f32 %v2108_v11, %v1357_v0 }
 0x562   : > { %v2121_v17 = vsel %vm2034_vm8, %v2109_v16, -inf }
 0x565   : > { %2113 = vmax.xlane.f32.xlu1 %v2112_v14 }
 0x567   : > { %v2110_v15 = vpop.f32.mrf.mxu1 }
 0x56d   : > { %2122 = vmax.xlane.f32.xlu1 %v2121_v17 }
 0x584   : > { %5489 = vxpose.binary.xlu2.c.b16.start.end [1/2] (short) (narrow) %v1578_v25, %v1577_v24, 16 }
 0x585   : > { %5492 = vxpose.binary.xlu0.c.b16.start.end [1/2] (short) (narrow) %v1584_v27, %v1583_v26, 16 }
 0x5a1   : > { %v5487_v28 = vpop.trf.xlu1 }
 0x5a2   : > { %v2288_v37 = vrot.slane %v5487_v28, 4 }
 0x5a9   : > { %v5488_v29 = vpop.trf.xlu1 }
 0x5aa   : > { %v2316_v60 = vrot.slane %v5488_v29, 4 }
 0x5b1   : > { %v5496_v30 = vpop.trf.xlu1 }
 0x5b9   : > { %v5497_v31 = vpop.trf.xlu1 }
 0x5ce   : > { %v2117_v41 = vpop.xlane.xlu2 %2116 }
 0x5cf   : > { %v2120_v32 = vpop.xlane.xlu0 %2119  ;;  %v2125_v39 = vsub.f32 %v2071_v4, %v2117_v41 }
 0x5d0   : > { %v2126_v33 = vsub.f32 %v2090_v6, %v2120_v32 }
 0x5d1   : > { %v2130_v48 = vmul.f32 1.442695, %v2125_v39 }
 0x5d2   : > { %v2132_v34 = vmul.f32 1.442695, %v2126_v33 }
 0x5d4   : > { %5618 = vpow2.f32 %v2132_v34 }
 0x5d8   : > { %v2114_v36 = vpop.xlane.xlu1 %2113 }
 0x5d9   : > { %v2124_v45 = vsub.f32 %v2052_v12, %v2114_v36 }
 0x5da   : > { %v6779_v42 = vpop.eup %5618 }
 0x5db   : > { %v2142_v43 = vsel %vm2034_vm8, %v6779_v42, 0.0  ;;  %v2128_v47 = vmul.f32 1.442695, %v2124_v45 }
 0x5dc   : > { %2143 = vadd.xlane.f32.xlu1 %v2142_v43 }
 0x5e0   : > { %v2123_v44 = vpop.xlane.xlu1 %2122 }
 0x5e1   : > { %v2127_v38 = vsub.f32 %v2109_v16, %v2123_v44 }
 0x5e3   : > { %v2134_v46 = vmul.f32 1.442695, %v2127_v38 }
 0x5e5   : > { %5620 = vpow2.f32 %v2134_v46 }
 0x5e6   : > { %5622 = vpow2.f32 %v2128_v47 }
 0x5e7   : > { %5624 = vpow2.f32 %v2130_v48 }
 0x5eb   : > { %v6783_v49 = vpop.eup %5620 }
 0x5ec   : > { %v2145_v50 = vsel %vm2034_vm8, %v6783_v49, 0.0  ;;  %v6787_v40 = vpop.eup %5622 }
 0x5ed   : > { %2146 = vadd.xlane.f32.xlu1 %v2145_v50  ;;  %v6789_v51 = vpop.eup %5624  ;;  %v2136_v53 = vsel %vm2034_vm8, %v6787_v40, 0.0 }
 0x5ee   : > { %v2139_v35 = vsel %vm2034_vm8, %v6789_v51, 0.0 }
 0x5f5   : > { %2137 = vadd.xlane.f32.xlu2 %v2136_v53 }
 0x5f6   : > { %2140 = vadd.xlane.f32.xlu0 %v2139_v35 }
 0x625   : > { %v5490_v54 = vpop.trf.xlu2 }
 0x626   : > { %v2289_v55 = vsel %vm1369_vm6, %v2288_v37, %v5490_v54 }
 0x627   : > { %v2293_v56 = vperm.slane %v2289_v55, %v6645_v52 }
 0x629   : > { %v2302_v62 = vrot.slane %v2293_v56, 4 }
 0x62d   : > { %v5491_v59 = vpop.trf.xlu2 }
 0x62e   : > { %v2317_v0 = vsel %vm1369_vm6, %v2316_v60, %v5491_v59 }
 0x62f   : > { %v2321_v4 = vperm.slane %v2317_v0, %v6645_v52 }
 0x631   : > { %v5493_v57 = vpop.trf.xlu0  ;;  %v2330_v12 = vrot.slane %v2321_v4, 4 }
 0x632   : > { %v2294_v58 = vrot.slane %v5493_v57, 4 }
 0x634   : > { %v2295_v61 = vsel %vm1369_vm6, %v2294_v58, %v5496_v30 }
 0x635   : > { %v2299_v63 = vperm.slane %v2295_v61, %v6645_v52 }
 0x637   : > { %v2300_v1 = vrot.slane %v2299_v63, 4  ;;  %v2303_v3 = vsel %vm1369_vm6, %v2299_v63, %v2302_v62 }
 0x638   : > { %v2311_v6 = vperm.slane %v2303_v3, %v6654_v2 }
 0x639   : > { %v2301_v5 = vsel %vm1369_vm6, %v2300_v1, %v2293_v56  ;;  %v5494_v7 = vpop.trf.xlu0 }
 0x63a   : > { %v2322_v8 = vrot.slane %v5494_v7, 4  ;;  %v2307_v10 = vperm.slane %v2301_v5, %v6654_v2  ;;  %v2314_v14 = vrot.slane %v2311_v6, 4  ;;  %v2364_v20 = vshrl.u32 %v2311_v6, 16 }
 0x63c   : > { %v2323_v11 = vsel %vm1369_vm6, %v2322_v8, %v5497_v31  ;;  %v2312_v17 = vrot.slane %v2307_v10, 4  ;;  %v2315_v21 = vsel %vm1369_vm6, 0, %v2314_v14  ;;  %v2348_v27 = vshrl.u32 %v2307_v10, 16 }
 0x63d   : > { %v2327_v13 = vperm.slane %v2323_v11, %v6645_v52  ;;  %v2372_v33 = vshrl.u32 %v2315_v21, 16 }
 0x63e   : > { %v2313_v26 = vsel %vm1369_vm6, 0, %v2312_v17 }
 0x63f   : > { %v2328_v15 = vrot.slane %v2327_v13, 4  ;;  %v2331_v16 = vsel %vm1369_vm6, %v2327_v13, %v2330_v12  ;;  %v2356_v44 = vshrl.u32 %v2313_v26, 16 }
 0x640   : > { %v2339_v18 = vperm.slane %v2331_v16, %v6654_v2 }
 0x641   : > { %v2329_v19 = vsel %vm1369_vm6, %v2328_v15, %v2321_v4 }
 0x642   : > { %v2335_v22 = vperm.slane %v2329_v19, %v6654_v2  ;;  %v2362_v23 = vpack.i.b16 %v2339_v18, %v2311_v6  ;;  %v2365_v24 = vshrl.u32 %v2339_v18, 16  ;;  %v2342_v25 = vrot.slane %v2339_v18, 4 }
 0x644   : > { %v2366_v28 = vpack.i.b16 %v2365_v24, %v2364_v20  ;;  %v2343_v29 = vsel %vm1369_vm6, 0, %v2342_v25  ;;  %v2340_v30 = vrot.slane %v2335_v22, 4  ;;  %v2346_v31 = vpack.i.b16 %v2335_v22, %v2307_v10 }
 0x645   : > { %v2370_v32 = vpack.i.b16 %v2343_v29, %v2315_v21  ;;  %v2373_v34 = vshrl.u32 %v2343_v29, 16  ;;  %v2349_v36 = vshrl.u32 %v2335_v22, 16 }
 0x646   : > { %5504 = vxpose.binary.xlu0.c.b16.start.end [1/2] (short) (narrow) %v2366_v28, %v2362_v23, 16  ;;  %v2341_v43 = vsel %vm1369_vm6, 0, %v2340_v30 }
 0x647   : > { %v2374_v41 = vpack.i.b16 %v2373_v34, %v2372_v33  ;;  %v2354_v38 = vpack.i.b16 %v2341_v43, %v2313_v26  ;;  %v2357_v45 = vshrl.u32 %v2341_v43, 16  ;;  %v2350_v46 = vpack.i.b16 %v2349_v36, %v2348_v27 }
 0x649   : > { %5498 = vxpose.binary.xlu1.c.b16.start.end [1/2] (short) (narrow) %v2374_v41, %v2370_v32, 16  ;;  %v2358_v39 = vpack.i.b16 %v2357_v45, %v2356_v44 }
 0x64b   : > { %5501 = vxpose.binary.xlu2.c.b16.start.end [1/2] (short) (narrow) %v2358_v39, %v2354_v38, 16 }
 0x64f   : > { %v2144_v47 = vpop.xlane.xlu1 %2143 }
 0x650   : > { %5626 = vrcp.f32 %v2144_v47 }
 0x656   : > { %v5627_v48 = vpop.eup %5626 }
 0x657   : > { %v2154_v50 = vmul.f32 %v5627_v48, %v6779_v42 }
 0x659   : > { %v2158_v53 = vpack.c.bf16 %v2154_v50, %v2154_v50 }
 0x65b   : > { %5507 = vxpose.binary.xlu2.c.b16.start.end [1/2] (short) (narrow) %v2350_v46, %v2346_v31, 16  ;;  %v2598_v35 = vsel %vm2034_vm8, %v2158_v53, 0 }
 0x65c   : > { %2607 = vmatpush.bf16.xpose.msrb.mxu0 %v2598_v35 }
 0x660   : > { %v2147_v54 = vpop.xlane.xlu1 %2146 }
 0x661   : > { %5628 = vrcp.f32 %v2147_v54 }
 0x667   : > { %v5629_v37 = vpop.eup %5628 }
 0x668   : > { %v2138_v55 = vpop.xlane.xlu2 %2137  ;;  %v2155_v56 = vmul.f32 %v5629_v37, %v6783_v49 }
 0x669   : > { %5630 = vrcp.f32 %v2138_v55  ;;  %v2141_v57 = vpop.xlane.xlu0 %2140 }
 0x66a   : > { %5632 = vrcp.f32 %v2141_v57  ;;  %v2159_v58 = vpack.c.bf16 %v2155_v56, %v2155_v56 }
 0x66c   : > { %v2617_v59 = vsel %vm2034_vm8, %v2159_v58, 0 }
 0x66d   : > { %2626 = vmatpush.bf16.xpose.msra.mxu1 %v2617_v59 }
 0x66f   : > { %v5631_v60 = vpop.eup %5630 }
 0x670   : > { %v5633_v42 = vpop.eup %5632  ;;  %v2152_v61 = vmul.f32 %v5631_v60, %v6787_v40 }
 0x671   : > { %v2153_v62 = vmul.f32 %v5633_v42, %v6789_v51 }
 0x672   : > { %v2156_v63 = vpack.c.bf16 %v2152_v61, %v2152_v61 }
 0x673   : > { %v2157_v0 = vpack.c.bf16 %v2153_v62, %v2153_v62 }
 0x674   : > { %v2560_v1 = vsel %vm2034_vm8, %v2156_v63, 0 }
 0x675   : > { %2569 = vmatpush.bf16.xpose.msrb.mxu2 %v2560_v1  ;;  %v2579_v49 = vsel %vm2034_vm8, %v2157_v0, 0 }
 0x676   : > { %2588 = vmatpush.bf16.xpose.msrb.mxu3 %v2579_v49 }
 0x6ec   : > { %v5502_v3 = vpop.trf.xlu2 }
 0x6f2   : > { %v5505_v5 = vpop.trf.xlu0 }
 0x6f3   : > { %v2504_v10 = vrot.slane %v5505_v5, 4 }
 0x6f4   : > { %v5503_v4 = vpop.trf.xlu2 }
 0x6f5   : > { %v5499_v6 = vpop.trf.xlu1 }
 0x6f6   : > { %v2510_v7 = vrot.slane %v5499_v6, 4 }
 0x6f8   : > { %v2511_v8 = vsel %vm1369_vm6, %v2510_v7, %v5502_v3 }
 0x6f9   : > { %v2515_v40 = vperm.slane %v2511_v8, %v6645_v52 }
 0x6fa   : > { %v5506_v16 = vpop.trf.xlu0 }
 0x6fb   : > { %v2516_v13 = vrot.slane %v2515_v40, 4  ;;  %v2524_v19 = vrot.slane %v5506_v16, 4 }
 0x6fc   : > { %v5508_v11 = vpop.trf.xlu2 }
 0x6fd   : > { %v2505_v51 = vsel %vm1369_vm6, %v2504_v10, %v5508_v11  ;;  %v5500_v12 = vpop.trf.xlu1 }
 0x6fe   : > { %v2509_v14 = vperm.slane %v2505_v51, %v6645_v52  ;;  %v2530_v15 = vrot.slane %v5500_v12, 4 }
 0x700   : > { %v2517_v17 = vsel %vm1369_vm6, %v2516_v13, %v2509_v14  ;;  %v2531_v18 = vsel %vm1369_vm6, %v2530_v15, %v5503_v4 }
 0x701   : > { %v2535_v20 = vperm.slane %v2531_v18, %v6645_v52  ;;  %v2521_v21 = vperm.slane %v2517_v17, %v6654_v2 }
 0x703   : > { %v2536_v24 = vrot.slane %v2535_v20, 4  ;;  %v2522_v26 = vrot.slane %v2521_v21, 4  ;;  %v2547_v29 = vshrl.u32 %v2521_v21, 16 }
 0x704   : > { %v5509_v22 = vpop.trf.xlu2 }
 0x705   : > { %v2525_v23 = vsel %vm1369_vm6, %v2524_v19, %v5509_v22  ;;  %v2523_v32 = vsel %vm1369_vm6, 0, %v2522_v26 }
 0x706   : > { %v2529_v25 = vperm.slane %v2525_v23, %v6645_v52  ;;  %v2553_v44 = vshrl.u32 %v2523_v32, 16 }
 0x708   : > { %v2537_v27 = vsel %vm1369_vm6, %v2536_v24, %v2529_v25 }
 0x709   : > { %v2541_v28 = vperm.slane %v2537_v27, %v6654_v2 }
 0x70b   : > { %v2546_v30 = vpack.i.b16 %v2541_v28, %v2521_v21  ;;  %v2548_v31 = vshrl.u32 %v2541_v28, 16  ;;  %v2542_v33 = vrot.slane %v2541_v28, 4 }
 0x70d   : > { %5182 = vmatmul.msk.bf16.vlgmr.msrb.gmra.mxu2 %vm2034_vm8, %v2546_v30  ;;  %v2549_v34 = vpack.i.b16 %v2548_v31, %v2547_v29  ;;  %v2543_v36 = vsel %vm1369_vm6, 0, %v2542_v33 }
 0x70e   : > { %v2552_v43 = vpack.i.b16 %v2543_v36, %v2523_v32  ;;  %v2554_v41 = vshrl.u32 %v2543_v36, 16 }
 0x70f   : > { %5183 = vmatmul.msk.bf16.vlgmr.msrb.gmra.mxu3 %vm2034_vm8, %v2549_v34 }
 0x710   : > { %v2555_v38 = vpack.i.b16 %v2554_v41, %v2553_v44  ;;  %5184 = vmatmul.msk.bf16.vlgmr.msrb.gmra.mxu0 %vm2034_vm8, %v2552_v43 }
 0x712   : > { %5185 = vmatmul.msk.bf16.vlgmr.msra.gmra.mxu1 %vm2034_vm8, %v2555_v38 }
 0x78d   : > { %v2609_v45 = vpop.f32.mrf.mxu0 }
 0x78f   : > { %v2628_v46 = vpop.f32.mrf.mxu1 }
 0x790   : > { %v2571_v39 = vpop.f32.mrf.mxu2 }
 0x791   : > { %v5510_v47 = vpack.i.bf16 %v2571_v39, %v2609_v45 }
 0x792   : > { %v2590_v48 = vpop.f32.mrf.mxu3 }
 0x793   : > { %v5517_v50 = vpack.i.bf16 %v2590_v48, %v2628_v46  ;;  %5511 = vxpose.xlu0.b32.start.end [1/1] (short) (narrow) %v5510_v47, 8 }
 0x795   : > { %5518 = vxpose.xlu1.b32.start.end [1/1] (short) (narrow) %v5517_v50, 8  ;;  %v2611_v53 = vpop.f32.mrf.mxu0 }
 0x797   : > { %v2630_v35 = vpop.f32.mrf.mxu1 }
 0x798   : > { %v2573_v54 = vpop.f32.mrf.mxu2 }
 0x79a   : > { %v2592_v37 = vpop.f32.mrf.mxu3 }
 0x837   : > { %v5512_v55 = vpop.trf.xlu0 }
 0x838   : > { %v5516_v56 = vunpack.i.h.bf16 %v5512_v55  ;;  %v5513_v57 = vunpack.i.l.bf16 %v5512_v55 }
 0x839   : > { %v5519_v58 = vpop.trf.xlu1 }
 0x83a   : > { %v2762_v59 = vrot.slane %v5516_v56, 4  ;;  %v2760_v60 = vrot.slane %v5513_v57, 4  ;;  %v5523_v42 = vunpack.i.h.bf16 %v5519_v58  ;;  %v5520_v61 = vunpack.i.l.bf16 %v5519_v58 }
 0x83c   : > { %v2761_v62 = vsel %vm1369_vm6, %v2760_v60, %v5516_v56  ;;  %v2763_v63 = vsel %vm1369_vm6, %v5513_v57, %v2762_v59  ;;  %v2774_v0 = vrot.slane %v5523_v42, 4  ;;  %v2772_v3 = vrot.slane %v5520_v61, 4 }
 0x83d   : > { %v2767_v1 = vperm.slane %v2761_v62, %v6645_v52  ;;  %v2771_v49 = vperm.slane %v2763_v63, %v6645_v52  ;;  %v5270_v62 = vld [vmem:[%s6547_s4] sm:$0xff] }
 0x83e   : > { %v2775_v4 = vsel %vm1369_vm6, %v5520_v61, %v2774_v0  ;;  %v2773_v7 = vsel %vm1369_vm6, %v2772_v3, %v5523_v42  ;;  %v5271_v61 = vld [vmem:[%s6547_s4 + $0x8] sm:$0xff]  ;;  %s7463_s4 = scalar_lea.vmem [#allocation10], %s6503_s24 }
 0x83f   : > { %v2786_v5 = vrot.slane %v2767_v1, 4  ;;  %v2798_v6 = vrot.slane %v2771_v49, 4  ;;  %v2783_v8 = vperm.slane %v2775_v4, %v6645_v52  ;;  %v2779_v10 = vperm.slane %v2773_v7, %v6645_v52  ;;  %2917 = vmatpush.bf16.msra.mxu2 %v5271_v61 }
 0x841   : > { %v2796_v40 = vrot.slane %v2783_v8, 4  ;;  %v2799_v11 = vsel %vm1369_vm6, %v2783_v8, %v2798_v6  ;;  %v2784_v51 = vrot.slane %v2779_v10, 4  ;;  %v2787_v12 = vsel %vm1369_vm6, %v2779_v10, %v2786_v5  ;;  %v5604_v6 = vld [vmem:[%s7456_s6] ss:$0 sm:$0xff]  ;;  %v5654_v10 = vld [vmem:[%s6594_s28] sm:$0xff] }
 0x842   : > { %v2807_v13 = vperm.slane %v2799_v11, %v6654_v2  ;;  %v2795_v14 = vperm.slane %v2787_v12, %v6654_v2  ;;  %v5275_v12 = vld [vmem:[%s7457_s30 + $0x8] sm:$0xff]  ;;  %s7464_s30 = sld [smem:[#allocation53_spill]] }
 0x843   : > { %v2797_v15 = vsel %vm1369_vm6, %v2796_v40, %v2771_v49  ;;  %v2785_v16 = vsel %vm1369_vm6, %v2784_v51, %v2767_v1  ;;  %2918 = vmatpush.bf16.msra.mxu2 %v5270_v62  ;;  %3025 = vmatpush.bf16.msra.mxu0 %v5275_v12 }
 0x844   : > { %v2803_v17 = vperm.slane %v2797_v15, %v6654_v2  ;;  %v2814_v18 = vrot.slane %v2807_v13, 4  ;;  %v2791_v19 = vperm.slane %v2785_v16, %v6654_v2  ;;  %v2810_v20 = vrot.slane %v2795_v14, 4  ;;  %v5274_v13 = vld [vmem:[%s7458_s21] sm:$0xff]  ;;  %v2957_v14 = vld [vmem:[%s7459_s15] sm:$0xff] }
 0x845   : > { %v2995_v15 = vpack.c.bf16 %v2957_v14, %v2957_v14 }
 0x846   : > { %v2812_v21 = vrot.slane %v2803_v17, 4  ;;  %v2815_v22 = vsel %vm1369_vm6, 0.0, %v2814_v18  ;;  %v2827_v23 = vsel %vm1369_vm6, %v2814_v18, %v2803_v17  ;;  %v2811_v24 = vsel %vm1369_vm6, 0.0, %v2810_v20 }
 0x847   : > { %v2808_v25 = vrot.slane %v2791_v19, 4  ;;  %v2816_v26 = vsel %vm1369_vm6, %v2810_v20, %v2791_v19  ;;  %v2831_v27 = vperm.slane %v2827_v23, %v6645_v52  ;;  %v2821_v30 = vrot.slane %v2811_v24, 4  ;;  %3026 = vmatpush.bf16.msra.mxu0 %v5274_v13 }
 0x848   : > { %v2813_v28 = vsel %vm1369_vm6, 0.0, %v2812_v21  ;;  %v2820_v29 = vperm.slane %v2816_v26, %v6645_v52  ;;  %v2832_v31 = vrot.slane %v2815_v22, 4  ;;  %v5273_v21 = vld [vmem:[%s6560_s18 + $0x8] sm:$0xff]  ;;  %v5606_v22 = vld [vmem:[%s1248_s7] ss:$0 sm:$0xff]  ;;  %s7465_s21 = scalar_lea.vmem %s7464_s30, %s6532_s22 }
 0x849   : > { %v2809_v32 = vsel %vm1369_vm6, 0.0, %v2808_v25  ;;  %v2852_v33 = vrot.slane %v2831_v27, 4  ;;  %2988 = vmatpush.bf16.msra.mxu3 %v5273_v21  ;;  %v5272_v25 = vld [vmem:[%s6560_s18] sm:$0xff] }
 0x84a   : > { %v2822_v34 = vsel %vm1369_vm6, %v2821_v30, %v2809_v32  ;;  %v2833_v36 = vsel %vm1369_vm6, %v2832_v31, %v2813_v28  ;;  %v2840_v43 = vrot.slane %v2820_v29, 4  ;;  %5212 = vmatmul.msk.bf16.vlgmr.msra.gmra.mxu0 %vm1277_vm1, %v2995_v15 }
 0x84b   : > { %v2826_v44 = vperm.slane %v2822_v34, %v6645_v52  ;;  %v2837_v41 = vperm.slane %v2833_v36, %v6645_v52 }
 0x84d   : > { %v2841_v38 = vsel %vm1369_vm6, %v2826_v44, %v2840_v43  ;;  %v2853_v45 = vsel %vm1369_vm6, %v2837_v41, %v2852_v33  ;;  %v2838_v46 = vrot.slane %v2826_v44, 4  ;;  %v2850_v39 = vrot.slane %v2837_v41, 4  ;;  %2989 = vmatpush.bf16.msra.mxu3 %v5272_v25  ;;  %v5605_v43 = vld [vmem:[%s7462_s29] ss:$0 sm:$0xff] }
 0x84e   : > { %v2849_v47 = vperm.slane %v2841_v38, %v6654_v2  ;;  %v2861_v48 = vperm.slane %v2853_v45, %v6654_v2  ;;  %v5607_v38 = vld [vmem:[%s7463_s4] ss:$0 sm:$0xff] }
 0x84f   : > { %v2839_v50 = vsel %vm1369_vm6, %v2838_v46, %v2820_v29  ;;  %v2851_v53 = vsel %vm1369_vm6, %v2850_v39, %v2831_v27 }
 0x850   : > { %v2868_v35 = vrot.slane %v2849_v47, 4  ;;  %v2866_v54 = vrot.slane %v2861_v48, 4  ;;  %v2845_v37 = vperm.slane %v2839_v50, %v6654_v2  ;;  %v2857_v55 = vperm.slane %v2851_v53, %v6654_v2 }
 0x852   : > { %v2869_v56 = vsel %vm1369_vm6, %v2861_v48, %v2868_v35  ;;  %v2867_v57 = vsel %vm1369_vm6, %v2866_v54, %v2849_v47  ;;  %v2862_v58 = vrot.slane %v2857_v55, 4  ;;  %v2864_v59 = vrot.slane %v2845_v37, 4  ;;  %v5608_v47 = vld [vmem:[%s7465_s21] ss:$0 sm:$0xff] }
 0x853   : > { %2879 = vrot.lane.b32.xlu1 %v2869_v56, %s6084_s27  ;;  %2875 = vrot.lane.b32.xlu0 %v2867_v57, %s6085_s25 }
 0x854   : > { %v2865_v60 = vsel %vm1369_vm6, %v2857_v55, %v2864_v59  ;;  %v2863_v42 = vsel %vm1369_vm6, %v2862_v58, %v2845_v37 }
 0x855   : > { %2871 = vrot.lane.b32.xlu2 %v2865_v60, %s6086_s8 }
 0x8af   : > { %v2872_v63 = vpop.permute.xlu2 %2871 }
 0x8b0   : > { %v2882_v0 = vsel %vm2034_vm8, %v2863_v42, %v2872_v63 }
 0x8c5   : > { %v2880_v1 = vpop.permute.xlu1 %2879  ;;  %v2876_v49 = vpop.permute.xlu0 %2875 }
 0x8c6   : > { %v2884_v3 = vsel %vm2883_vm10, %v2882_v0, %v2876_v49 }
 0x8c7   : > { %v2886_v4 = vsel %vm2885_vm11, %v2884_v3, %v2880_v1  ;;  %v3028_v23 = vpop.f32.mrf.mxu0 }
 0x8c8   : > { %v2887_v5 = vpack.c.bf16 %v2886_v4, %v2886_v4  ;;  %v6916_v24 = vadd.f32 %v5606_v22, %v3028_v23 }
 0x8ca   : > { %5194 = vmatmul.msk.bf16.vlgmr.msra.gmra.mxu2 %vm1277_vm1, %v2887_v5  ;;  %3113 = vrot.lane.b32.xlu0 %v6916_v24, %s6078_s13  ;;  %v3118_v55 = vrot.slane %v6916_v24, 4 }
 0x8cf   : > { %v3030_v26 = vpop.f32.mrf.mxu0 }
 0x8d2   : > { %3110 = vrot.lane.b32.xlu0 %v6916_v24, %s6076_s9 }
 0x93c   : > { %v3114_v54 = vpop.permute.xlu0 %3113 }
 0x93d   : > { %v3128_v59 = vrot.slane %v3114_v54, 4 }
 0x944   : > { %v3111_v37 = vpop.permute.xlu0 %3110 }
 0x945   : > { %v3116_v56 = vrot.slane %v3111_v37, 4  ;;  %v3119_v57 = vsel %vm1369_vm6, %v3111_v37, %v3118_v55 }
 0x946   : > { %v3127_v42 = vperm.slane %v3119_v57, %v6645_v52 }
 0x947   : > { %v3117_v61 = vsel %vm1369_vm6, %v3116_v56, %v6916_v24 }
 0x948   : > { %v3123_v49 = vperm.slane %v3117_v61, %v6645_v52  ;;  %v3154_v3 = vrot.slane %v3127_v42, 4 }
 0x94a   : > { %v3142_v23 = vrot.slane %v3123_v49, 4 }
 0x94d   : > { %v2920_v7 = vpop.f32.mrf.mxu2 }
 0x94e   : > { %v2921_v8 = vadd.f32 %v5604_v6, %v2920_v7 }
 0x950   : > { %v6896_v40 = vadd.f32 %v5654_v10, %v2921_v8 }
 0x952   : > { %v2927_v11 = vsel %vm1277_vm1, %v6896_v40, 0.0 }
 0x953   : > { %2928 = vadd.xlane.f32.xlu1 %v2927_v11 }
 0x955   : > { %v2922_v51 = vpop.f32.mrf.mxu2 }
 0x9c6   : > { %v2929_v16 = vpop.xlane.xlu1 %2928 }
 0x9c7   : > { %v2930_v17 = vmul.f32 %v2929_v16, %v6602_v9 }
 0x9c9   : > { %v2931_v18 = vsub.f32 %v6896_v40, %v2930_v17 }
 0x9cb   : > { %v2932_v19 = vmul.f32 %v2931_v18, %v2931_v18 }
 0x9cd   : > { %v2933_v20 = vsel %vm1277_vm1, %v2932_v19, 0.0 }
 0x9ce   : > { %2934 = vadd.xlane.f32.xlu2 %v2933_v20 }
 0xa41   : > { %v2935_v27 = vpop.xlane.xlu2 %2934 }
 0xa42   : > { %v2936_v28 = vmul.f32 %v2935_v27, %v6602_v9 }
 0xa44   : > { %v2937_v29 = vadd.f32 1e-05, %v2936_v28 }
 0xa46   : > { %5634 = vrsqrt.f32 %v2937_v29  ;;  %vm2944_vm13 = vweird.f32 %v2937_v29 }
 0xa4c   : > { %v5635_v30 = vpop.eup %5634 }
 0xa4d   : > { %v2939_v31 = vmul.f32 %v5635_v30, %v2937_v29  ;;  %vm2945_vm12 = vweird.f32 %v5635_v30 }
 0xa4e   : > { %vm2946_vm14 = vmor %vm2944_vm13, %vm2945_vm12 }
 0xa4f   : > { %v2940_v32 = vmul.f32 %v5635_v30, %v2939_v31 }
 0xa51   : > { %v2941_v33 = vmul.f32 0.5, %v2940_v32 }
 0xa53   : > { %v2942_v34 = vsub.f32 1.5, %v2941_v33  ;;  %v5558_v33 = vpack.i.bf16 %v3111_v37, %v3114_v54 }
 0xa55   : > { %v2943_v36 = vmul.f32 %v5635_v30, %v2942_v34 }
 0xa57   : > { %v2947_v44 = vsel %vm2946_vm14, %v5635_v30, %v2943_v36 }
 0xa58   : > { %v2948_v41 = vmul.f32 %v2947_v44, %v2931_v18 }
 0xa5a   : > { %v2952_v45 = vmul.f32 %v5605_v43, %v2948_v41 }
 0xa5c   : > { %v2956_v46 = vadd.f32 %v5607_v38, %v2952_v45 }
 0xa5e   : > { %v2958_v39 = vpack.c.bf16 %v2956_v46, %v2956_v46 }
 0xa60   : > { %5203 = vmatmul.msk.bf16.vlgmr.msra.gmra.mxu3 %vm1277_vm1, %v2958_v39 }
 0xae3   : > { %v2991_v48 = vpop.f32.mrf.mxu3 }
 0xae4   : > { %v6937_v50 = vadd.f32 %v5608_v47, %v2991_v48 }
 0xae6   : > { %v5524_v53 = vpack.i.bf16 %v6937_v50, %v6916_v24 }
 0xae8   : > { %5525 = vrot.lane.b32.xlu0 %v5524_v53, %s6077_s14 }
 0xaeb   : > { %v2993_v35 = vpop.f32.mrf.mxu3 }
 0xb5a   : > { %v6944_v58 = vpop.permute.xlu0 %5525 }
 0xb5b   : > { %v6947_v60 = vunpack.i.l.bf16 %v6944_v58 }
 0xb5d   : > { %v3129_v62 = vsel %vm1369_vm6, %v3128_v59, %v6947_v60  ;;  %v3130_v63 = vrot.slane %v6947_v60, 4 }
 0xb5e   : > { %v3135_v0 = vperm.slane %v3129_v62, %v6645_v52 }
 0xb5f   : > { %v3131_v1 = vsel %vm1369_vm6, %v3114_v54, %v3130_v63 }
 0xb60   : > { %v3139_v4 = vperm.slane %v3131_v1, %v6645_v52  ;;  %v3140_v5 = vrot.slane %v3135_v0, 4  ;;  %v3143_v27 = vsel %vm1369_vm6, %v3135_v0, %v3142_v23 }
 0xb61   : > { %v3151_v28 = vperm.slane %v3143_v27, %v6654_v2 }
 0xb62   : > { %v3152_v6 = vrot.slane %v3139_v4, 4  ;;  %v3141_v7 = vsel %vm1369_vm6, %v3140_v5, %v3123_v49  ;;  %v3155_v8 = vsel %vm1369_vm6, %v3139_v4, %v3154_v3 }
 0xb63   : > { %v3147_v10 = vperm.slane %v3141_v7, %v6654_v2  ;;  %v3163_v11 = vperm.slane %v3155_v8, %v6654_v2  ;;  %v3166_v29 = vrot.slane %v3151_v28, 4  ;;  %v3174_v31 = vpack.c.bf16 %v3151_v28, %v3151_v28 }
 0xb64   : > { %v3153_v51 = vsel %vm1369_vm6, %v3152_v6, %v3127_v42 }
 0xb65   : > { %v3164_v12 = vrot.slane %v3147_v10, 4  ;;  %v3170_v13 = vrot.slane %v3163_v11, 4  ;;  %v3159_v14 = vperm.slane %v3153_v51, %v6654_v2  ;;  %v3172_v17 = vpack.c.bf16 %v3147_v10, %v3147_v10 }
 0xb66   : > { %v3178_v21 = vpack.c.bf16 %v3163_v11, %v3163_v11  ;;  %v3167_v30 = vsel %vm1369_vm6, 0.0, %v3166_v29 }
 0xb67   : > { %v3165_v15 = vsel %vm1369_vm6, 0.0, %v3164_v12  ;;  %v3171_v16 = vsel %vm1369_vm6, 0.0, %v3170_v13  ;;  %v3168_v20 = vrot.slane %v3159_v14, 4  ;;  %v3176_v25 = vpack.c.bf16 %v3159_v14, %v3159_v14 }
 0xb68   : > { %v3173_v18 = vpack.c.bf16 %v3165_v15, %v3165_v15  ;;  %v3179_v19 = vpack.c.bf16 %v3171_v16, %v3171_v16  ;;  %v3175_v32 = vpack.c.bf16 %v3167_v30, %v3167_v30 }
 0xb69   : > { %v3169_v22 = vsel %vm1369_vm6, 0.0, %v3168_v20 }
 0xb6a   : > { %5532 = vxpose.binary.xlu1.c.b16.start.end [1/2] (short) (narrow) %v3173_v18, %v3172_v17, 16  ;;  %v3177_v26 = vpack.c.bf16 %v3169_v22, %v3169_v22 }
 0xb6b   : > { %5535 = vxpose.binary.xlu2.c.b16.start.end [1/2] (short) (narrow) %v3179_v19, %v3178_v21, 16 }
 0xb6c   : > { %5529 = vxpose.binary.xlu0.c.b16.start.end [1/2] (short) (narrow) %v3177_v26, %v3176_v25, 16 }
 0xb7c   : > { %5538 = vxpose.binary.xlu0.c.b16.start.end [1/2] (short) (narrow) %v3175_v32, %v3174_v31, 16 }
 0xbd4   : > { %5559 = vrot.lane.b32.xlu2 %v5558_v33, %s6079_s23 }
 0xbdc   : > { %3036 = vrot.lane.b32.xlu2 %v6937_v50, %s6076_s9  ;;  %s7466_s9 = scalar_lea.vmem [#allocation13], %s6516_s20 }
 0xbdd   : > { %s7467_s14 = smov %s7466_s9 }
 0xbea   : > { %3039 = vrot.lane.b32.xlu0 %v6937_v50, %s6078_s13 }
 0xc0c   : > { %v5536_v41 = vpop.trf.xlu2 }
 0xc0d   : > { %v3442_v45 = vrot.slane %v5536_v41, 4 }
 0xc14   : > { %v5537_v55 = vpop.trf.xlu2 }
 0xc15   : > { %v3470_v57 = vrot.slane %v5537_v55, 4 }
 0xc16   : > { %v5533_v36 = vpop.trf.xlu1 }
 0xc18   : > { %v5530_v34 = vpop.trf.xlu0 }
 0xc19   : > { %v3436_v43 = vrot.slane %v5530_v34, 4  ;;  %v5553_v34 = vpack.i.bf16 %v6916_v24, %v6947_v60 }
 0xc1b   : > { %v3437_v38 = vsel %vm1369_vm6, %v3436_v43, %v5533_v36 }
 0xc1c   : > { %v3441_v46 = vperm.slane %v3437_v38, %v6645_v52 }
 0xc1e   : > { %v5534_v47 = vpop.trf.xlu1  ;;  %v3450_v35 = vrot.slane %v3441_v46, 4 }
 0xc20   : > { %v5531_v44 = vpop.trf.xlu0 }
 0xc21   : > { %v3464_v39 = vrot.slane %v5531_v44, 4  ;;  %v5528_v44 = vunpack.i.h.bf16 %v6944_v58 }
 0xc23   : > { %v3465_v37 = vsel %vm1369_vm6, %v3464_v39, %v5534_v47  ;;  %v3056_v39 = vrot.slane %v5528_v44, 4 }
 0xc24   : > { %v3469_v59 = vperm.slane %v3465_v37, %v6645_v52 }
 0xc26   : > { %v3478_v63 = vrot.slane %v3469_v59, 4 }
 0xc28   : > { %v5539_v48 = vpop.trf.xlu0 }
 0xc29   : > { %v3443_v53 = vsel %vm1369_vm6, %v3442_v45, %v5539_v48  ;;  %v3044_v45 = vrot.slane %v6937_v50, 4 }
 0xc2a   : > { %v3447_v54 = vperm.slane %v3443_v53, %v6645_v52 }
 0xc2c   : > { %v3451_v56 = vsel %vm1369_vm6, %v3447_v54, %v3450_v35  ;;  %v3448_v7 = vrot.slane %v3447_v54, 4 }
 0xc2d   : > { %v3459_v42 = vperm.slane %v3451_v56, %v6654_v2 }
 0xc2e   : > { %v3449_v12 = vsel %vm1369_vm6, %v3448_v7, %v3441_v46  ;;  %v6999_v36 = vpop.permute.xlu2 %5559 }
 0xc2f   : > { %v3462_v1 = vrot.slane %v3459_v42, 4  ;;  %v3455_v16 = vperm.slane %v3449_v12, %v6654_v2  ;;  %v3512_v27 = vshrl.u32 %v3459_v42, 16 }
 0xc30   : > { %v5540_v61 = vpop.trf.xlu0 }
 0xc31   : > { %v3471_v62 = vsel %vm1369_vm6, %v3470_v57, %v5540_v61  ;;  %v3463_v5 = vsel %vm1369_vm6, 0, %v3462_v1  ;;  %v3460_v18 = vrot.slane %v3455_v16, 4  ;;  %v3496_v31 = vshrl.u32 %v3455_v16, 16 }
 0xc32   : > { %v3475_v0 = vperm.slane %v3471_v62, %v6645_v52  ;;  %v3520_v11 = vshrl.u32 %v3463_v5, 16 }
 0xc33   : > { %v3461_v20 = vsel %vm1369_vm6, 0, %v3460_v18 }
 0xc34   : > { %v3479_v49 = vsel %vm1369_vm6, %v3475_v0, %v3478_v63  ;;  %v3476_v4 = vrot.slane %v3475_v0, 4  ;;  %v3504_v22 = vshrl.u32 %v3461_v20, 16 }
 0xc35   : > { %v3487_v3 = vperm.slane %v3479_v49, %v6654_v2 }
 0xc36   : > { %v3477_v10 = vsel %vm1369_vm6, %v3476_v4, %v3469_v59  ;;  %v3037_v38 = vpop.permute.xlu2 %3036 }
 0xc37   : > { %v3490_v6 = vrot.slane %v3487_v3, 4  ;;  %v3483_v15 = vperm.slane %v3477_v10, %v6654_v2  ;;  %v3513_v26 = vshrl.u32 %v3487_v3, 16  ;;  %v3510_v28 = vpack.i.b16 %v3487_v3, %v3459_v42 }
 0xc38   : > { %v3042_v47 = vrot.slane %v3037_v38, 4  ;;  %v3045_v48 = vsel %vm1369_vm6, %v3037_v38, %v3044_v45 }
 0xc39   : > { %v3491_v8 = vsel %vm1369_vm6, 0, %v3490_v6  ;;  %v3488_v17 = vrot.slane %v3483_v15, 4  ;;  %v3514_v29 = vpack.i.b16 %v3513_v26, %v3512_v27  ;;  %v3497_v30 = vshrl.u32 %v3483_v15, 16 }
 0xc3a   : > { %v3521_v51 = vshrl.u32 %v3491_v8, 16  ;;  %v3518_v13 = vpack.i.b16 %v3491_v8, %v3463_v5  ;;  %v3494_v32 = vpack.i.b16 %v3483_v15, %v3455_v16  ;;  %v3053_v60 = vperm.slane %v3045_v48, %v6645_v52 }
 0xc3b   : > { %v3489_v19 = vsel %vm1369_vm6, 0, %v3488_v17  ;;  %v3498_v33 = vpack.i.b16 %v3497_v30, %v3496_v31  ;;  %v3043_v35 = vsel %vm1369_vm6, %v3042_v47, %v6937_v50 }
 0xc3c   : > { %v3522_v14 = vpack.i.b16 %v3521_v51, %v3520_v11  ;;  %v3505_v21 = vshrl.u32 %v3489_v19, 16  ;;  %v3502_v23 = vpack.i.b16 %v3489_v19, %v3461_v20  ;;  %v3049_v55 = vperm.slane %v3043_v35, %v6645_v52 }
 0xc3d   : > { %v3080_v56 = vrot.slane %v3053_v60, 4 }
 0xc3e   : > { %5541 = vxpose.binary.xlu1.c.b16.start.end [1/2] (short) (narrow) %v3522_v14, %v3518_v13, 16  ;;  %v3506_v25 = vpack.i.b16 %v3505_v21, %v3504_v22  ;;  %v3068_v61 = vrot.slane %v3049_v55, 4 }
 0xc4e   : > { %5544 = vxpose.binary.xlu1.c.b16.start.end [1/2] (short) (narrow) %v3506_v25, %v3502_v23, 16 }
 0xc5c   : > { %v3040_v46 = vpop.permute.xlu0 %3039 }
 0xc5d   : > { %v3054_v53 = vrot.slane %v3040_v46, 4  ;;  %v3057_v24 = vsel %vm1369_vm6, %v3040_v46, %v3056_v39 }
 0xc5e   : > { %5547 = vxpose.binary.xlu1.c.b16.start.end [1/2] (short) (narrow) %v3514_v29, %v3510_v28, 16  ;;  %v3065_v58 = vperm.slane %v3057_v24, %v6645_v52 }
 0xc5f   : > { %v3055_v37 = vsel %vm1369_vm6, %v3054_v53, %v5528_v44 }
 0xc60   : > { %v3061_v57 = vperm.slane %v3055_v37, %v6645_v52  ;;  %v3078_v59 = vrot.slane %v3065_v58, 4  ;;  %v3081_v42 = vsel %vm1369_vm6, %v3065_v58, %v3080_v56 }
 0xc61   : > { %v3089_v62 = vperm.slane %v3081_v42, %v6654_v2 }
 0xc62   : > { %v3066_v0 = vrot.slane %v3061_v57, 4  ;;  %v3069_v50 = vsel %vm1369_vm6, %v3061_v57, %v3068_v61  ;;  %v3079_v1 = vsel %vm1369_vm6, %v3078_v59, %v3053_v60 }
 0xc63   : > { %v3077_v49 = vperm.slane %v3069_v50, %v6654_v2  ;;  %v3085_v3 = vperm.slane %v3079_v1, %v6654_v2  ;;  %v3096_v4 = vrot.slane %v3089_v62, 4  ;;  %v3104_v15 = vpack.c.bf16 %v3089_v62, %v3089_v62 }
 0xc64   : > { %v3067_v5 = vsel %vm1369_vm6, %v3066_v0, %v3049_v55 }
 0xc65   : > { %v3073_v6 = vperm.slane %v3067_v5, %v6654_v2  ;;  %v3092_v7 = vrot.slane %v3077_v49, 4  ;;  %v3094_v8 = vrot.slane %v3085_v3, 4  ;;  %v3097_v10 = vsel %vm1369_vm6, 0.0, %v3096_v4 }
 0xc66   : > { %v3105_v51 = vpack.c.bf16 %v3097_v10, %v3097_v10  ;;  %v3100_v21 = vpack.c.bf16 %v3077_v49, %v3077_v49  ;;  %v3102_v22 = vpack.c.bf16 %v3085_v3, %v3085_v3  ;;  %v3262_v23 = vrot.slane %v3104_v15, 4 }
 0xc67   : > { %v3090_v12 = vrot.slane %v3073_v6, 4  ;;  %v3093_v13 = vsel %vm1369_vm6, 0.0, %v3092_v7  ;;  %v3095_v14 = vsel %vm1369_vm6, 0.0, %v3094_v8  ;;  %v3098_v30 = vpack.c.bf16 %v3073_v6, %v3073_v6 }
 0xc68   : > { %v3101_v16 = vpack.c.bf16 %v3093_v13, %v3093_v13  ;;  %v3103_v17 = vpack.c.bf16 %v3095_v14, %v3095_v14  ;;  %v3282_v18 = vrot.slane %v3105_v51, 4  ;;  %v3256_v31 = vrot.slane %v3102_v22, 4 }
 0xc69   : > { %v3091_v20 = vsel %vm1369_vm6, 0.0, %v3090_v12 }
 0xc6a   : > { %v3099_v26 = vpack.c.bf16 %v3091_v20, %v3091_v20  ;;  %v3276_v27 = vrot.slane %v3103_v17, 4  ;;  %v3283_v28 = vsel %vm1369_vm6, %v3282_v18, %v3101_v16  ;;  %v3257_v46 = vsel %vm1369_vm6, %v3256_v31, %v3098_v30 }
 0xc6b   : > { %v3261_v35 = vperm.slane %v3257_v46, %v6645_v52 }
 0xc6c   : > { %v3277_v38 = vsel %vm1369_vm6, %v3276_v27, %v3099_v26 }
 0xc6d   : > { %v3281_v48 = vperm.slane %v3277_v38, %v6645_v52 }
 0xc6e   : > { %5550 = vxpose.binary.xlu1.c.b16.start.end [1/2] (short) (narrow) %v3498_v33, %v3494_v32, 16  ;;  %v3263_v32 = vsel %vm1369_vm6, %v3262_v23, %v3100_v21 }
 0xc6f   : > { %v3267_v44 = vperm.slane %v3263_v32, %v6645_v52  ;;  %v5562_v32 = vunpack.i.h.bf16 %v6999_v36 }
 0xcc8   : > { %5554 = vrot.lane.b32.xlu1 %v5553_v34, %s6079_s23  ;;  %v3287_v34 = vperm.slane %v3283_v28, %v6645_v52 }
 0xcca   : > { %v3288_v53 = vrot.slane %v3287_v34, 4 }
 0xccc   : > { %v3289_v56 = vsel %vm1369_vm6, %v3288_v53, %v3281_v48 }
 0xccd   : > { %v3293_v62 = vperm.slane %v3289_v56, %v6654_v2 }
 0xccf   : > { %v3294_v4 = vrot.slane %v3293_v62, 4  ;;  %v3300_v51 = vshrl.u32 %v3293_v62, 16 }
 0xcd1   : > { %v3295_v15 = vsel %vm1369_vm6, 0, %v3294_v4 }
 0xcd2   : > { %v3306_v26 = vshrl.u32 %v3295_v15, 16 }
 0xcea   : > { %v5542_v43 = vpop.trf.xlu1 }
 0xceb   : > { %v3658_v19 = vrot.slane %v5542_v43, 4 }
 0xcf2   : > { %v7002_v41 = vpop.trf.xlu1 }
 0xcf3   : > { %v3678_v45 = vrot.slane %v7002_v41, 4 }
 0xcfa   : > { %v5545_v54 = vpop.trf.xlu1 }
 0xcfb   : > { %v3659_v29 = vsel %vm1369_vm6, %v3658_v19, %v5545_v54  ;;  %v3268_v54 = vrot.slane %v3267_v44, 4 }
 0xcfc   : > { %v3663_v43 = vperm.slane %v3659_v29, %v6645_v52 }
 0xcfd   : > { %v3269_v59 = vsel %vm1369_vm6, %v3268_v54, %v3261_v35 }
 0xcfe   : > { %v3664_v24 = vrot.slane %v3663_v43, 4  ;;  %v3192_v43 = vrot.slane %v5562_v32, 4 }
 0xd02   : > { %v5546_v63 = vpop.trf.xlu1 }
 0xd03   : > { %v3679_v58 = vsel %vm1369_vm6, %v3678_v45, %v5546_v63  ;;  %v3273_v63 = vperm.slane %v3269_v59, %v6654_v2 }
 0xd04   : > { %v3683_v41 = vperm.slane %v3679_v58, %v6645_v52 }
 0xd05   : > { %v3274_v6 = vrot.slane %v3273_v63, 4  ;;  %v3298_v20 = vpack.i.b16 %v3293_v62, %v3273_v63  ;;  %v3299_v21 = vshrl.u32 %v3273_v63, 16 }
 0xd06   : > { %v3684_v0 = vrot.slane %v3683_v41, 4 }
 0xd07   : > { %v3275_v22 = vsel %vm1369_vm6, 0, %v3274_v6  ;;  %v3301_v27 = vpack.i.b16 %v3300_v51, %v3299_v21 }
 0xd08   : > { %v3304_v29 = vpack.i.b16 %v3295_v15, %v3275_v22  ;;  %v3305_v30 = vshrl.u32 %v3275_v22, 16 }
 0xd0a   : > { %v5548_v11 = vpop.trf.xlu1  ;;  %v3307_v31 = vpack.i.b16 %v3306_v26, %v3305_v30 }
 0xd0b   : > { %v3652_v33 = vrot.slane %v5548_v11, 4 }
 0xd12   : > { %v5549_v25 = vpop.trf.xlu1 }
 0xd13   : > { %v3672_v55 = vrot.slane %v5549_v25, 4 }
 0xd1a   : > { %v5551_v39 = vpop.trf.xlu1 }
 0xd1b   : > { %v3653_v47 = vsel %vm1369_vm6, %v3652_v33, %v5551_v39  ;;  %v5561_v33 = vunpack.i.l.bf16 %v6999_v36 }
 0xd1c   : > { %v3657_v60 = vperm.slane %v3653_v47, %v6645_v52 }
 0xd1d   : > { %v3204_v44 = vrot.slane %v5561_v33, 4 }
 0xd1e   : > { %v3665_v37 = vsel %vm1369_vm6, %v3664_v24, %v3657_v60 }
 0xd1f   : > { %v3669_v57 = vperm.slane %v3665_v37, %v6654_v2 }
 0xd21   : > { %v3670_v1 = vrot.slane %v3669_v57, 4  ;;  %v3695_v5 = vshrl.u32 %v3669_v57, 16 }
 0xd22   : > { %v5552_v42 = vpop.trf.xlu1 }
 0xd23   : > { %v3673_v61 = vsel %vm1369_vm6, %v3672_v55, %v5552_v42  ;;  %v3671_v10 = vsel %vm1369_vm6, 0, %v3670_v1 }
 0xd24   : > { %v3677_v50 = vperm.slane %v3673_v61, %v6645_v52  ;;  %v3701_v17 = vshrl.u32 %v3671_v10, 16 }
 0xd26   : > { %v3685_v49 = vsel %vm1369_vm6, %v3684_v0, %v3677_v50 }
 0xd27   : > { %v3689_v3 = vperm.slane %v3685_v49, %v6654_v2 }
 0xd29   : > { %v3694_v7 = vpack.i.b16 %v3689_v3, %v3669_v57  ;;  %v3696_v8 = vshrl.u32 %v3689_v3, 16  ;;  %v3690_v11 = vrot.slane %v3689_v3, 4 }
 0xd2b   : > { %v3708_v12 = vsel %vm2038_vm7, %v3694_v7, 0  ;;  %v3697_v13 = vpack.i.b16 %v3696_v8, %v3695_v5  ;;  %v3691_v14 = vsel %vm1369_vm6, 0, %v3690_v11 }
 0xd2c   : > { %3717 = vmatpush.bf16.msrb.mxu1 %v3708_v12  ;;  %v3700_v16 = vpack.i.b16 %v3691_v14, %v3671_v10  ;;  %v3702_v18 = vshrl.u32 %v3691_v14, 16 }
 0xd2d   : > { %v3727_v19 = vsel %vm2038_vm7, %v3697_v13, 0 }
 0xd2e   : > { %3736 = vmatpush.bf16.msrb.mxu2 %v3727_v19  ;;  %v3746_v23 = vsel %vm2038_vm7, %v3700_v16, 0  ;;  %v3703_v25 = vpack.i.b16 %v3702_v18, %v3701_v17 }
 0xd2f   : > { %5213 = vmatmul.msk.bf16.vlgmr.msrb.gmra.mxu1 %vm2034_vm8, %v3298_v20  ;;  %3755 = vmatpush.bf16.msrb.mxu3 %v3746_v23 }
 0xd30   : > { %v3765_v28 = vsel %vm2038_vm7, %v3703_v25, 0 }
 0xd31   : > { %5214 = vmatmul.msk.bf16.vlgmr.msrb.gmra.mxu2 %vm2034_vm8, %v3301_v27  ;;  %3774 = vmatpush.bf16.msrb.mxu0 %v3765_v28 }
 0xd32   : > { %5215 = vmatmul.msk.bf16.vlgmr.msrb.gmra.mxu3 %vm2034_vm8, %v3304_v29 }
 0xd34   : > { %5216 = vmatmul.msk.bf16.vlgmr.msrb.gmra.mxu0 %vm2034_vm8, %v3307_v31 }
 0xd3a   : > { %v5555_v34 = vpop.permute.xlu1 %5554 }
 0xd3b   : > { %v5557_v38 = vunpack.i.h.bf16 %v5555_v34  ;;  %v5556_v45 = vunpack.i.l.bf16 %v5555_v34 }
 0xd3d   : > { %v3193_v46 = vsel %vm1369_vm6, %v3192_v43, %v5557_v38  ;;  %v3194_v39 = vrot.slane %v5557_v38, 4  ;;  %v3205_v47 = vsel %vm1369_vm6, %v3204_v44, %v5556_v45  ;;  %v3206_v48 = vrot.slane %v5556_v45, 4 }
 0xd3e   : > { %v3199_v53 = vperm.slane %v3193_v46, %v6645_v52  ;;  %v3211_v24 = vperm.slane %v3205_v47, %v6645_v52 }
 0xd3f   : > { %v3195_v60 = vsel %vm1369_vm6, %v5562_v32, %v3194_v39  ;;  %v3207_v35 = vsel %vm1369_vm6, %v5561_v33, %v3206_v48 }
 0xd40   : > { %v3203_v36 = vperm.slane %v3195_v60, %v6645_v52  ;;  %v3218_v54 = vrot.slane %v3199_v53, 4  ;;  %v3215_v58 = vperm.slane %v3207_v35, %v6645_v52  ;;  %v3216_v37 = vrot.slane %v3211_v24, 4 }
 0xd42   : > { %v3230_v55 = vrot.slane %v3203_v36, 4  ;;  %v3228_v41 = vrot.slane %v3215_v58, 4  ;;  %v3217_v56 = vsel %vm1369_vm6, %v3216_v37, %v3199_v53  ;;  %v3219_v57 = vsel %vm1369_vm6, %v3211_v24, %v3218_v54 }
 0xd43   : > { %v3223_v59 = vperm.slane %v3217_v56, %v6654_v2  ;;  %v3227_v23 = vperm.slane %v3219_v57, %v6654_v2 }
 0xd44   : > { %v3231_v42 = vsel %vm1369_vm6, %v3215_v58, %v3230_v55  ;;  %v3229_v61 = vsel %vm1369_vm6, %v3228_v41, %v3203_v36 }
 0xd45   : > { %v3240_v62 = vrot.slane %v3223_v59, 4  ;;  %v3239_v0 = vperm.slane %v3231_v42, %v6654_v2  ;;  %v3235_v50 = vperm.slane %v3229_v61, %v6654_v2  ;;  %v3248_v3 = vpack.c.bf16 %v3223_v59, %v3223_v59 }
 0xd46   : > { %v3242_v25 = vrot.slane %v3227_v23, 4  ;;  %v3250_v27 = vpack.c.bf16 %v3227_v23, %v3227_v23 }
 0xd47   : > { %v3241_v63 = vsel %vm1369_vm6, 0.0, %v3240_v62  ;;  %v3246_v1 = vrot.slane %v3239_v0, 4  ;;  %v3244_v49 = vrot.slane %v3235_v50, 4  ;;  %v3254_v7 = vpack.c.bf16 %v3239_v0, %v3239_v0 }
 0xd48   : > { %v3249_v4 = vpack.c.bf16 %v3241_v63, %v3241_v63  ;;  %v3252_v11 = vpack.c.bf16 %v3235_v50, %v3235_v50  ;;  %v3243_v26 = vsel %vm1369_vm6, 0.0, %v3242_v25 }
 0xd49   : > { %v3247_v5 = vsel %vm1369_vm6, 0.0, %v3246_v1  ;;  %v3245_v6 = vsel %vm1369_vm6, 0.0, %v3244_v49  ;;  %v3251_v28 = vpack.c.bf16 %v3243_v26, %v3243_v26 }
 0xd4a   : > { %5566 = vxpose.binary.xlu0.c.b16.start.end [1/2] (short) (narrow) %v3249_v4, %v3248_v3, 16  ;;  %v3255_v8 = vpack.c.bf16 %v3247_v5, %v3247_v5  ;;  %v3253_v10 = vpack.c.bf16 %v3245_v6, %v3245_v6 }
 0xd4c   : > { %5569 = vxpose.binary.xlu1.c.b16.start.end [1/2] (short) (narrow) %v3255_v8, %v3254_v7, 16 }
 0xd4d   : > { %5563 = vxpose.binary.xlu2.c.b16.start.end [1/2] (short) (narrow) %v3253_v10, %v3252_v11, 16 }
 0xdac   : > { %v3719_v51 = vpop.f32.mrf.mxu1 }
 0xdad   : > { %v3780_v19 = vsel %vm2034_vm8, %v3719_v51, -inf }
 0xdb1   : > { %v7083_v12 = vpop.f32.mrf.mxu0 }
 0xdb2   : > { %v3789_v17 = vsel %vm2034_vm8, %v7083_v12, -inf }
 0xdb4   : > { %v3721_v13 = vpop.f32.mrf.mxu1  ;;  %v3738_v14 = vpop.f32.mrf.mxu2 }
 0xdb5   : > { %v7085_v15 = vpop.f32.mrf.mxu3  ;;  %v3783_v22 = vsel %vm2034_vm8, %v3738_v14, -inf }
 0xdb6   : > { %v3786_v21 = vsel %vm2034_vm8, %v7085_v15, -inf }
 0xdb9   : > { %v3778_v16 = vpop.f32.mrf.mxu0 }
 0xdbb   : > { %3790 = vmax.xlane.f32.xlu0 %v3789_v17 }
 0xdbc   : > { %v3740_v18 = vpop.f32.mrf.mxu2 }
 0xdbd   : > { %v3759_v20 = vpop.f32.mrf.mxu3 }
 0xdbe   : > { %3781 = vmax.xlane.f32.xlu2 %v3780_v19 }
 0xdc3   : > { %3787 = vmax.xlane.f32.xlu0 %v3786_v21 }
 0xdc6   : > { %3784 = vmax.xlane.f32.xlu2 %v3783_v22 }
 0xdee   : > { %v5564_v29 = vpop.trf.xlu2 }
 0xdef   : > { %5572 = vxpose.binary.xlu2.c.b16.start.end [1/2] (short) (narrow) %v3251_v28, %v3250_v27, 16  ;;  %v3956_v47 = vrot.slane %v5564_v29, 4 }
 0xdf6   : > { %v5565_v30 = vpop.trf.xlu2  ;;  %v5567_v48 = vpop.trf.xlu0 }
 0xdf7   : > { %v3957_v24 = vsel %vm1369_vm6, %v3956_v47, %v5567_v48  ;;  %v3984_v36 = vrot.slane %v5565_v30, 4 }
 0xdf8   : > { %v5570_v53 = vpop.trf.xlu1  ;;  %v3961_v35 = vperm.slane %v3957_v24, %v6645_v52 }
 0xdf9   : > { %v3962_v60 = vrot.slane %v5570_v53, 4 }
 0xdfa   : > { %v3970_v37 = vrot.slane %v3961_v35, 4 }
 0xdfe   : > { %v5568_v55 = vpop.trf.xlu0 }
 0xdff   : > { %v3985_v57 = vsel %vm1369_vm6, %v3984_v36, %v5568_v55 }
 0xe00   : > { %v5571_v56 = vpop.trf.xlu1  ;;  %v3989_v62 = vperm.slane %v3985_v57, %v6645_v52 }
 0xe01   : > { %v3990_v61 = vrot.slane %v5571_v56, 4 }
 0xe02   : > { %v3998_v3 = vrot.slane %v3989_v62, 4 }
 0xe31   : > { %v3782_v31 = vpop.xlane.xlu2 %3781 }
 0xe32   : > { %v3792_v32 = vsub.f32 %v3719_v51, %v3782_v31 }
 0xe34   : > { %v3796_v33 = vmul.f32 1.442695, %v3792_v32 }
 0xe36   : > { %5636 = vpow2.f32 %v3796_v33 }
 0xe39   : > { %v3785_v44 = vpop.xlane.xlu2 %3784 }
 0xe3a   : > { %v3793_v38 = vsub.f32 %v3738_v14, %v3785_v44 }
 0xe3c   : > { %v7095_v34 = vpop.eup %5636  ;;  %v3798_v45 = vmul.f32 1.442695, %v3793_v38 }
 0xe3d   : > { %v3804_v43 = vsel %vm2034_vm8, %v7095_v34, 0.0 }
 0xe3e   : > { %3805 = vadd.xlane.f32.xlu1 %v3804_v43  ;;  %5638 = vpow2.f32 %v3798_v45 }
 0xe44   : > { %v7099_v46 = vpop.eup %5638 }
 0xe45   : > { %v3807_v39 = vsel %vm2034_vm8, %v7099_v46, 0.0 }
 0xe60   : > { %3808 = vadd.xlane.f32.xlu2 %v3807_v39 }
 0xe90   : > { %v5573_v54 = vpop.trf.xlu2 }
 0xe91   : > { %v3963_v58 = vsel %vm1369_vm6, %v3962_v60, %v5573_v54 }
 0xe92   : > { %v3967_v41 = vperm.slane %v3963_v58, %v6645_v52  ;;  %v3791_v58 = vpop.xlane.xlu0 %3790 }
 0xe94   : > { %v3968_v59 = vrot.slane %v3967_v41, 4  ;;  %v3971_v42 = vsel %vm1369_vm6, %v3967_v41, %v3970_v37  ;;  %v3795_v37 = vsub.f32 %v7083_v12, %v3791_v58 }
 0xe95   : > { %v3979_v50 = vperm.slane %v3971_v42, %v6654_v2 }
 0xe96   : > { %v3969_v0 = vsel %vm1369_vm6, %v3968_v59, %v3961_v35  ;;  %v3802_v55 = vmul.f32 1.442695, %v3795_v37 }
 0xe97   : > { %v7113_v63 = vperm.slane %v3969_v0, %v6654_v2  ;;  %v3982_v5 = vrot.slane %v3979_v50, 4  ;;  %v4032_v51 = vshrl.u32 %v3979_v50, 16 }
 0xe98   : > { %v5574_v1 = vpop.trf.xlu2 }
 0xe99   : > { %v3991_v49 = vsel %vm1369_vm6, %v3990_v61, %v5574_v1  ;;  %v3980_v8 = vrot.slane %v7113_v63, 4  ;;  %v3983_v13 = vsel %vm1369_vm6, 0, %v3982_v5  ;;  %v4016_v20 = vshrl.u32 %v7113_v63, 16 }
 0xe9a   : > { %v3995_v4 = vperm.slane %v3991_v49, %v6645_v52  ;;  %v4040_v27 = vshrl.u32 %v3983_v13, 16  ;;  %v3788_v41 = vpop.xlane.xlu0 %3787 }
 0xe9b   : > { %v3981_v19 = vsel %vm1369_vm6, 0, %v3980_v8 }
 0xe9c   : > { %v3996_v6 = vrot.slane %v3995_v4, 4  ;;  %v3999_v7 = vsel %vm1369_vm6, %v3995_v4, %v3998_v3  ;;  %v4024_v31 = vshrl.u32 %v3981_v19, 16 }
 0xe9d   : > { %v4007_v10 = vperm.slane %v3999_v7, %v6654_v2 }
 0xe9e   : > { %v3997_v11 = vsel %vm1369_vm6, %v3996_v6, %v3989_v62 }
 0xe9f   : > { %v4003_v14 = vperm.slane %v3997_v11, %v6654_v2  ;;  %v4030_v16 = vpack.i.b16 %v4007_v10, %v3979_v50  ;;  %v4033_v17 = vshrl.u32 %v4007_v10, 16  ;;  %v4010_v18 = vrot.slane %v4007_v10, 4 }
 0xea1   : > { %v4034_v21 = vpack.i.b16 %v4033_v17, %v4032_v51  ;;  %v4011_v22 = vsel %vm1369_vm6, 0, %v4010_v18  ;;  %v4008_v23 = vrot.slane %v4003_v14, 4  ;;  %v4014_v25 = vpack.i.b16 %v4003_v14, %v7113_v63 }
 0xea2   : > { %v4038_v26 = vpack.i.b16 %v4011_v22, %v3983_v13  ;;  %v4041_v28 = vshrl.u32 %v4011_v22, 16  ;;  %v4017_v29 = vshrl.u32 %v4003_v14, 16 }
 0xea3   : > { %5581 = vxpose.binary.xlu2.c.b16.start.end [1/2] (short) (narrow) %v4034_v21, %v4030_v16, 16  ;;  %v4009_v30 = vsel %vm1369_vm6, 0, %v4008_v23 }
 0xea4   : > { %v4042_v32 = vpack.i.b16 %v4041_v28, %v4040_v27  ;;  %v4022_v33 = vpack.i.b16 %v4009_v30, %v3981_v19  ;;  %v4025_v43 = vshrl.u32 %v4009_v30, 16  ;;  %v4018_v44 = vpack.i.b16 %v4017_v29, %v4016_v20 }
 0xea6   : > { %5575 = vxpose.binary.xlu1.c.b16.start.end [1/2] (short) (narrow) %v4042_v32, %v4038_v26, 16  ;;  %v4026_v38 = vpack.i.b16 %v4025_v43, %v4024_v31 }
 0xea8   : > { %5578 = vxpose.binary.xlu0.c.b16.start.end [1/2] (short) (narrow) %v4026_v38, %v4022_v33, 16 }
 0xeb1   : > { %v3806_v45 = vpop.xlane.xlu1 %3805 }
 0xeb2   : > { %5640 = vrcp.f32 %v3806_v45 }
 0xeb8   : > { %v5641_v39 = vpop.eup %5640 }
 0xeb9   : > { %v3820_v47 = vmul.f32 %v5641_v39, %v7095_v34  ;;  %v3794_v34 = vsub.f32 %v7085_v15, %v3788_v41 }
 0xebb   : > { %v3824_v48 = vpack.c.bf16 %v3820_v47, %v3820_v47  ;;  %v3800_v56 = vmul.f32 1.442695, %v3794_v34 }
 0xebd   : > { %v4228_v53 = vsel %vm2034_vm8, %v3824_v48, 0 }
 0xebe   : > { %4237 = vmatpush.bf16.xpose.msra.mxu1 %v4228_v53 }
 0xed3   : > { %v3809_v24 = vpop.xlane.xlu2 %3808 }
 0xed4   : > { %5642 = vrcp.f32 %v3809_v24 }
 0xed5   : > { %5644 = vpow2.f32 %v3802_v55 }
 0xed6   : > { %5646 = vpow2.f32 %v3800_v56 }
 0xeda   : > { %v5643_v60 = vpop.eup %5642 }
 0xedb   : > { %v3821_v35 = vmul.f32 %v5643_v60, %v7099_v46  ;;  %v5645_v57 = vpop.eup %5644 }
 0xedc   : > { %v3813_v59 = vsel %vm2034_vm8, %v5645_v57, 0.0  ;;  %v5647_v42 = vpop.eup %5646 }
 0xedd   : > { %v3825_v36 = vpack.c.bf16 %v3821_v35, %v3821_v35  ;;  %v3810_v46 = vsel %vm2034_vm8, %v5647_v42, 0.0 }
 0xedf   : > { %v4247_v54 = vsel %vm2034_vm8, %v3825_v36, 0 }
 0xee0   : > { %4256 = vmatpush.bf16.xpose.msra.mxu2 %v4247_v54 }
 0xf19   : > { %3814 = vadd.xlane.f32.xlu0 %v3813_v59 }
 0xf21   : > { %3811 = vadd.xlane.f32.xlu0 %v3810_v46 }
 0xf44   : > { %v5582_v8 = vpop.trf.xlu2 }
 0xf45   : > { %v4172_v51 = vrot.slane %v5582_v8, 4 }
 0xf4a   : > { %5584 = vxpose.binary.xlu0.c.b16.start.end [1/2] (short) (narrow) %v4018_v44, %v4014_v25, 16 }
 0xf4c   : > { %v5583_v20 = vpop.trf.xlu2 }
 0xf4d   : > { %v4192_v23 = vrot.slane %v5583_v20, 4 }
 0xf52   : > { %v5576_v6 = vpop.trf.xlu1 }
 0xf53   : > { %v4178_v7 = vrot.slane %v5576_v6, 4 }
 0xf54   : > { %v5579_v61 = vpop.trf.xlu0 }
 0xf55   : > { %v4179_v10 = vsel %vm1369_vm6, %v4178_v7, %v5579_v61 }
 0xf56   : > { %v4183_v13 = vperm.slane %v4179_v10, %v6645_v52 }
 0xf58   : > { %v4184_v18 = vrot.slane %v4183_v13, 4 }
 0xf5a   : > { %v5577_v11 = vpop.trf.xlu1 }
 0xf5b   : > { %v4198_v14 = vrot.slane %v5577_v11, 4 }
 0xf5c   : > { %v5580_v62 = vpop.trf.xlu0 }
 0xf5d   : > { %v4199_v21 = vsel %vm1369_vm6, %v4198_v14, %v5580_v62 }
 0xf5e   : > { %v4203_v25 = vperm.slane %v4199_v21, %v6645_v52 }
 0xf60   : > { %v4204_v29 = vrot.slane %v4203_v25, 4 }
 0xf8c   : > { %v3815_v0 = vpop.xlane.xlu0 %3814 }
 0xf8d   : > { %5648 = vrcp.f32 %v3815_v0 }
 0xf93   : > { %v5649_v12 = vpop.eup %5648 }
 0xf94   : > { %v3812_v50 = vpop.xlane.xlu0 %3811  ;;  %v3823_v63 = vmul.f32 %v5649_v12, %v5645_v57 }
 0xf95   : > { %5650 = vrcp.f32 %v3812_v50 }
 0xf96   : > { %v3827_v15 = vpack.c.bf16 %v3823_v63, %v3823_v63 }
 0xf98   : > { %v4285_v1 = vsel %vm2034_vm8, %v3827_v15, 0 }
 0xf99   : > { %4294 = vmatpush.bf16.xpose.msra.mxu0 %v4285_v1 }
 0xf9b   : > { %v5651_v49 = vpop.eup %5650 }
 0xf9c   : > { %v3822_v3 = vmul.f32 %v5651_v49, %v5647_v42 }
 0xf9e   : > { %v3826_v4 = vpack.c.bf16 %v3822_v3, %v3822_v3 }
 0xfa0   : > { %v4266_v5 = vsel %vm2034_vm8, %v3826_v4, 0 }
 0xfa1   : > { %4275 = vmatpush.bf16.xpose.msra.mxu3 %v4266_v5 }
 0xff6   : > { %v5585_v16 = vpop.trf.xlu0 }
 0xff7   : > { %v4173_v17 = vsel %vm1369_vm6, %v4172_v51, %v5585_v16 }
 0xff8   : > { %v4177_v19 = vperm.slane %v4173_v17, %v6645_v52 }
 0xffa   : > { %v4185_v22 = vsel %vm1369_vm6, %v4184_v18, %v4177_v19 }
 0xffb   : > { %v4189_v26 = vperm.slane %v4185_v22, %v6654_v2 }
 0xffd   : > { %v4190_v31 = vrot.slane %v4189_v26, 4  ;;  %v4215_v43 = vshrl.u32 %v4189_v26, 16 }
 0xffe   : > { %v5586_v27 = vpop.trf.xlu0 }
 0xfff   : > { %v4193_v28 = vsel %vm1369_vm6, %v4192_v23, %v5586_v27  ;;  %v4191_v39 = vsel %vm1369_vm6, 0, %v4190_v31 }
0x1000   : > { %v4197_v30 = vperm.slane %v4193_v28, %v6645_v52  ;;  %v4221_v24 = vshrl.u32 %v4191_v39, 16 }
0x1002   : > { %v4205_v32 = vsel %vm1369_vm6, %v4204_v29, %v4197_v30 }
0x1003   : > { %v4209_v33 = vperm.slane %v4205_v32, %v6654_v2 }
0x1005   : > { %v4210_v44 = vrot.slane %v4209_v33, 4  ;;  %v4216_v38 = vshrl.u32 %v4209_v33, 16  ;;  %v4214_v45 = vpack.i.b16 %v4209_v33, %v4189_v26 }
0x1007   : > { %5217 = vmatmul.msk.bf16.vlgmr.msra.gmra.mxu1 %vm2034_vm8, %v4214_v45  ;;  %v4217_v47 = vpack.i.b16 %v4216_v38, %v4215_v43  ;;  %v4211_v48 = vsel %vm1369_vm6, 0, %v4210_v44 }
0x1008   : > { %v4220_v53 = vpack.i.b16 %v4211_v48, %v4191_v39  ;;  %v4222_v60 = vshrl.u32 %v4211_v48, 16 }
0x1009   : > { %5218 = vmatmul.msk.bf16.vlgmr.msra.gmra.mxu2 %vm2034_vm8, %v4217_v47 }
0x100a   : > { %5219 = vmatmul.msk.bf16.vlgmr.msra.gmra.mxu3 %vm2034_vm8, %v4220_v53  ;;  %v4223_v35 = vpack.i.b16 %v4222_v60, %v4221_v24 }
0x100c   : > { %5220 = vmatmul.msk.bf16.vlgmr.msra.gmra.mxu0 %vm2034_vm8, %v4223_v35 }
0x1084   : > { %v4239_v36 = vpop.f32.mrf.mxu1 }
0x1089   : > { %v4296_v54 = vpop.f32.mrf.mxu0 }
0x108c   : > { %v4241_v58 = vpop.f32.mrf.mxu1  ;;  %v4258_v37 = vpop.f32.mrf.mxu2 }
0x108d   : > { %v5587_v55 = vpack.i.bf16 %v4258_v37, %v4296_v54  ;;  %v4277_v41 = vpop.f32.mrf.mxu3 }
0x108e   : > { %v5594_v34 = vpack.i.bf16 %v4239_v36, %v4277_v41 }
0x108f   : > { %5588 = vxpose.xlu1.b32.start.end [1/1] (short) (narrow) %v5587_v55, 8 }
0x1090   : > { %5595 = vxpose.xlu2.b32.start.end [1/1] (short) (narrow) %v5594_v34, 8 }
0x1091   : > { %v4298_v56 = vpop.f32.mrf.mxu0 }
0x1094   : > { %v4260_v57 = vpop.f32.mrf.mxu2 }
0x1095   : > { %v4279_v59 = vpop.f32.mrf.mxu3 }
0x1129   : > { %v5596_v42 = vpop.trf.xlu2 }
0x112a   : > { %v5600_v46 = vunpack.i.h.bf16 %v5596_v42  ;;  %v5597_v61 = vunpack.i.l.bf16 %v5596_v42 }
0x112c   : > { %v4430_v62 = vrot.slane %v5600_v46, 4  ;;  %v4428_v0 = vrot.slane %v5597_v61, 4 }
0x112e   : > { %v4429_v12 = vsel %vm1369_vm6, %v4428_v0, %v5600_v46  ;;  %v4431_v50 = vsel %vm1369_vm6, %v5597_v61, %v4430_v62 }
0x112f   : > { %v4435_v49 = vperm.slane %v4429_v12, %v6645_v52  ;;  %v4439_v3 = vperm.slane %v4431_v50, %v6645_v52 }
0x1131   : > { %v4454_v8 = vrot.slane %v4435_v49, 4  ;;  %v4466_v10 = vrot.slane %v4439_v3, 4 }
0x1133   : > { %v5589_v63 = vpop.trf.xlu1 }
0x1134   : > { %v5593_v15 = vunpack.i.h.bf16 %v5589_v63  ;;  %v5590_v1 = vunpack.i.l.bf16 %v5589_v63  ;;  %v5277_v63 = vld [vmem:[%s7466_s9 + $0x8] sm:$0xff] }
0x1135   : > { %4583 = vmatpush.bf16.msrb.mxu1 %v5277_v63 }
0x1136   : > { %v4442_v4 = vrot.slane %v5593_v15, 4  ;;  %v4440_v5 = vrot.slane %v5590_v1, 4 }
0x1138   : > { %v4441_v6 = vsel %vm1369_vm6, %v4440_v5, %v5593_v15  ;;  %v4443_v7 = vsel %vm1369_vm6, %v5590_v1, %v4442_v4 }
0x1139   : > { %v4447_v11 = vperm.slane %v4441_v6, %v6645_v52  ;;  %v4451_v51 = vperm.slane %v4443_v7, %v6645_v52  ;;  %v5609_v7 = vld [vmem:[%s1251_s16] ss:$0 sm:$0xff] }
0x113b   : > { %v4452_v13 = vrot.slane %v4447_v11, 4  ;;  %v4455_v14 = vsel %vm1369_vm6, %v4447_v11, %v4454_v8  ;;  %v4464_v16 = vrot.slane %v4451_v51, 4  ;;  %v4467_v17 = vsel %vm1369_vm6, %v4451_v51, %v4466_v10 }
0x113c   : > { %v4463_v18 = vperm.slane %v4455_v14, %v6654_v2  ;;  %v4475_v19 = vperm.slane %v4467_v17, %v6654_v2 }
0x113d   : > { %v4453_v20 = vsel %vm1369_vm6, %v4452_v13, %v4435_v49  ;;  %v4465_v21 = vsel %vm1369_vm6, %v4464_v16, %v4439_v3 }
0x113e   : > { %v4459_v22 = vperm.slane %v4453_v20, %v6654_v2  ;;  %v4471_v23 = vperm.slane %v4465_v21, %v6654_v2  ;;  %v4478_v25 = vrot.slane %v4463_v18, 4  ;;  %v4482_v26 = vrot.slane %v4475_v19, 4  ;;  %v5279_v20 = vld [vmem:[%s1070_s2 + $0x8] sm:$0xff]  ;;  %v5278_v21 = vld [vmem:[%s1070_s2] sm:$0xff] }
0x113f   : > { %4653 = vmatpush.bf16.msrb.mxu2 %v5279_v20 }
0x1140   : > { %v4479_v27 = vsel %vm1369_vm6, 0.0, %v4478_v25  ;;  %v4476_v28 = vrot.slane %v4459_v22, 4  ;;  %v4480_v29 = vrot.slane %v4471_v23, 4  ;;  %v4483_v30 = vsel %vm1369_vm6, 0.0, %v4482_v26 }
0x1141   : > { %v4484_v31 = vsel %vm1369_vm6, %v4478_v25, %v4459_v22  ;;  %v4489_v32 = vrot.slane %v4479_v27, 4  ;;  %v4495_v33 = vsel %vm1369_vm6, %v4482_v26, %v4471_v23  ;;  %v4500_v43 = vrot.slane %v4483_v30, 4  ;;  %v5282_v25 = vld [vmem:[%s6590_s5 + $0x10] sm:$0xff]  ;;  %v5281_v27 = vld [vmem:[%s6590_s5 + $0x8] sm:$0xff] }
0x1142   : > { %v4477_v44 = vsel %vm1369_vm6, 0.0, %v4476_v28  ;;  %v4481_v38 = vsel %vm1369_vm6, 0.0, %v4480_v29  ;;  %v4488_v45 = vperm.slane %v4484_v31, %v6645_v52  ;;  %v4499_v39 = vperm.slane %v4495_v33, %v6645_v52 }
0x1143   : > { %v4490_v47 = vsel %vm1369_vm6, %v4489_v32, %v4477_v44  ;;  %v4501_v48 = vsel %vm1369_vm6, %v4500_v43, %v4481_v38  ;;  %4654 = vmatpush.bf16.msrb.mxu2 %v5278_v21  ;;  %v5610_v43 = vld [vmem:[%s1254_s17] ss:$0 sm:$0xff] }
0x1144   : > { %v4494_v53 = vperm.slane %v4490_v47, %v6645_v52  ;;  %v4505_v24 = vperm.slane %v4501_v48, %v6645_v52  ;;  %v4508_v60 = vrot.slane %v4488_v45, 4  ;;  %v4520_v35 = vrot.slane %v4499_v39, 4 }
0x1146   : > { %v4509_v36 = vsel %vm1369_vm6, %v4494_v53, %v4508_v60  ;;  %v4521_v54 = vsel %vm1369_vm6, %v4505_v24, %v4520_v35  ;;  %v4506_v58 = vrot.slane %v4494_v53, 4  ;;  %v4518_v37 = vrot.slane %v4505_v24, 4  ;;  %v5280_v53 = vld [vmem:[%s6590_s5] sm:$0xff] }
0x1147   : > { %v4517_v55 = vperm.slane %v4509_v36, %v6654_v2  ;;  %v4529_v41 = vperm.slane %v4521_v54, %v6654_v2  ;;  %v5612_v24 = vld [vmem:[%s1257_s10] ss:$0 sm:$0xff] }
0x1148   : > { %v4507_v34 = vsel %vm1369_vm6, %v4506_v58, %v4488_v45  ;;  %v4519_v56 = vsel %vm1369_vm6, %v4518_v37, %v4499_v39  ;;  %v5613_v37 = vld [vmem:[%s1265_s1] ss:$0 sm:$0xff] }
0x1149   : > { %v4536_v57 = vrot.slane %v4517_v55, 4  ;;  %v4534_v52 = vrot.slane %v4529_v41, 4  ;;  %v4513_v59 = vperm.slane %v4507_v34, %v6654_v2  ;;  %v4525_v42 = vperm.slane %v4519_v56, %v6654_v2  ;;  %v5276_v2 = vld [vmem:[%s7467_s14] sm:$0xff] }
0x114a   : > { %4584 = vmatpush.bf16.msrb.mxu1 %v5276_v2 }
0x114b   : > { %v4537_v46 = vsel %vm1369_vm6, %v4529_v41, %v4536_v57  ;;  %v4535_v61 = vsel %vm1369_vm6, %v4534_v52, %v4517_v55  ;;  %v4530_v62 = vrot.slane %v4525_v42, 4  ;;  %v4532_v0 = vrot.slane %v4513_v59, 4 }
0x114c   : > { %4547 = vrot.lane.b32.xlu1 %v4537_v46, %s6084_s27  ;;  %4543 = vrot.lane.b32.xlu2 %v4535_v61, %s6085_s25  ;;  %s7470_s25 = scalar_lea.vmem [#allocation14], %s6503_s24 }
0x114d   : > { %v4533_v12 = vsel %vm1369_vm6, %v4525_v42, %v4532_v0  ;;  %v4531_v50 = vsel %vm1369_vm6, %v4530_v62, %v4513_v59  ;;  %v5611_v45 = vld [vmem:[%s7470_s25] ss:$0 sm:$0xff] }
0x114e   : > { %4539 = vrot.lane.b32.xlu0 %v4533_v12, %s6086_s8 }
0x11a6   : > { %v4544_v1 = vpop.permute.xlu2 %4543 }
0x11be   : > { %v4548_v3 = vpop.permute.xlu1 %4547 }
0x11c0   : > { %v4540_v15 = vpop.permute.xlu0 %4539 }
0x11c1   : > { %v4550_v49 = vsel %vm2034_vm8, %v4531_v50, %v4540_v15 }
0x11c2   : > { %v4551_v4 = vsel %vm2883_vm10, %v4550_v49, %v4544_v1 }
0x11c3   : > { %v4552_v5 = vsel %vm2885_vm11, %v4551_v4, %v4548_v3 }
0x11c4   : > { %v4553_v6 = vpack.c.bf16 %v4552_v5, %v4552_v5 }
0x11c6   : > { %5229 = vmatmul.msk.bf16.vlgmr.msrb.gmra.mxu1 %vm1277_vm1, %v4553_v6 }
0x1243   : > { %v4586_v8 = vpop.f32.mrf.mxu1 }
0x1244   : > { %v4587_v10 = vadd.f32 %v5609_v7, %v4586_v8 }
0x1246   : > { %v4590_v11 = vadd.f32 %v4587_v10, %v6896_v40  ;;  %v5283_v40 = vld [vmem:[%s6590_s5 + $0x18] sm:$0xff]  ;;  %s7473_s5 = sld [smem:[#allocation30_spill]] }
0x1247   : > { %4706 = vmatpush.bf16.msrb.mxu3 %v5283_v40 }
0x1248   : > { %v4593_v51 = vsel %vm1277_vm1, %v4590_v11, 0.0 }
0x1249   : > { %4594 = vadd.xlane.f32.xlu1 %v4593_v51 }
0x124b   : > { %v4588_v13 = vpop.f32.mrf.mxu1  ;;  %4707 = vmatpush.bf16.msrb.mxu3 %v5282_v25 }
0x124c   : > { %p5256_p12 = scmp.ne.s32.totalorder %s7473_s5, 1 }
0x124d   : > { %s7474_s1 = sld [smem:[#allocation64_spill]] (!%p5256_p12) }
0x124e   : > { %s7475_s7 = sld [smem:[#allocation65_spill]] (!%p5256_p12) }
0x124f   : > { %4708 = vmatpush.bf16.msrb.mxu3 %v5281_v27 }
0x1253   : > { %4709 = vmatpush.bf16.msrb.mxu3 %v5280_v53 }
0x12bc   : > { %v4595_v14 = vpop.xlane.xlu1 %4594 }
0x12bd   : > { %v4596_v16 = vmul.f32 %v4595_v14, %v6602_v9 }
0x12bf   : > { %v4597_v17 = vsub.f32 %v4590_v11, %v4596_v16 }
0x12c1   : > { %v4598_v18 = vmul.f32 %v4597_v17, %v4597_v17 }
0x12c3   : > { %v4599_v19 = vsel %vm1277_vm1, %v4598_v18, 0.0 }
0x12c4   : > { %4600 = vadd.xlane.f32.xlu0 %v4599_v19 }
0x1337   : > { %v4601_v22 = vpop.xlane.xlu0 %4600 }
0x1338   : > { %v4602_v23 = vmul.f32 %v4601_v22, %v6602_v9 }
0x133a   : > { %v4603_v26 = vadd.f32 1e-05, %v4602_v23 }
0x133c   : > { %5652 = vrsqrt.f32 %v4603_v26  ;;  %vm4610_vm0 = vweird.f32 %v4603_v26 }
0x1342   : > { %v5653_v28 = vpop.eup %5652 }
0x1343   : > { %v4605_v29 = vmul.f32 %v5653_v28, %v4603_v26  ;;  %vm4611_vm15 = vweird.f32 %v5653_v28 }
0x1344   : > { %vm4612_vm2 = vmor %vm4610_vm0, %vm4611_vm15 }
0x1345   : > { %v4606_v30 = vmul.f32 %v5653_v28, %v4605_v29 }
0x1347   : > { %v4607_v31 = vmul.f32 0.5, %v4606_v30 }
0x1349   : > { %v4608_v32 = vsub.f32 1.5, %v4607_v31 }
0x134b   : > { %v4609_v33 = vmul.f32 %v5653_v28, %v4608_v32 }
0x134d   : > { %v4613_v44 = vsel %vm4612_vm2, %v5653_v28, %v4609_v33 }
0x134e   : > { %v4614_v38 = vmul.f32 %v4613_v44, %v4597_v17 }
0x1350   : > { %v4618_v39 = vmul.f32 %v5610_v43, %v4614_v38 }
0x1352   : > { %v4622_v47 = vadd.f32 %v5611_v45, %v4618_v39 }
0x1354   : > { %v4623_v48 = vpack.c.bf16 %v4622_v47, %v4622_v47 }
0x1356   : > { %5238 = vmatmul.msk.bf16.vlgmr.msrb.gmra.mxu2 %vm1277_vm1, %v4623_v48 }
0x13d9   : > { %v4656_v60 = vpop.f32.mrf.mxu2 }
0x13da   : > { %v4657_v35 = vadd.f32 %v5612_v24, %v4656_v60 }
0x13dc   : > { %v4660_v36 = vmax.f32 %v4657_v35, 0.0 }
0x13de   : > { %v4661_v54 = vpack.c.bf16 %v4660_v36, %v4660_v36 }
0x13e0   : > { %5255 = vmatmul.msk.bf16.vlgmr.msrb.gmra.mxu3 %vm4698_vm3, %v4661_v54 }
0x13e1   : > { %v4658_v58 = vpop.f32.mrf.mxu2 }
0x1463   : > { %v4711_v55 = vpop.f32.mrf.mxu3 }
0x1464   : > { %v4712_v41 = vadd.f32 %v5613_v37, %v4711_v55 }
0x1466   : > { %v4715_v34 = vadd.f32 %v4712_v41, %v4590_v11 }
0x1467   : > { %4720 = sbr.rel (%p5256_p12) target bundleno = 5497 (0x1579), region = 160 }
0x1468   : > { %4716 = vst.msk [vmem:[%s6594_s28] sm:$0xff] %vm1277_vm1, %v4715_v34 }
0x146b   : > { %v4713_v56 = vpop.f32.mrf.mxu3 }
0x146c   : > { %v4723_v57 = vsel %vm1277_vm1, %v4715_v34, 0.0  ;;  %v5655_v3 = vld [vmem:[%s7474_s1] ss:$0 sm:$0xff] }
0x146d   : > { %4724 = vadd.xlane.f32.xlu0 %v4723_v57 }
0x14e0   : > { %v4725_v52 = vpop.xlane.xlu0 %4724 }
0x14e1   : > { %v4726_v59 = vmul.f32 %v4725_v52, %v6602_v9 }
0x14e3   : > { %v4727_v42 = vsub.f32 %v4715_v34, %v4726_v59 }
0x14e5   : > { %v4728_v46 = vmul.f32 %v4727_v42, %v4727_v42 }
0x14e7   : > { %v4729_v61 = vsel %vm1277_vm1, %v4728_v46, 0.0 }
0x14e8   : > { %4730 = vadd.xlane.f32.xlu0 %v4729_v61 }
0x155b   : > { %v4731_v62 = vpop.xlane.xlu0 %4730 }
0x155c   : > { %v4732_v0 = vmul.f32 %v4731_v62, %v6602_v9  ;;  %v5656_v9 = vld [vmem:[%s7475_s7] ss:$0 sm:$0xff] }
0x155e   : > { %v4733_v12 = vadd.f32 1e-05, %v4732_v0 }
0x1560   : > { %5657 = vrsqrt.f32 %v4733_v12  ;;  %vm4740_vm5 = vweird.f32 %v4733_v12 }
0x1566   : > { %v5658_v50 = vpop.eup %5657 }
0x1567   : > { %v4735_v63 = vmul.f32 %v5658_v50, %v4733_v12  ;;  %vm4741_vm4 = vweird.f32 %v5658_v50 }
0x1568   : > { %vm4742_vm6 = vmor %vm4740_vm5, %vm4741_vm4 }
0x1569   : > { %v4736_v2 = vmul.f32 %v5658_v50, %v4735_v63 }
0x156b   : > { %v4737_v15 = vmul.f32 0.5, %v4736_v2 }
0x156d   : > { %v4738_v1 = vsub.f32 1.5, %v4737_v15 }
0x156f   : > { %v4739_v49 = vmul.f32 %v5658_v50, %v4738_v1 }
0x1571   : > { %v4743_v4 = vsel %vm4742_vm6, %v5658_v50, %v4739_v49 }
0x1572   : > { %v4744_v5 = vmul.f32 %v4743_v4, %v4727_v42 }
0x1574   : > { %v4748_v6 = vmul.f32 %v5655_v3, %v4744_v5 }
0x1576   : > { %v4752_v7 = vadd.f32 %v5656_v9, %v4748_v6 }
0x1578   : > { %4753 = vst.msk [vmem:[%s6594_s28] sm:$0xff] %vm1277_vm1, %v4752_v7 }
0x1579 PF: > { %s7476_s11 = sld [smem:[#allocation31_spill]]  ;;  %s4767_s14 = sshll.u32 %s6594_s28, 4  ;;  %s4768_s14 = int_to_ptr.vmem [resolvable:$true] %s4767_s14 }
0x157a   : > { %s7478_s30 = sld [smem:[#allocation66_spill]]  ;;  %s4755_s23 = scalar_lea.sflag [#allocation4], %s6485_s12 }
0x157f   : > { %s5258_s4 = sshll.u32 %s7476_s11, 3 }
0x1580   : > { %s7479_s21 = smov %s7478_s30  ;;  %s4765_s9 = scalar_lea.hbm %s7478_s30, %s5258_s4 }
0x1581   : > { %s4769_s13 = sshll.u32 %s4765_s9, 4  ;;  %s5949_s25 = scalar_lea.hbm %s7479_s21, 16  ;;  %s4770_s13 = int_to_ptr.hbm [resolvable:$true] %s4769_s13 }
0x1582   : > { %s5943_s27 = sshra.s32 %s4770_s13, 4  ;;  %s5944_s27 = int_to_ptr.hbm [resolvable:$true] %s5943_s27 }
0x1583   : > { %s5945_s20 = scalar_lea.hbm %s5944_s27, 8  ;;  %p5950_p10 = scmp.lt.s32.totalorder %s5944_s27, %s7479_s21 }
0x1584   : > { %p5946_p13 = scmp.ne.s32.totalorder %s5944_s27, %s5945_s20  ;;  %p5951_p1 = scmp.lt.s32.totalorder %s5949_s25, %s5945_s20 }
0x1586   : > { %p5947_p0 = pnand %p5946_p13, %p6335_p8  ;;  %p5952_p3 = por %p5951_p1, %p5950_p10 }
0x1588   : > { %p5948_p5 = pneg %p5947_p0 }
0x158a   : > { %p5953_p6 = pnand %p5952_p3, %p5948_p5 }
0x158c   : > { %5956 = shalt.err (!%p5953_p6)
}
0x158d   : > { %5302 = dma.vmem_to_hbm [thread:$0]  (%p6335_p8), %s4768_s14, 128, %s4770_s13, %s4755_s23  }
0x158e PF: > { %s7480_s12 = sld [smem:[#allocation34_spill]] }
0x158f   : > { %s7481_s28 = sld [smem:[#allocation27_spill]] }
0x1594   : > { %p5337_p9 = scmp.ge.s32.totalorder %s7480_s12, 2 }
0x1595   : > { %s4781_s24 = sand.u32 1, %s7481_s28  }
0x1596   : > { %p5333_p11 = pnand %p5337_p9, %p6342_p2  ;;  %s4782_s17 = scalar_lea.sflag [#allocation4], %s4781_s24 }
0x1598   : > { %p5334_p4 = pneg %p5333_p11 }
0x159a   : > { %6026 = dma.done.wait (%p5334_p4), %s4782_s17, 128  }
0x159b   : > { %6028 = vsyncadd (%p5334_p4), %s4782_s17, 4294967168  ;;  %s52_s3 = sadd.s32 1, %s7480_s12   ;;  %s7483_s5 = sld [smem:[#allocation25_spill]] }
0x159c   : > { %p49_p7 = scmp.ge.s32.totalorder %s52_s3, 6   ;;  %s7484_s26 = sld [smem:[#allocation26_spill]] }
0x159d   : > { %s7485_s27 = sld [smem:[#allocation37_spill]] }
0x159e   : > { %s7486_s28 = sld [smem:[#allocation28_spill]] }
0x159f   : > { %s7487_s6 = sld [smem:[#allocation29_spill]] }
0x15a0   : > { %s7488_s2 = sld [smem:[#allocation38_spill]]  ;;  %51 = sbr.rel (!%p49_p7) target bundleno = 43 (0x2b), region = 304 }
0x15a1   : > { %s7489_s29 = sld [smem:[#allocation32_spill]] }
0x15a2   : > { %s7490_s0 = sld [smem:[#allocation33_spill]] }
0x15a3   : > { %s7491_s7 = sld [smem:[#allocation35_spill]] }
0x15a4   : > { %s7492_s30 = sld [smem:[#allocation36_spill]] }
0x15a5   :  { %4788 = vsyncpa [#allocation3], 1 }
0x15a6   :  { %4790 = vsyncpa [#allocation3 + $0x1], 1 }
0x15a7   :  { %4791 = vsyncpa [#allocation6], 1 }
0x15a8   :  { %4793 = vsyncpa [#allocation6 + $0x1], 1 }
0x15a9   :  { %4794 = vsyncpa [#allocation9], 1 }
0x15aa   :  { %4796 = vsyncpa [#allocation9 + $0x1], 1 }
0x15ab   :  { %4797 = vsyncpa [#allocation12], 1 }
0x15ac   :  { %4799 = vsyncpa [#allocation12 + $0x1], 1 }
0x15ad   :  { %4800 = vsyncpa [#allocation15], 1 }
0x15ae   :  { %4802 = vsyncpa [#allocation15 + $0x1], 1 }
0x15af   :  { %4803 = vsyncpa [#allocation4], 1 }
0x15b0   :  { %4805 = vsyncpa [#allocation4 + $0x1], 1 }

</bundles_post_ra>
